<compile_context>
chip_gen: v7x
topology: tpu7x:2x2x1
jax: 0.10.0
libtpu: 0.0.40
codegen_flags: <defaults>
</compile_context>

<pallas_src>
import jax
import jax.numpy as jnp
from jax.experimental import pallas as pl
from jax.experimental.pallas import tpu as pltpu

LEAKY_SLOPE = 0.01            # nn.LeakyReLU default negative_slope
IN_EPS = 1e-5                 # nn.InstanceNorm2d default eps
VMEM_LIMIT = 32 * 1024 * 1024
TARGET_TILE_POSITIONS = 1024  # target GEMM rows (output positions) per grid step


# ---------------------------------------------------------------------------
# Pallas kernels
# ---------------------------------------------------------------------------
def conv_down_kernel(p00_ref, p01_ref, p10_ref, p11_ref, m_ref, s_ref,
                     w_ref, b_ref, y_ref, stat_ref):
    """Fused: normalize input taps -> 3x3/stride-2 conv -> bias -> LeakyReLU.

    p??_ref : (1, 1, TH+1, OW+1, Cin) bf16   space-to-depth phases (row-halo tile)
    m_ref   : (1, 1, Cin) f32                per-(sample, channel) mean of input
    s_ref   : (1, 1, Cin) f32                per-(sample, channel) 1/std of input
    w_ref   : (9, Cin, Cout) bf16            conv weight, (kh, kw) flattened
    b_ref   : (1, Cout) f32                  bias
    y_ref   : (1, 1, TH*OW, Cout) bf16       unnormalized activations (this layer)
    stat_ref: (1, 2, Cout) f32               [sum, sumsq] accumulated across row tiles
    """
    thp, owp, cin = p00_ref.shape[2], p00_ref.shape[3], p00_ref.shape[4]
    th, ow = thp - 1, owp - 1
    cout = w_ref.shape[2]

    m = m_ref[...]                       # (1, 1, Cin) f32, broadcasts over block
    s = s_ref[...]

    def _norm(ref):
        # InstanceNorm of the *previous* layer, fused here.  Padded entries hold
        # the per-channel mean, so they normalize to exactly zero.
        return ((ref[0, 0].astype(jnp.float32) - m) * s).astype(jnp.bfloat16)

    phases = (_norm(p00_ref), _norm(p01_ref), _norm(p10_ref), _norm(p11_ref))

    acc = jnp.zeros((th * ow, cout), jnp.float32)
    for kh in range(3):
        for kw in range(3):
            # output (oh, ow) reads padded (2*oh + kh, 2*ow + kw)
            #   == phase (kh%2, kw%2) at (oh + kh//2, ow + kw//2)
            x = phases[(kh % 2) * 2 + (kw % 2)]
            tap = x[kh // 2:kh // 2 + th, kw // 2:kw // 2 + ow, :]
            acc += jnp.dot(tap.reshape(th * ow, cin), w_ref[kh * 3 + kw],
                           preferred_element_type=jnp.float32)

    y = acc + b_ref[...]                                  # (TH*OW, Cout) f32
    y = jnp.where(y >= 0.0, y, LEAKY_SLOPE * y)           # LeakyReLU(0.01)

    y_ref[...] = y.astype(y_ref.dtype).reshape(y_ref.shape)

    # Per-channel partial statistics for this layer's InstanceNorm (applied by
    # the consumer kernel).  Accumulated across the (arbitrary) row-tile axis.
    tile_stats = jnp.concatenate(
        [jnp.sum(y, axis=0, keepdims=True),
         jnp.sum(y * y, axis=0, keepdims=True)], axis=0)  # (2, Cout)

    @pl.when(pl.program_id(1) == 0)
    def _():
        stat_ref[...] = jnp.zeros_like(stat_ref)

    stat_ref[...] += tile_stats.reshape(stat_ref.shape)


def last_kernel(x_ref, m_ref, s_ref, w_ref, b_ref, o_ref):
    """Fused: normalize input -> 3x3/stride-1 conv (no pad) -> bias -> sigmoid.

    x_ref : (1, 1, TH+2, W2, Cin) bf16   unnormalized down2 activations (row halo)
    w_ref : (9, Cin, 128) bf16           weight zero-padded from Cout=1 to 128 lanes
    o_ref : (1, 1, TH*OW, 128) f32       lane-dense output; column 0 is the result
    """
    thh, w2, cin = x_ref.shape[2], x_ref.shape[3], x_ref.shape[4]
    th, ow = thh - 2, w2 - 2
    cout = w_ref.shape[2]

    m = m_ref[...]
    s = s_ref[...]
    x = ((x_ref[0, 0].astype(jnp.float32) - m) * s).astype(jnp.bfloat16)

    acc = jnp.zeros((th * ow, cout), jnp.float32)
    for kh in range(3):
        for kw in range(3):
            tap = x[kh:kh + th, kw:kw + ow, :]
            acc += jnp.dot(tap.reshape(th * ow, cin), w_ref[kh * 3 + kw],
                           preferred_element_type=jnp.float32)

    y = acc + b_ref[...]
    # exact sigmoid (exp goes to the EUP; exact divide keeps outputs in [0, 1])
    o_ref[...] = (1.0 / (1.0 + jnp.exp(-y))).reshape(o_ref.shape)


# ---------------------------------------------------------------------------
# JAX glue: layout plumbing only (padding, space-to-depth, row-halo tiles)
# ---------------------------------------------------------------------------
def _pick_row_tile(oh, ow, target=TARGET_TILE_POSITIONS):
    """Largest divisor of `oh` keeping roughly `target` output positions/tile."""
    cap = max(1, target // max(ow, 1))
    best = 1
    for d in range(1, oh + 1):
        if oh % d == 0 and d <= cap:
            best = d
    return best


def _pad_with_value(x, fill):
    """Pad H and W by 1 with the per-(n, c) value `fill` ((N,1,C))."""
    n, h, w, c = x.shape
    f = fill.astype(x.dtype)[:, :, None, :]                     # (N,1,1,C)
    row = jnp.broadcast_to(f, (n, 1, w, c))
    x = jnp.concatenate([row, x, row], axis=1)
    col = jnp.broadcast_to(f, (n, h + 2, 1, c))
    return jnp.concatenate([col, x, col], axis=2)               # (N,H+2,W+2,C)


def _phase_halo_tiles(xp, th):
    """Space-to-depth phases of the padded input, tiled over output rows with a
    1-row halo.  Returns 4 arrays of shape (N, T, th+1, OW+1, C)."""
    n, hp, wp, c = xp.shape
    ohp = hp // 2                       # = OH + 1
    t_count = (ohp - 1) // th
    out = []
    for ph in (0, 1):
        for pw in (0, 1):
            p = xp[:, ph::2, pw::2, :]                          # (N, OH+1, OW+1, C)
            tiles = jnp.stack(
                [p[:, t * th: t * th + th + 1] for t in range(t_count)], axis=1)
            out.append(tiles)
    return out


def conv_down_layer(x, mean_in, inv_in, w_hwio, b):
    """One Downsample block. `x` is the UNNORMALIZED previous activation (bf16);
    (mean_in, inv_in) are its InstanceNorm stats ((N,1,Cin) f32; zeros/ones for
    the image).  Returns (y_unnorm, mean_y, inv_y)."""
    n, hin, win, cin = x.shape
    cout = w_hwio.shape[-1]
    oh, ow = hin // 2, win // 2
    th = _pick_row_tile(oh, ow)
    t_count = oh // th

    xp = _pad_with_value(x, mean_in)                            # mean-valued pad
    p00, p01, p10, p11 = _phase_halo_tiles(xp, th)
    w9 = w_hwio.astype(jnp.bfloat16).reshape(9, cin, cout)
    b2 = b.astype(jnp.float32).reshape(1, cout)

    phase_spec = pl.BlockSpec((1, 1, th + 1, ow + 1, cin),
                              lambda i, j: (i, j, 0, 0, 0))
    stat_spec = lambda shape_c: pl.BlockSpec((1, 1, shape_c), lambda i, j: (i, 0, 0))

    y, stats = pl.pallas_call(
        conv_down_kernel,
        out_shape=(jax.ShapeDtypeStruct((n, t_count, th * ow, cout), jnp.bfloat16),
                   jax.ShapeDtypeStruct((n, 2, cout), jnp.float32)),
        grid=(n, t_count),
        in_specs=[
            phase_spec, phase_spec, phase_spec, phase_spec,
            stat_spec(cin),                                     # mean of input
            stat_spec(cin),                                     # 1/std of input
            pl.BlockSpec((9, cin, cout), lambda i, j: (0, 0, 0)),
            pl.BlockSpec((1, cout), lambda i, j: (0, 0)),
        ],
        out_specs=(
            pl.BlockSpec((1, 1, th * ow, cout), lambda i, j: (i, j, 0, 0)),
            pl.BlockSpec((1, 2, cout), lambda i, j: (i, 0, 0)),
        ),
        compiler_params=pltpu.CompilerParams(
            dimension_semantics=("parallel", "arbitrary"),
            vmem_limit_bytes=VMEM_LIMIT),
    )(p00, p01, p10, p11, mean_in, inv_in, w9, b2)

    # finalize InstanceNorm stats (biased variance, eps=1e-5, no affine)
    p_total = float(oh * ow)
    mu = stats[:, 0:1, :] / p_total                             # (N,1,Cout)
    var = jnp.maximum(stats[:, 1:2, :] / p_total - mu * mu, 0.0)
    inv = jax.lax.rsqrt(var + IN_EPS)
    return y.reshape(n, oh, ow, cout), mu, inv


def last_layer(x, mean_in, inv_in, w_hwio, b):
    """Final Conv2d(128->1, k=3, s=1, p=0) + sigmoid, input normalized in-kernel."""
    n, h2, w2, cin = x.shape
    oh, ow = h2 - 2, w2 - 2
    th = _pick_row_tile(oh, ow)
    t_count = oh // th
    tiles = jnp.stack([x[:, t * th: t * th + th + 2] for t in range(t_count)],
                      axis=1)                                   # (N,T,TH+2,W2,C)

    cpad = 128                                                  # lane-dense output
    w_pad = jnp.zeros((3, 3, cin, cpad), jnp.bfloat16)
    w_pad = w_pad.at[:, :, :, :w_hwio.shape[-1]].set(w_hwio.astype(jnp.bfloat16))
    w9 = w_pad.reshape(9, cin, cpad)
    b_pad = jnp.zeros((1, cpad), jnp.float32)
    b_pad = b_pad.at[:, :b.shape[0]].set(b.astype(jnp.float32)[None, :])

    out = pl.pallas_call(
        last_kernel,
        out_shape=jax.ShapeDtypeStruct((n, t_count, th * ow, cpad), jnp.float32),
        grid=(n, t_count),
        in_specs=[
            pl.BlockSpec((1, 1, th + 2, w2, cin), lambda i, j: (i, j, 0, 0, 0)),
            pl.BlockSpec((1, 1, cin), lambda i, j: (i, 0, 0)),
            pl.BlockSpec((1, 1, cin), lambda i, j: (i, 0, 0)),
            pl.BlockSpec((9, cin, cpad), lambda i, j: (0, 0, 0)),
            pl.BlockSpec((1, cpad), lambda i, j: (0, 0)),
        ],
        out_specs=pl.BlockSpec((1, 1, th * ow, cpad), lambda i, j: (i, j, 0, 0)),
        compiler_params=pltpu.CompilerParams(
            dimension_semantics=("parallel", "parallel"),
            vmem_limit_bytes=VMEM_LIMIT),
    )(tiles, mean_in, inv_in, w9, b_pad)

    return out[..., 0].reshape(n, oh, ow, 1)                    # keep channel 0


# ---------------------------------------------------------------------------
# Full Discriminator forward
# ---------------------------------------------------------------------------
def discriminator_forward(img_nchw, params):
    # img_nchw: (N, 3, H, W) float32  ->  (N, 1, H//4 - 2, W//4 - 2) float32
    n, cin, h, w = img_nchw.shape
    assert h % 4 == 0 and w % 4 == 0, "H and W must be multiples of 4"
    x = jnp.transpose(img_nchw, (0, 2, 3, 1)).astype(jnp.bfloat16)   # NCHW -> NHWC

    zeros = jnp.zeros((n, 1, cin), jnp.float32)   # identity "norm" for the image
    ones = jnp.ones((n, 1, cin), jnp.float32)

    y1, m1, s1 = conv_down_layer(x, zeros, ones, params["w1"], params["b1"])
    y2, m2, s2 = conv_down_layer(y1, m1, s1, params["w2"], params["b2"])
    out = last_layer(y2, m2, s2, params["w3"], params["b3"])
    return jnp.transpose(out, (0, 3, 1, 2)).astype(jnp.float32)      # NHWC -> NCHW


def init_params(key):
    k1, k2, k3 = jax.random.split(key, 3)
    # weights stored in HWIO (kh, kw, cin, cout); PyTorch OIHW needs transpose (2,3,1,0)
    return {
        "w1": 0.1 * jax.random.normal(k1, (3, 3, 3, 64), jnp.float32),
        "b1": jnp.linspace(-0.1, 0.1, 64, dtype=jnp.float32),
        "w2": 0.05 * jax.random.normal(k2, (3, 3, 64, 128), jnp.float32),
        "b2": jnp.linspace(-0.1, 0.1, 128, dtype=jnp.float32),
        "w3": 0.05 * jax.random.normal(k3, (3, 3, 128, 1), jnp.float32),
        "b3": jnp.array([0.02], dtype=jnp.float32),
    }


# ---------------------------------------------------------------------------
# Pure-JAX f32 reference (mirrors the PyTorch forward) for a loose check
# ---------------------------------------------------------------------------
def reference_forward(img_nchw, params):
    x = jnp.transpose(img_nchw, (0, 2, 3, 1)).astype(jnp.float32)

    def conv(x, w, b, stride, pad):
        y = jax.lax.conv_general_dilated(
            x, w.astype(jnp.float32), window_strides=(stride, stride),
            padding=((pad, pad), (pad, pad)),
            dimension_numbers=("NHWC", "HWIO", "NHWC"))
        return y + b.astype(jnp.float32)[None, None, None, :]

    def leaky(v):
        return jnp.where(v >= 0, v, LEAKY_SLOPE * v)

    def inorm(v):
        mu = jnp.mean(v, axis=(1, 2), keepdims=True)
        var = jnp.mean((v - mu) ** 2, axis=(1, 2), keepdims=True)
        return (v - mu) * jax.lax.rsqrt(var + IN_EPS)

    x = inorm(leaky(conv(x, params["w1"], params["b1"], 2, 1)))
    x = inorm(leaky(conv(x, params["w2"], params["b2"], 2, 1)))
    x = conv(x, params["w3"], params["b3"], 1, 0)
    x = 1.0 / (1.0 + jnp.exp(-x))
    return jnp.transpose(x, (0, 3, 1, 2))


if __name__ == "__main__":
    key = jax.random.PRNGKey(0)
    pkey, xkey = jax.random.split(key)
    params = init_params(pkey)

    # batch=2, channels=3 (RGB), spatial=16x16  ->  output (2, 1, 2, 2)
    img = jax.random.normal(xkey, (2, 3, 16, 16), jnp.float32)

    out = jax.jit(discriminator_forward)(img, params)
    out = jax.block_until_ready(out)

    assert out.shape == (2, 1, 2, 2), out.shape
    assert bool(jnp.all(jnp.isfinite(out)))
    assert bool(jnp.all((out >= 0.0) & (out <= 1.0)))            # sigmoid range

    ref = reference_forward(img, params)
    err = float(jnp.max(jnp.abs(out - ref)))
    assert err < 0.1, f"max abs err vs f32 reference = {err}"     # bf16 tolerance

    print("KERNEL_OK")
</pallas_src>

<mosaic_0001>
module attributes {stable_mosaic.version = 11 : i64} {
  func.func @conv_down_kernel(%arg0: i32, %arg1: i32, %arg2: memref<1x1x9x9x3xbf16, #tpu.memory_space<vmem>>, %arg3: memref<1x1x9x9x3xbf16, #tpu.memory_space<vmem>>, %arg4: memref<1x1x9x9x3xbf16, #tpu.memory_space<vmem>>, %arg5: memref<1x1x9x9x3xbf16, #tpu.memory_space<vmem>>, %arg6: memref<1x1x3xf32, #tpu.memory_space<vmem>>, %arg7: memref<1x1x3xf32, #tpu.memory_space<vmem>>, %arg8: memref<9x3x64xbf16, #tpu.memory_space<vmem>>, %arg9: memref<1x64xf32, #tpu.memory_space<vmem>>, %arg10: memref<1x1x64x64xbf16, #tpu.memory_space<vmem>>, %arg11: memref<1x2x64xf32, #tpu.memory_space<vmem>>) attributes {dimension_semantics = [#tpu.dimension_semantics<parallel>, #tpu.dimension_semantics<arbitrary>], iteration_bounds = array<i64: 2, 1>, scalar_prefetch = 0 : i64, scratch_operands = 0 : i64, tpu.core_type = #tpu.core_type<tc>, window_params = [{transform_indices = @transform_0, window_bounds = array<i64: 1, 1, 9, 9, 3>}, {transform_indices = @transform_1, window_bounds = array<i64: 1, 1, 9, 9, 3>}, {transform_indices = @transform_2, window_bounds = array<i64: 1, 1, 9, 9, 3>}, {transform_indices = @transform_3, window_bounds = array<i64: 1, 1, 9, 9, 3>}, {transform_indices = @transform_4, window_bounds = array<i64: 1, 1, 3>}, {transform_indices = @transform_5, window_bounds = array<i64: 1, 1, 3>}, {pipeline_mode = #tpu.pipeline_mode<synchronous>, transform_indices = @transform_6, window_bounds = array<i64: 9, 3, 64>}, {pipeline_mode = #tpu.pipeline_mode<synchronous>, transform_indices = @transform_7, window_bounds = array<i64: 1, 64>}, {transform_indices = @transform_8, window_bounds = array<i64: 1, 1, 64, 64>}, {transform_indices = @transform_9, window_bounds = array<i64: 1, 2, 64>}]} {
    %c0 = arith.constant 0 : index
    %c0_0 = arith.constant 0 : index
    %c0_1 = arith.constant 0 : index
    %0 = vector.load %arg6[%c0, %c0_0, %c0_1] : memref<1x1x3xf32, #tpu.memory_space<vmem>>, vector<1x1x3xf32>
    %c0_2 = arith.constant 0 : index
    %c0_3 = arith.constant 0 : index
    %c0_4 = arith.constant 0 : index
    %1 = vector.load %arg7[%c0_2, %c0_3, %c0_4] : memref<1x1x3xf32, #tpu.memory_space<vmem>>, vector<1x1x3xf32>
    %c0_5 = arith.constant 0 : index
    %c0_6 = arith.constant 0 : index
    %c0_7 = arith.constant 0 : index
    %c0_8 = arith.constant 0 : index
    %c0_9 = arith.constant 0 : index
    %2 = vector.load %arg2[%c0_5, %c0_6, %c0_7, %c0_8, %c0_9] : memref<1x1x9x9x3xbf16, #tpu.memory_space<vmem>>, vector<1x1x9x9x3xbf16>
    %3 = vector.shape_cast %2 : vector<1x1x9x9x3xbf16> to vector<9x9x3xbf16>
    %4 = arith.extf %3 : vector<9x9x3xbf16> to vector<9x9x3xf32>
    %5 = vector.broadcast %0 : vector<1x1x3xf32> to vector<9x9x3xf32>
    %6 = arith.subf %4, %5 : vector<9x9x3xf32>
    %7 = vector.broadcast %1 : vector<1x1x3xf32> to vector<9x9x3xf32>
    %8 = arith.mulf %6, %7 : vector<9x9x3xf32>
    %9 = arith.truncf %8 : vector<9x9x3xf32> to vector<9x9x3xbf16>
    %c0_10 = arith.constant 0 : index
    %c0_11 = arith.constant 0 : index
    %c0_12 = arith.constant 0 : index
    %c0_13 = arith.constant 0 : index
    %c0_14 = arith.constant 0 : index
    %10 = vector.load %arg3[%c0_10, %c0_11, %c0_12, %c0_13, %c0_14] : memref<1x1x9x9x3xbf16, #tpu.memory_space<vmem>>, vector<1x1x9x9x3xbf16>
    %11 = vector.shape_cast %10 : vector<1x1x9x9x3xbf16> to vector<9x9x3xbf16>
    %12 = arith.extf %11 : vector<9x9x3xbf16> to vector<9x9x3xf32>
    %13 = vector.broadcast %0 : vector<1x1x3xf32> to vector<9x9x3xf32>
    %14 = arith.subf %12, %13 : vector<9x9x3xf32>
    %15 = vector.broadcast %1 : vector<1x1x3xf32> to vector<9x9x3xf32>
    %16 = arith.mulf %14, %15 : vector<9x9x3xf32>
    %17 = arith.truncf %16 : vector<9x9x3xf32> to vector<9x9x3xbf16>
    %c0_15 = arith.constant 0 : index
    %c0_16 = arith.constant 0 : index
    %c0_17 = arith.constant 0 : index
    %c0_18 = arith.constant 0 : index
    %c0_19 = arith.constant 0 : index
    %18 = vector.load %arg4[%c0_15, %c0_16, %c0_17, %c0_18, %c0_19] : memref<1x1x9x9x3xbf16, #tpu.memory_space<vmem>>, vector<1x1x9x9x3xbf16>
    %19 = vector.shape_cast %18 : vector<1x1x9x9x3xbf16> to vector<9x9x3xbf16>
    %20 = arith.extf %19 : vector<9x9x3xbf16> to vector<9x9x3xf32>
    %21 = vector.broadcast %0 : vector<1x1x3xf32> to vector<9x9x3xf32>
    %22 = arith.subf %20, %21 : vector<9x9x3xf32>
    %23 = vector.broadcast %1 : vector<1x1x3xf32> to vector<9x9x3xf32>
    %24 = arith.mulf %22, %23 : vector<9x9x3xf32>
    %25 = arith.truncf %24 : vector<9x9x3xf32> to vector<9x9x3xbf16>
    %c0_20 = arith.constant 0 : index
    %c0_21 = arith.constant 0 : index
    %c0_22 = arith.constant 0 : index
    %c0_23 = arith.constant 0 : index
    %c0_24 = arith.constant 0 : index
    %26 = vector.load %arg5[%c0_20, %c0_21, %c0_22, %c0_23, %c0_24] : memref<1x1x9x9x3xbf16, #tpu.memory_space<vmem>>, vector<1x1x9x9x3xbf16>
    %27 = vector.shape_cast %26 : vector<1x1x9x9x3xbf16> to vector<9x9x3xbf16>
    %28 = arith.extf %27 : vector<9x9x3xbf16> to vector<9x9x3xf32>
    %29 = vector.broadcast %0 : vector<1x1x3xf32> to vector<9x9x3xf32>
    %30 = arith.subf %28, %29 : vector<9x9x3xf32>
    %31 = vector.broadcast %1 : vector<1x1x3xf32> to vector<9x9x3xf32>
    %32 = arith.mulf %30, %31 : vector<9x9x3xf32>
    %33 = arith.truncf %32 : vector<9x9x3xf32> to vector<9x9x3xbf16>
    %cst = arith.constant 0.000000e+00 : f32
    %34 = vector.broadcast %cst : f32 to vector<64x64xf32>
    %35 = vector.extract_strided_slice %9 {offsets = [0, 0, 0], sizes = [8, 8, 3], strides = [1, 1, 1]} : vector<9x9x3xbf16> to vector<8x8x3xbf16>
    %36 = vector.shape_cast %35 : vector<8x8x3xbf16> to vector<64x3xbf16>
    %c0_25 = arith.constant 0 : index
    %c0_26 = arith.constant 0 : index
    %c0_27 = arith.constant 0 : index
    %37 = vector.load %arg8[%c0_25, %c0_26, %c0_27] : memref<9x3x64xbf16, #tpu.memory_space<vmem>>, vector<1x3x64xbf16>
    %38 = vector.shape_cast %37 : vector<1x3x64xbf16> to vector<3x64xbf16>
    %cst_28 = arith.constant dense<0.000000e+00> : vector<64x64xf32>
    %39 = tpu.matmul %36, %38, %cst_28 {dimension_numbers = #tpu.dot_dimension_numbers<[1], [0], [0], [1], [0, 0, 1, 1], [], []>} : vector<64x3xbf16>, vector<3x64xbf16>, vector<64x64xf32> -> vector<64x64xf32>
    %40 = arith.addf %34, %39 : vector<64x64xf32>
    %41 = vector.extract_strided_slice %17 {offsets = [0, 0, 0], sizes = [8, 8, 3], strides = [1, 1, 1]} : vector<9x9x3xbf16> to vector<8x8x3xbf16>
    %42 = vector.shape_cast %41 : vector<8x8x3xbf16> to vector<64x3xbf16>
    %c1 = arith.constant 1 : index
    %c0_29 = arith.constant 0 : index
    %c0_30 = arith.constant 0 : index
    %43 = vector.load %arg8[%c1, %c0_29, %c0_30] : memref<9x3x64xbf16, #tpu.memory_space<vmem>>, vector<1x3x64xbf16>
    %44 = vector.shape_cast %43 : vector<1x3x64xbf16> to vector<3x64xbf16>
    %cst_31 = arith.constant dense<0.000000e+00> : vector<64x64xf32>
    %45 = tpu.matmul %42, %44, %cst_31 {dimension_numbers = #tpu.dot_dimension_numbers<[1], [0], [0], [1], [0, 0, 1, 1], [], []>} : vector<64x3xbf16>, vector<3x64xbf16>, vector<64x64xf32> -> vector<64x64xf32>
    %46 = arith.addf %40, %45 : vector<64x64xf32>
    %47 = vector.extract_strided_slice %9 {offsets = [0, 1, 0], sizes = [8, 8, 3], strides = [1, 1, 1]} : vector<9x9x3xbf16> to vector<8x8x3xbf16>
    %48 = vector.shape_cast %47 : vector<8x8x3xbf16> to vector<64x3xbf16>
    %c2 = arith.constant 2 : index
    %c0_32 = arith.constant 0 : index
    %c0_33 = arith.constant 0 : index
    %49 = vector.load %arg8[%c2, %c0_32, %c0_33] : memref<9x3x64xbf16, #tpu.memory_space<vmem>>, vector<1x3x64xbf16>
    %50 = vector.shape_cast %49 : vector<1x3x64xbf16> to vector<3x64xbf16>
    %cst_34 = arith.constant dense<0.000000e+00> : vector<64x64xf32>
    %51 = tpu.matmul %48, %50, %cst_34 {dimension_numbers = #tpu.dot_dimension_numbers<[1], [0], [0], [1], [0, 0, 1, 1], [], []>} : vector<64x3xbf16>, vector<3x64xbf16>, vector<64x64xf32> -> vector<64x64xf32>
    %52 = arith.addf %46, %51 : vector<64x64xf32>
    %53 = vector.extract_strided_slice %25 {offsets = [0, 0, 0], sizes = [8, 8, 3], strides = [1, 1, 1]} : vector<9x9x3xbf16> to vector<8x8x3xbf16>
    %54 = vector.shape_cast %53 : vector<8x8x3xbf16> to vector<64x3xbf16>
    %c3 = arith.constant 3 : index
    %c0_35 = arith.constant 0 : index
    %c0_36 = arith.constant 0 : index
    %55 = vector.load %arg8[%c3, %c0_35, %c0_36] : memref<9x3x64xbf16, #tpu.memory_space<vmem>>, vector<1x3x64xbf16>
    %56 = vector.shape_cast %55 : vector<1x3x64xbf16> to vector<3x64xbf16>
    %cst_37 = arith.constant dense<0.000000e+00> : vector<64x64xf32>
    %57 = tpu.matmul %54, %56, %cst_37 {dimension_numbers = #tpu.dot_dimension_numbers<[1], [0], [0], [1], [0, 0, 1, 1], [], []>} : vector<64x3xbf16>, vector<3x64xbf16>, vector<64x64xf32> -> vector<64x64xf32>
    %58 = arith.addf %52, %57 : vector<64x64xf32>
    %59 = vector.extract_strided_slice %33 {offsets = [0, 0, 0], sizes = [8, 8, 3], strides = [1, 1, 1]} : vector<9x9x3xbf16> to vector<8x8x3xbf16>
    %60 = vector.shape_cast %59 : vector<8x8x3xbf16> to vector<64x3xbf16>
    %c4 = arith.constant 4 : index
    %c0_38 = arith.constant 0 : index
    %c0_39 = arith.constant 0 : index
    %61 = vector.load %arg8[%c4, %c0_38, %c0_39] : memref<9x3x64xbf16, #tpu.memory_space<vmem>>, vector<1x3x64xbf16>
    %62 = vector.shape_cast %61 : vector<1x3x64xbf16> to vector<3x64xbf16>
    %cst_40 = arith.constant dense<0.000000e+00> : vector<64x64xf32>
    %63 = tpu.matmul %60, %62, %cst_40 {dimension_numbers = #tpu.dot_dimension_numbers<[1], [0], [0], [1], [0, 0, 1, 1], [], []>} : vector<64x3xbf16>, vector<3x64xbf16>, vector<64x64xf32> -> vector<64x64xf32>
    %64 = arith.addf %58, %63 : vector<64x64xf32>
    %65 = vector.extract_strided_slice %25 {offsets = [0, 1, 0], sizes = [8, 8, 3], strides = [1, 1, 1]} : vector<9x9x3xbf16> to vector<8x8x3xbf16>
    %66 = vector.shape_cast %65 : vector<8x8x3xbf16> to vector<64x3xbf16>
    %c5 = arith.constant 5 : index
    %c0_41 = arith.constant 0 : index
    %c0_42 = arith.constant 0 : index
    %67 = vector.load %arg8[%c5, %c0_41, %c0_42] : memref<9x3x64xbf16, #tpu.memory_space<vmem>>, vector<1x3x64xbf16>
    %68 = vector.shape_cast %67 : vector<1x3x64xbf16> to vector<3x64xbf16>
    %cst_43 = arith.constant dense<0.000000e+00> : vector<64x64xf32>
    %69 = tpu.matmul %66, %68, %cst_43 {dimension_numbers = #tpu.dot_dimension_numbers<[1], [0], [0], [1], [0, 0, 1, 1], [], []>} : vector<64x3xbf16>, vector<3x64xbf16>, vector<64x64xf32> -> vector<64x64xf32>
    %70 = arith.addf %64, %69 : vector<64x64xf32>
    %71 = vector.extract_strided_slice %9 {offsets = [1, 0, 0], sizes = [8, 8, 3], strides = [1, 1, 1]} : vector<9x9x3xbf16> to vector<8x8x3xbf16>
    %72 = vector.shape_cast %71 : vector<8x8x3xbf16> to vector<64x3xbf16>
    %c6 = arith.constant 6 : index
    %c0_44 = arith.constant 0 : index
    %c0_45 = arith.constant 0 : index
    %73 = vector.load %arg8[%c6, %c0_44, %c0_45] : memref<9x3x64xbf16, #tpu.memory_space<vmem>>, vector<1x3x64xbf16>
    %74 = vector.shape_cast %73 : vector<1x3x64xbf16> to vector<3x64xbf16>
    %cst_46 = arith.constant dense<0.000000e+00> : vector<64x64xf32>
    %75 = tpu.matmul %72, %74, %cst_46 {dimension_numbers = #tpu.dot_dimension_numbers<[1], [0], [0], [1], [0, 0, 1, 1], [], []>} : vector<64x3xbf16>, vector<3x64xbf16>, vector<64x64xf32> -> vector<64x64xf32>
    %76 = arith.addf %70, %75 : vector<64x64xf32>
    %77 = vector.extract_strided_slice %17 {offsets = [1, 0, 0], sizes = [8, 8, 3], strides = [1, 1, 1]} : vector<9x9x3xbf16> to vector<8x8x3xbf16>
    %78 = vector.shape_cast %77 : vector<8x8x3xbf16> to vector<64x3xbf16>
    %c7 = arith.constant 7 : index
    %c0_47 = arith.constant 0 : index
    %c0_48 = arith.constant 0 : index
    %79 = vector.load %arg8[%c7, %c0_47, %c0_48] : memref<9x3x64xbf16, #tpu.memory_space<vmem>>, vector<1x3x64xbf16>
    %80 = vector.shape_cast %79 : vector<1x3x64xbf16> to vector<3x64xbf16>
    %cst_49 = arith.constant dense<0.000000e+00> : vector<64x64xf32>
    %81 = tpu.matmul %78, %80, %cst_49 {dimension_numbers = #tpu.dot_dimension_numbers<[1], [0], [0], [1], [0, 0, 1, 1], [], []>} : vector<64x3xbf16>, vector<3x64xbf16>, vector<64x64xf32> -> vector<64x64xf32>
    %82 = arith.addf %76, %81 : vector<64x64xf32>
    %83 = vector.extract_strided_slice %9 {offsets = [1, 1, 0], sizes = [8, 8, 3], strides = [1, 1, 1]} : vector<9x9x3xbf16> to vector<8x8x3xbf16>
    %84 = vector.shape_cast %83 : vector<8x8x3xbf16> to vector<64x3xbf16>
    %c8 = arith.constant 8 : index
    %c0_50 = arith.constant 0 : index
    %c0_51 = arith.constant 0 : index
    %85 = vector.load %arg8[%c8, %c0_50, %c0_51] : memref<9x3x64xbf16, #tpu.memory_space<vmem>>, vector<1x3x64xbf16>
    %86 = vector.shape_cast %85 : vector<1x3x64xbf16> to vector<3x64xbf16>
    %cst_52 = arith.constant dense<0.000000e+00> : vector<64x64xf32>
    %87 = tpu.matmul %84, %86, %cst_52 {dimension_numbers = #tpu.dot_dimension_numbers<[1], [0], [0], [1], [0, 0, 1, 1], [], []>} : vector<64x3xbf16>, vector<3x64xbf16>, vector<64x64xf32> -> vector<64x64xf32>
    %88 = arith.addf %82, %87 : vector<64x64xf32>
    %c0_53 = arith.constant 0 : index
    %c0_54 = arith.constant 0 : index
    %89 = vector.load %arg9[%c0_53, %c0_54] : memref<1x64xf32, #tpu.memory_space<vmem>>, vector<1x64xf32>
    %90 = vector.broadcast %89 : vector<1x64xf32> to vector<64x64xf32>
    %91 = arith.addf %88, %90 : vector<64x64xf32>
    %cst_55 = arith.constant 0.000000e+00 : f32
    %92 = vector.broadcast %cst_55 : f32 to vector<64x64xf32>
    %93 = arith.cmpf oge, %91, %92 : vector<64x64xf32>
    %cst_56 = arith.constant 0.00999999977 : f32
    %94 = vector.broadcast %cst_56 : f32 to vector<64x64xf32>
    %95 = arith.mulf %94, %91 : vector<64x64xf32>
    %96 = arith.select %93, %91, %95 : vector<64x64xi1>, vector<64x64xf32>
    %97 = arith.truncf %96 : vector<64x64xf32> to vector<64x64xbf16>
    %98 = vector.shape_cast %97 : vector<64x64xbf16> to vector<1x1x64x64xbf16>
    %c0_57 = arith.constant 0 : index
    %c0_58 = arith.constant 0 : index
    %c0_59 = arith.constant 0 : index
    %c0_60 = arith.constant 0 : index
    %99 = vector.load %arg10[%c0_57, %c0_58, %c0_59, %c0_60] : memref<1x1x64x64xbf16, #tpu.memory_space<vmem>>, vector<1x1x64x64xbf16>
    tpu.vector_store %arg10[%c0_57, %c0_58, %c0_59, %c0_60], %98 {strides = array<i32>} : memref<1x1x64x64xbf16, #tpu.memory_space<vmem>>, vector<1x1x64x64xbf16>,
    %cst_61 = arith.constant dense<0.000000e+00> : vector<64xf32>
    %100 = vector.multi_reduction <add>, %96, %cst_61 [0] : vector<64x64xf32> to vector<64xf32>
    %101 = vector.shape_cast %100 : vector<64xf32> to vector<1x64xf32>
    %102 = arith.mulf %96, %96 : vector<64x64xf32>
    %cst_62 = arith.constant dense<0.000000e+00> : vector<64xf32>
    %103 = vector.multi_reduction <add>, %102, %cst_62 [0] : vector<64x64xf32> to vector<64xf32>
    %104 = vector.shape_cast %103 : vector<64xf32> to vector<1x64xf32>
    %105 = tpu.concatenate %101, %104 in 0 : vector<1x64xf32>, vector<1x64xf32> -> vector<2x64xf32>
    %c0_i32 = arith.constant 0 : i32
    %106 = arith.cmpi eq, %arg1, %c0_i32 : i32
    %107 = arith.extui %106 : i1 to i32
    %c0_i32_63 = arith.constant 0 : i32
    %108 = arith.cmpi ne, %107, %c0_i32_63 : i32
    scf.if %108 {
      %cst_70 = arith.constant 0.000000e+00 : f32
      %113 = vector.broadcast %cst_70 : f32 to vector<1x2x64xf32>
      %c0_71 = arith.constant 0 : index
      %c0_72 = arith.constant 0 : index
      %c0_73 = arith.constant 0 : index
      %114 = vector.load %arg11[%c0_71, %c0_72, %c0_73] : memref<1x2x64xf32, #tpu.memory_space<vmem>>, vector<1x2x64xf32>
      tpu.vector_store %arg11[%c0_71, %c0_72, %c0_73], %113 {strides = array<i32>} : memref<1x2x64xf32, #tpu.memory_space<vmem>>, vector<1x2x64xf32>,
    } else {
    }
    %c0_64 = arith.constant 0 : index
    %c0_65 = arith.constant 0 : index
    %c0_66 = arith.constant 0 : index
    %109 = vector.load %arg11[%c0_64, %c0_65, %c0_66] : memref<1x2x64xf32, #tpu.memory_space<vmem>>, vector<1x2x64xf32>
    %110 = vector.shape_cast %105 : vector<2x64xf32> to vector<1x2x64xf32>
    %111 = arith.addf %109, %110 : vector<1x2x64xf32>
    %c0_67 = arith.constant 0 : index
    %c0_68 = arith.constant 0 : index
    %c0_69 = arith.constant 0 : index
    %112 = vector.load %arg11[%c0_67, %c0_68, %c0_69] : memref<1x2x64xf32, #tpu.memory_space<vmem>>, vector<1x2x64xf32>
    tpu.vector_store %arg11[%c0_67, %c0_68, %c0_69], %111 {strides = array<i32>} : memref<1x2x64xf32, #tpu.memory_space<vmem>>, vector<1x2x64xf32>,
    return
  }
  func.func @transform_0(%arg0: i32, %arg1: i32) -> (i32, i32, i32, i32, i32) {
    %c0_i32 = arith.constant 0 : i32
    %c0_i32_0 = arith.constant 0 : i32
    %c0_i32_1 = arith.constant 0 : i32
    %c0_i32_2 = arith.constant 0 : i32
    return %arg0, %arg1, %c0_i32, %c0_i32_0, %c0_i32_1 : i32, i32, i32, i32, i32
  }
  func.func @transform_1(%arg0: i32, %arg1: i32) -> (i32, i32, i32, i32, i32) {
    %c0_i32 = arith.constant 0 : i32
    %c0_i32_0 = arith.constant 0 : i32
    %c0_i32_1 = arith.constant 0 : i32
    %c0_i32_2 = arith.constant 0 : i32
    return %arg0, %arg1, %c0_i32, %c0_i32_0, %c0_i32_1 : i32, i32, i32, i32, i32
  }
  func.func @transform_2(%arg0: i32, %arg1: i32) -> (i32, i32, i32, i32, i32) {
    %c0_i32 = arith.constant 0 : i32
    %c0_i32_0 = arith.constant 0 : i32
    %c0_i32_1 = arith.constant 0 : i32
    %c0_i32_2 = arith.constant 0 : i32
    return %arg0, %arg1, %c0_i32, %c0_i32_0, %c0_i32_1 : i32, i32, i32, i32, i32
  }
  func.func @transform_3(%arg0: i32, %arg1: i32) -> (i32, i32, i32, i32, i32) {
    %c0_i32 = arith.constant 0 : i32
    %c0_i32_0 = arith.constant 0 : i32
    %c0_i32_1 = arith.constant 0 : i32
    %c0_i32_2 = arith.constant 0 : i32
    return %arg0, %arg1, %c0_i32, %c0_i32_0, %c0_i32_1 : i32, i32, i32, i32, i32
  }
  func.func @transform_4(%arg0: i32, %arg1: i32) -> (i32, i32, i32) {
    %c0_i32 = arith.constant 0 : i32
    %c0_i32_0 = arith.constant 0 : i32
    %c0_i32_1 = arith.constant 0 : i32
    return %arg0, %c0_i32, %c0_i32_0 : i32, i32, i32
  }
  func.func @transform_5(%arg0: i32, %arg1: i32) -> (i32, i32, i32) {
    %c0_i32 = arith.constant 0 : i32
    %c0_i32_0 = arith.constant 0 : i32
    %c0_i32_1 = arith.constant 0 : i32
    return %arg0, %c0_i32, %c0_i32_0 : i32, i32, i32
  }
  func.func @transform_6(%arg0: i32, %arg1: i32) -> (i32, i32, i32) {
    %c0_i32 = arith.constant 0 : i32
    %c0_i32_0 = arith.constant 0 : i32
    %c0_i32_1 = arith.constant 0 : i32
    %c0_i32_2 = arith.constant 0 : i32
    return %c0_i32, %c0_i32_0, %c0_i32_1 : i32, i32, i32
  }
  func.func @transform_7(%arg0: i32, %arg1: i32) -> (i32, i32) {
    %c0_i32 = arith.constant 0 : i32
    %c0_i32_0 = arith.constant 0 : i32
    %c0_i32_1 = arith.constant 0 : i32
    return %c0_i32, %c0_i32_0 : i32, i32
  }
  func.func @transform_8(%arg0: i32, %arg1: i32) -> (i32, i32, i32, i32) {
    %c0_i32 = arith.constant 0 : i32
    %c0_i32_0 = arith.constant 0 : i32
    %c0_i32_1 = arith.constant 0 : i32
    return %arg0, %arg1, %c0_i32, %c0_i32_0 : i32, i32, i32, i32
  }
  func.func @transform_9(%arg0: i32, %arg1: i32) -> (i32, i32, i32) {
    %c0_i32 = arith.constant 0 : i32
    %c0_i32_0 = arith.constant 0 : i32
    %c0_i32_1 = arith.constant 0 : i32
    return %arg0, %c0_i32, %c0_i32_0 : i32, i32, i32
  }
}

module attributes {stable_mosaic.version = 11 : i64} {
  func.func @conv_down_kernel(%arg0: i32, %arg1: i32, %arg2: memref<1x1x5x5x64xbf16, #tpu.memory_space<vmem>>, %arg3: memref<1x1x5x5x64xbf16, #tpu.memory_space<vmem>>, %arg4: memref<1x1x5x5x64xbf16, #tpu.memory_space<vmem>>, %arg5: memref<1x1x5x5x64xbf16, #tpu.memory_space<vmem>>, %arg6: memref<1x1x64xf32, #tpu.memory_space<vmem>>, %arg7: memref<1x1x64xf32, #tpu.memory_space<vmem>>, %arg8: memref<9x64x128xbf16, #tpu.memory_space<vmem>>, %arg9: memref<1x128xf32, #tpu.memory_space<vmem>>, %arg10: memref<1x1x16x128xbf16, #tpu.memory_space<vmem>>, %arg11: memref<1x2x128xf32, #tpu.memory_space<vmem>>) attributes {dimension_semantics = [#tpu.dimension_semantics<parallel>, #tpu.dimension_semantics<arbitrary>], iteration_bounds = array<i64: 2, 1>, scalar_prefetch = 0 : i64, scratch_operands = 0 : i64, tpu.core_type = #tpu.core_type<tc>, window_params = [{transform_indices = @transform_0, window_bounds = array<i64: 1, 1, 5, 5, 64>}, {transform_indices = @transform_1, window_bounds = array<i64: 1, 1, 5, 5, 64>}, {transform_indices = @transform_2, window_bounds = array<i64: 1, 1, 5, 5, 64>}, {transform_indices = @transform_3, window_bounds = array<i64: 1, 1, 5, 5, 64>}, {transform_indices = @transform_4, window_bounds = array<i64: 1, 1, 64>}, {transform_indices = @transform_5, window_bounds = array<i64: 1, 1, 64>}, {pipeline_mode = #tpu.pipeline_mode<synchronous>, transform_indices = @transform_6, window_bounds = array<i64: 9, 64, 128>}, {pipeline_mode = #tpu.pipeline_mode<synchronous>, transform_indices = @transform_7, window_bounds = array<i64: 1, 128>}, {transform_indices = @transform_8, window_bounds = array<i64: 1, 1, 16, 128>}, {transform_indices = @transform_9, window_bounds = array<i64: 1, 2, 128>}]} {
    %c0 = arith.constant 0 : index
    %c0_0 = arith.constant 0 : index
    %c0_1 = arith.constant 0 : index
    %0 = vector.load %arg6[%c0, %c0_0, %c0_1] : memref<1x1x64xf32, #tpu.memory_space<vmem>>, vector<1x1x64xf32>
    %c0_2 = arith.constant 0 : index
    %c0_3 = arith.constant 0 : index
    %c0_4 = arith.constant 0 : index
    %1 = vector.load %arg7[%c0_2, %c0_3, %c0_4] : memref<1x1x64xf32, #tpu.memory_space<vmem>>, vector<1x1x64xf32>
    %c0_5 = arith.constant 0 : index
    %c0_6 = arith.constant 0 : index
    %c0_7 = arith.constant 0 : index
    %c0_8 = arith.constant 0 : index
    %c0_9 = arith.constant 0 : index
    %2 = vector.load %arg2[%c0_5, %c0_6, %c0_7, %c0_8, %c0_9] : memref<1x1x5x5x64xbf16, #tpu.memory_space<vmem>>, vector<1x1x5x5x64xbf16>
    %3 = vector.shape_cast %2 : vector<1x1x5x5x64xbf16> to vector<5x5x64xbf16>
    %4 = arith.extf %3 : vector<5x5x64xbf16> to vector<5x5x64xf32>
    %5 = vector.broadcast %0 : vector<1x1x64xf32> to vector<5x5x64xf32>
    %6 = arith.subf %4, %5 : vector<5x5x64xf32>
    %7 = vector.broadcast %1 : vector<1x1x64xf32> to vector<5x5x64xf32>
    %8 = arith.mulf %6, %7 : vector<5x5x64xf32>
    %9 = arith.truncf %8 : vector<5x5x64xf32> to vector<5x5x64xbf16>
    %c0_10 = arith.constant 0 : index
    %c0_11 = arith.constant 0 : index
    %c0_12 = arith.constant 0 : index
    %c0_13 = arith.constant 0 : index
    %c0_14 = arith.constant 0 : index
    %10 = vector.load %arg3[%c0_10, %c0_11, %c0_12, %c0_13, %c0_14] : memref<1x1x5x5x64xbf16, #tpu.memory_space<vmem>>, vector<1x1x5x5x64xbf16>
    %11 = vector.shape_cast %10 : vector<1x1x5x5x64xbf16> to vector<5x5x64xbf16>
    %12 = arith.extf %11 : vector<5x5x64xbf16> to vector<5x5x64xf32>
    %13 = vector.broadcast %0 : vector<1x1x64xf32> to vector<5x5x64xf32>
    %14 = arith.subf %12, %13 : vector<5x5x64xf32>
    %15 = vector.broadcast %1 : vector<1x1x64xf32> to vector<5x5x64xf32>
    %16 = arith.mulf %14, %15 : vector<5x5x64xf32>
    %17 = arith.truncf %16 : vector<5x5x64xf32> to vector<5x5x64xbf16>
    %c0_15 = arith.constant 0 : index
    %c0_16 = arith.constant 0 : index
    %c0_17 = arith.constant 0 : index
    %c0_18 = arith.constant 0 : index
    %c0_19 = arith.constant 0 : index
    %18 = vector.load %arg4[%c0_15, %c0_16, %c0_17, %c0_18, %c0_19] : memref<1x1x5x5x64xbf16, #tpu.memory_space<vmem>>, vector<1x1x5x5x64xbf16>
    %19 = vector.shape_cast %18 : vector<1x1x5x5x64xbf16> to vector<5x5x64xbf16>
    %20 = arith.extf %19 : vector<5x5x64xbf16> to vector<5x5x64xf32>
    %21 = vector.broadcast %0 : vector<1x1x64xf32> to vector<5x5x64xf32>
    %22 = arith.subf %20, %21 : vector<5x5x64xf32>
    %23 = vector.broadcast %1 : vector<1x1x64xf32> to vector<5x5x64xf32>
    %24 = arith.mulf %22, %23 : vector<5x5x64xf32>
    %25 = arith.truncf %24 : vector<5x5x64xf32> to vector<5x5x64xbf16>
    %c0_20 = arith.constant 0 : index
    %c0_21 = arith.constant 0 : index
    %c0_22 = arith.constant 0 : index
    %c0_23 = arith.constant 0 : index
    %c0_24 = arith.constant 0 : index
    %26 = vector.load %arg5[%c0_20, %c0_21, %c0_22, %c0_23, %c0_24] : memref<1x1x5x5x64xbf16, #tpu.memory_space<vmem>>, vector<1x1x5x5x64xbf16>
    %27 = vector.shape_cast %26 : vector<1x1x5x5x64xbf16> to vector<5x5x64xbf16>
    %28 = arith.extf %27 : vector<5x5x64xbf16> to vector<5x5x64xf32>
    %29 = vector.broadcast %0 : vector<1x1x64xf32> to vector<5x5x64xf32>
    %30 = arith.subf %28, %29 : vector<5x5x64xf32>
    %31 = vector.broadcast %1 : vector<1x1x64xf32> to vector<5x5x64xf32>
    %32 = arith.mulf %30, %31 : vector<5x5x64xf32>
    %33 = arith.truncf %32 : vector<5x5x64xf32> to vector<5x5x64xbf16>
    %cst = arith.constant 0.000000e+00 : f32
    %34 = vector.broadcast %cst : f32 to vector<16x128xf32>
    %35 = vector.extract_strided_slice %9 {offsets = [0, 0, 0], sizes = [4, 4, 64], strides = [1, 1, 1]} : vector<5x5x64xbf16> to vector<4x4x64xbf16>
    %36 = vector.shape_cast %35 : vector<4x4x64xbf16> to vector<16x64xbf16>
    %c0_25 = arith.constant 0 : index
    %c0_26 = arith.constant 0 : index
    %c0_27 = arith.constant 0 : index
    %37 = vector.load %arg8[%c0_25, %c0_26, %c0_27] : memref<9x64x128xbf16, #tpu.memory_space<vmem>>, vector<1x64x128xbf16>
    %38 = vector.shape_cast %37 : vector<1x64x128xbf16> to vector<64x128xbf16>
    %cst_28 = arith.constant dense<0.000000e+00> : vector<16x128xf32>
    %39 = tpu.matmul %36, %38, %cst_28 {dimension_numbers = #tpu.dot_dimension_numbers<[1], [0], [0], [1], [0, 0, 1, 1], [], []>} : vector<16x64xbf16>, vector<64x128xbf16>, vector<16x128xf32> -> vector<16x128xf32>
    %40 = arith.addf %34, %39 : vector<16x128xf32>
    %41 = vector.extract_strided_slice %17 {offsets = [0, 0, 0], sizes = [4, 4, 64], strides = [1, 1, 1]} : vector<5x5x64xbf16> to vector<4x4x64xbf16>
    %42 = vector.shape_cast %41 : vector<4x4x64xbf16> to vector<16x64xbf16>
    %c1 = arith.constant 1 : index
    %c0_29 = arith.constant 0 : index
    %c0_30 = arith.constant 0 : index
    %43 = vector.load %arg8[%c1, %c0_29, %c0_30] : memref<9x64x128xbf16, #tpu.memory_space<vmem>>, vector<1x64x128xbf16>
    %44 = vector.shape_cast %43 : vector<1x64x128xbf16> to vector<64x128xbf16>
    %cst_31 = arith.constant dense<0.000000e+00> : vector<16x128xf32>
    %45 = tpu.matmul %42, %44, %cst_31 {dimension_numbers = #tpu.dot_dimension_numbers<[1], [0], [0], [1], [0, 0, 1, 1], [], []>} : vector<16x64xbf16>, vector<64x128xbf16>, vector<16x128xf32> -> vector<16x128xf32>
    %46 = arith.addf %40, %45 : vector<16x128xf32>
    %47 = vector.extract_strided_slice %9 {offsets = [0, 1, 0], sizes = [4, 4, 64], strides = [1, 1, 1]} : vector<5x5x64xbf16> to vector<4x4x64xbf16>
    %48 = vector.shape_cast %47 : vector<4x4x64xbf16> to vector<16x64xbf16>
    %c2 = arith.constant 2 : index
    %c0_32 = arith.constant 0 : index
    %c0_33 = arith.constant 0 : index
    %49 = vector.load %arg8[%c2, %c0_32, %c0_33] : memref<9x64x128xbf16, #tpu.memory_space<vmem>>, vector<1x64x128xbf16>
    %50 = vector.shape_cast %49 : vector<1x64x128xbf16> to vector<64x128xbf16>
    %cst_34 = arith.constant dense<0.000000e+00> : vector<16x128xf32>
    %51 = tpu.matmul %48, %50, %cst_34 {dimension_numbers = #tpu.dot_dimension_numbers<[1], [0], [0], [1], [0, 0, 1, 1], [], []>} : vector<16x64xbf16>, vector<64x128xbf16>, vector<16x128xf32> -> vector<16x128xf32>
    %52 = arith.addf %46, %51 : vector<16x128xf32>
    %53 = vector.extract_strided_slice %25 {offsets = [0, 0, 0], sizes = [4, 4, 64], strides = [1, 1, 1]} : vector<5x5x64xbf16> to vector<4x4x64xbf16>
    %54 = vector.shape_cast %53 : vector<4x4x64xbf16> to vector<16x64xbf16>
    %c3 = arith.constant 3 : index
    %c0_35 = arith.constant 0 : index
    %c0_36 = arith.constant 0 : index
    %55 = vector.load %arg8[%c3, %c0_35, %c0_36] : memref<9x64x128xbf16, #tpu.memory_space<vmem>>, vector<1x64x128xbf16>
    %56 = vector.shape_cast %55 : vector<1x64x128xbf16> to vector<64x128xbf16>
    %cst_37 = arith.constant dense<0.000000e+00> : vector<16x128xf32>
    %57 = tpu.matmul %54, %56, %cst_37 {dimension_numbers = #tpu.dot_dimension_numbers<[1], [0], [0], [1], [0, 0, 1, 1], [], []>} : vector<16x64xbf16>, vector<64x128xbf16>, vector<16x128xf32> -> vector<16x128xf32>
    %58 = arith.addf %52, %57 : vector<16x128xf32>
    %59 = vector.extract_strided_slice %33 {offsets = [0, 0, 0], sizes = [4, 4, 64], strides = [1, 1, 1]} : vector<5x5x64xbf16> to vector<4x4x64xbf16>
    %60 = vector.shape_cast %59 : vector<4x4x64xbf16> to vector<16x64xbf16>
    %c4 = arith.constant 4 : index
    %c0_38 = arith.constant 0 : index
    %c0_39 = arith.constant 0 : index
    %61 = vector.load %arg8[%c4, %c0_38, %c0_39] : memref<9x64x128xbf16, #tpu.memory_space<vmem>>, vector<1x64x128xbf16>
    %62 = vector.shape_cast %61 : vector<1x64x128xbf16> to vector<64x128xbf16>
    %cst_40 = arith.constant dense<0.000000e+00> : vector<16x128xf32>
    %63 = tpu.matmul %60, %62, %cst_40 {dimension_numbers = #tpu.dot_dimension_numbers<[1], [0], [0], [1], [0, 0, 1, 1], [], []>} : vector<16x64xbf16>, vector<64x128xbf16>, vector<16x128xf32> -> vector<16x128xf32>
    %64 = arith.addf %58, %63 : vector<16x128xf32>
    %65 = vector.extract_strided_slice %25 {offsets = [0, 1, 0], sizes = [4, 4, 64], strides = [1, 1, 1]} : vector<5x5x64xbf16> to vector<4x4x64xbf16>
    %66 = vector.shape_cast %65 : vector<4x4x64xbf16> to vector<16x64xbf16>
    %c5 = arith.constant 5 : index
    %c0_41 = arith.constant 0 : index
    %c0_42 = arith.constant 0 : index
    %67 = vector.load %arg8[%c5, %c0_41, %c0_42] : memref<9x64x128xbf16, #tpu.memory_space<vmem>>, vector<1x64x128xbf16>
    %68 = vector.shape_cast %67 : vector<1x64x128xbf16> to vector<64x128xbf16>
    %cst_43 = arith.constant dense<0.000000e+00> : vector<16x128xf32>
    %69 = tpu.matmul %66, %68, %cst_43 {dimension_numbers = #tpu.dot_dimension_numbers<[1], [0], [0], [1], [0, 0, 1, 1], [], []>} : vector<16x64xbf16>, vector<64x128xbf16>, vector<16x128xf32> -> vector<16x128xf32>
    %70 = arith.addf %64, %69 : vector<16x128xf32>
    %71 = vector.extract_strided_slice %9 {offsets = [1, 0, 0], sizes = [4, 4, 64], strides = [1, 1, 1]} : vector<5x5x64xbf16> to vector<4x4x64xbf16>
    %72 = vector.shape_cast %71 : vector<4x4x64xbf16> to vector<16x64xbf16>
    %c6 = arith.constant 6 : index
    %c0_44 = arith.constant 0 : index
    %c0_45 = arith.constant 0 : index
    %73 = vector.load %arg8[%c6, %c0_44, %c0_45] : memref<9x64x128xbf16, #tpu.memory_space<vmem>>, vector<1x64x128xbf16>
    %74 = vector.shape_cast %73 : vector<1x64x128xbf16> to vector<64x128xbf16>
    %cst_46 = arith.constant dense<0.000000e+00> : vector<16x128xf32>
    %75 = tpu.matmul %72, %74, %cst_46 {dimension_numbers = #tpu.dot_dimension_numbers<[1], [0], [0], [1], [0, 0, 1, 1], [], []>} : vector<16x64xbf16>, vector<64x128xbf16>, vector<16x128xf32> -> vector<16x128xf32>
    %76 = arith.addf %70, %75 : vector<16x128xf32>
    %77 = vector.extract_strided_slice %17 {offsets = [1, 0, 0], sizes = [4, 4, 64], strides = [1, 1, 1]} : vector<5x5x64xbf16> to vector<4x4x64xbf16>
    %78 = vector.shape_cast %77 : vector<4x4x64xbf16> to vector<16x64xbf16>
    %c7 = arith.constant 7 : index
    %c0_47 = arith.constant 0 : index
    %c0_48 = arith.constant 0 : index
    %79 = vector.load %arg8[%c7, %c0_47, %c0_48] : memref<9x64x128xbf16, #tpu.memory_space<vmem>>, vector<1x64x128xbf16>
    %80 = vector.shape_cast %79 : vector<1x64x128xbf16> to vector<64x128xbf16>
    %cst_49 = arith.constant dense<0.000000e+00> : vector<16x128xf32>
    %81 = tpu.matmul %78, %80, %cst_49 {dimension_numbers = #tpu.dot_dimension_numbers<[1], [0], [0], [1], [0, 0, 1, 1], [], []>} : vector<16x64xbf16>, vector<64x128xbf16>, vector<16x128xf32> -> vector<16x128xf32>
    %82 = arith.addf %76, %81 : vector<16x128xf32>
    %83 = vector.extract_strided_slice %9 {offsets = [1, 1, 0], sizes = [4, 4, 64], strides = [1, 1, 1]} : vector<5x5x64xbf16> to vector<4x4x64xbf16>
    %84 = vector.shape_cast %83 : vector<4x4x64xbf16> to vector<16x64xbf16>
    %c8 = arith.constant 8 : index
    %c0_50 = arith.constant 0 : index
    %c0_51 = arith.constant 0 : index
    %85 = vector.load %arg8[%c8, %c0_50, %c0_51] : memref<9x64x128xbf16, #tpu.memory_space<vmem>>, vector<1x64x128xbf16>
    %86 = vector.shape_cast %85 : vector<1x64x128xbf16> to vector<64x128xbf16>
    %cst_52 = arith.constant dense<0.000000e+00> : vector<16x128xf32>
    %87 = tpu.matmul %84, %86, %cst_52 {dimension_numbers = #tpu.dot_dimension_numbers<[1], [0], [0], [1], [0, 0, 1, 1], [], []>} : vector<16x64xbf16>, vector<64x128xbf16>, vector<16x128xf32> -> vector<16x128xf32>
    %88 = arith.addf %82, %87 : vector<16x128xf32>
    %c0_53 = arith.constant 0 : index
    %c0_54 = arith.constant 0 : index
    %89 = vector.load %arg9[%c0_53, %c0_54] : memref<1x128xf32, #tpu.memory_space<vmem>>, vector<1x128xf32>
    %90 = vector.broadcast %89 : vector<1x128xf32> to vector<16x128xf32>
    %91 = arith.addf %88, %90 : vector<16x128xf32>
    %cst_55 = arith.constant 0.000000e+00 : f32
    %92 = vector.broadcast %cst_55 : f32 to vector<16x128xf32>
    %93 = arith.cmpf oge, %91, %92 : vector<16x128xf32>
    %cst_56 = arith.constant 0.00999999977 : f32
    %94 = vector.broadcast %cst_56 : f32 to vector<16x128xf32>
    %95 = arith.mulf %94, %91 : vector<16x128xf32>
    %96 = arith.select %93, %91, %95 : vector<16x128xi1>, vector<16x128xf32>
    %97 = arith.truncf %96 : vector<16x128xf32> to vector<16x128xbf16>
    %98 = vector.shape_cast %97 : vector<16x128xbf16> to vector<1x1x16x128xbf16>
    %c0_57 = arith.constant 0 : index
    %c0_58 = arith.constant 0 : index
    %c0_59 = arith.constant 0 : index
    %c0_60 = arith.constant 0 : index
    %99 = vector.load %arg10[%c0_57, %c0_58, %c0_59, %c0_60] : memref<1x1x16x128xbf16, #tpu.memory_space<vmem>>, vector<1x1x16x128xbf16>
    tpu.vector_store %arg10[%c0_57, %c0_58, %c0_59, %c0_60], %98 {strides = array<i32>} : memref<1x1x16x128xbf16, #tpu.memory_space<vmem>>, vector<1x1x16x128xbf16>,
    %cst_61 = arith.constant dense<0.000000e+00> : vector<128xf32>
    %100 = vector.multi_reduction <add>, %96, %cst_61 [0] : vector<16x128xf32> to vector<128xf32>
    %101 = vector.shape_cast %100 : vector<128xf32> to vector<1x128xf32>
    %102 = arith.mulf %96, %96 : vector<16x128xf32>
    %cst_62 = arith.constant dense<0.000000e+00> : vector<128xf32>
    %103 = vector.multi_reduction <add>, %102, %cst_62 [0] : vector<16x128xf32> to vector<128xf32>
    %104 = vector.shape_cast %103 : vector<128xf32> to vector<1x128xf32>
    %105 = tpu.concatenate %101, %104 in 0 : vector<1x128xf32>, vector<1x128xf32> -> vector<2x128xf32>
    %c0_i32 = arith.constant 0 : i32
    %106 = arith.cmpi eq, %arg1, %c0_i32 : i32
    %107 = arith.extui %106 : i1 to i32
    %c0_i32_63 = arith.constant 0 : i32
    %108 = arith.cmpi ne, %107, %c0_i32_63 : i32
    scf.if %108 {
      %cst_70 = arith.constant 0.000000e+00 : f32
      %113 = vector.broadcast %cst_70 : f32 to vector<1x2x128xf32>
      %c0_71 = arith.constant 0 : index
      %c0_72 = arith.constant 0 : index
      %c0_73 = arith.constant 0 : index
      %114 = vector.load %arg11[%c0_71, %c0_72, %c0_73] : memref<1x2x128xf32, #tpu.memory_space<vmem>>, vector<1x2x128xf32>
      tpu.vector_store %arg11[%c0_71, %c0_72, %c0_73], %113 {strides = array<i32>} : memref<1x2x128xf32, #tpu.memory_space<vmem>>, vector<1x2x128xf32>,
    } else {
    }
    %c0_64 = arith.constant 0 : index
    %c0_65 = arith.constant 0 : index
    %c0_66 = arith.constant 0 : index
    %109 = vector.load %arg11[%c0_64, %c0_65, %c0_66] : memref<1x2x128xf32, #tpu.memory_space<vmem>>, vector<1x2x128xf32>
    %110 = vector.shape_cast %105 : vector<2x128xf32> to vector<1x2x128xf32>
    %111 = arith.addf %109, %110 : vector<1x2x128xf32>
    %c0_67 = arith.constant 0 : index
    %c0_68 = arith.constant 0 : index
    %c0_69 = arith.constant 0 : index
    %112 = vector.load %arg11[%c0_67, %c0_68, %c0_69] : memref<1x2x128xf32, #tpu.memory_space<vmem>>, vector<1x2x128xf32>
    tpu.vector_store %arg11[%c0_67, %c0_68, %c0_69], %111 {strides = array<i32>} : memref<1x2x128xf32, #tpu.memory_space<vmem>>, vector<1x2x128xf32>,
    return
  }
  func.func @transform_0(%arg0: i32, %arg1: i32) -> (i32, i32, i32, i32, i32) {
    %c0_i32 = arith.constant 0 : i32
    %c0_i32_0 = arith.constant 0 : i32
    %c0_i32_1 = arith.constant 0 : i32
    %c0_i32_2 = arith.constant 0 : i32
    return %arg0, %arg1, %c0_i32, %c0_i32_0, %c0_i32_1 : i32, i32, i32, i32, i32
  }
  func.func @transform_1(%arg0: i32, %arg1: i32) -> (i32, i32, i32, i32, i32) {
    %c0_i32 = arith.constant 0 : i32
    %c0_i32_0 = arith.constant 0 : i32
    %c0_i32_1 = arith.constant 0 : i32
    %c0_i32_2 = arith.constant 0 : i32
    return %arg0, %arg1, %c0_i32, %c0_i32_0, %c0_i32_1 : i32, i32, i32, i32, i32
  }
  func.func @transform_2(%arg0: i32, %arg1: i32) -> (i32, i32, i32, i32, i32) {
    %c0_i32 = arith.constant 0 : i32
    %c0_i32_0 = arith.constant 0 : i32
    %c0_i32_1 = arith.constant 0 : i32
    %c0_i32_2 = arith.constant 0 : i32
    return %arg0, %arg1, %c0_i32, %c0_i32_0, %c0_i32_1 : i32, i32, i32, i32, i32
  }
  func.func @transform_3(%arg0: i32, %arg1: i32) -> (i32, i32, i32, i32, i32) {
    %c0_i32 = arith.constant 0 : i32
    %c0_i32_0 = arith.constant 0 : i32
    %c0_i32_1 = arith.constant 0 : i32
    %c0_i32_2 = arith.constant 0 : i32
    return %arg0, %arg1, %c0_i32, %c0_i32_0, %c0_i32_1 : i32, i32, i32, i32, i32
  }
  func.func @transform_4(%arg0: i32, %arg1: i32) -> (i32, i32, i32) {
    %c0_i32 = arith.constant 0 : i32
    %c0_i32_0 = arith.constant 0 : i32
    %c0_i32_1 = arith.constant 0 : i32
    return %arg0, %c0_i32, %c0_i32_0 : i32, i32, i32
  }
  func.func @transform_5(%arg0: i32, %arg1: i32) -> (i32, i32, i32) {
    %c0_i32 = arith.constant 0 : i32
    %c0_i32_0 = arith.constant 0 : i32
    %c0_i32_1 = arith.constant 0 : i32
    return %arg0, %c0_i32, %c0_i32_0 : i32, i32, i32
  }
  func.func @transform_6(%arg0: i32, %arg1: i32) -> (i32, i32, i32) {
    %c0_i32 = arith.constant 0 : i32
    %c0_i32_0 = arith.constant 0 : i32
    %c0_i32_1 = arith.constant 0 : i32
    %c0_i32_2 = arith.constant 0 : i32
    return %c0_i32, %c0_i32_0, %c0_i32_1 : i32, i32, i32
  }
  func.func @transform_7(%arg0: i32, %arg1: i32) -> (i32, i32) {
    %c0_i32 = arith.constant 0 : i32
    %c0_i32_0 = arith.constant 0 : i32
    %c0_i32_1 = arith.constant 0 : i32
    return %c0_i32, %c0_i32_0 : i32, i32
  }
  func.func @transform_8(%arg0: i32, %arg1: i32) -> (i32, i32, i32, i32) {
    %c0_i32 = arith.constant 0 : i32
    %c0_i32_0 = arith.constant 0 : i32
    %c0_i32_1 = arith.constant 0 : i32
    return %arg0, %arg1, %c0_i32, %c0_i32_0 : i32, i32, i32, i32
  }
  func.func @transform_9(%arg0: i32, %arg1: i32) -> (i32, i32, i32) {
    %c0_i32 = arith.constant 0 : i32
    %c0_i32_0 = arith.constant 0 : i32
    %c0_i32_1 = arith.constant 0 : i32
    return %arg0, %c0_i32, %c0_i32_0 : i32, i32, i32
  }
}

module attributes {stable_mosaic.version = 11 : i64} {
  func.func @last_kernel(%arg0: i32, %arg1: i32, %arg2: memref<1x1x4x4x128xbf16, #tpu.memory_space<vmem>>, %arg3: memref<1x1x128xf32, #tpu.memory_space<vmem>>, %arg4: memref<1x1x128xf32, #tpu.memory_space<vmem>>, %arg5: memref<9x128x128xbf16, #tpu.memory_space<vmem>>, %arg6: memref<1x128xf32, #tpu.memory_space<vmem>>, %arg7: memref<1x1x4x128xf32, #tpu.memory_space<vmem>>) attributes {dimension_semantics = [#tpu.dimension_semantics<parallel>, #tpu.dimension_semantics<parallel>], iteration_bounds = array<i64: 2, 1>, scalar_prefetch = 0 : i64, scratch_operands = 0 : i64, tpu.core_type = #tpu.core_type<tc>, window_params = [{transform_indices = @transform_0, window_bounds = array<i64: 1, 1, 4, 4, 128>}, {transform_indices = @transform_1, window_bounds = array<i64: 1, 1, 128>}, {transform_indices = @transform_2, window_bounds = array<i64: 1, 1, 128>}, {pipeline_mode = #tpu.pipeline_mode<synchronous>, transform_indices = @transform_3, window_bounds = array<i64: 9, 128, 128>}, {pipeline_mode = #tpu.pipeline_mode<synchronous>, transform_indices = @transform_4, window_bounds = array<i64: 1, 128>}, {transform_indices = @transform_5, window_bounds = array<i64: 1, 1, 4, 128>}]} {
    %c0 = arith.constant 0 : index
    %c0_0 = arith.constant 0 : index
    %c0_1 = arith.constant 0 : index
    %0 = vector.load %arg3[%c0, %c0_0, %c0_1] : memref<1x1x128xf32, #tpu.memory_space<vmem>>, vector<1x1x128xf32>
    %c0_2 = arith.constant 0 : index
    %c0_3 = arith.constant 0 : index
    %c0_4 = arith.constant 0 : index
    %1 = vector.load %arg4[%c0_2, %c0_3, %c0_4] : memref<1x1x128xf32, #tpu.memory_space<vmem>>, vector<1x1x128xf32>
    %c0_5 = arith.constant 0 : index
    %c0_6 = arith.constant 0 : index
    %c0_7 = arith.constant 0 : index
    %c0_8 = arith.constant 0 : index
    %c0_9 = arith.constant 0 : index
    %2 = vector.load %arg2[%c0_5, %c0_6, %c0_7, %c0_8, %c0_9] : memref<1x1x4x4x128xbf16, #tpu.memory_space<vmem>>, vector<1x1x4x4x128xbf16>
    %3 = vector.shape_cast %2 : vector<1x1x4x4x128xbf16> to vector<4x4x128xbf16>
    %4 = arith.extf %3 : vector<4x4x128xbf16> to vector<4x4x128xf32>
    %5 = vector.broadcast %0 : vector<1x1x128xf32> to vector<4x4x128xf32>
    %6 = arith.subf %4, %5 : vector<4x4x128xf32>
    %7 = vector.broadcast %1 : vector<1x1x128xf32> to vector<4x4x128xf32>
    %8 = arith.mulf %6, %7 : vector<4x4x128xf32>
    %9 = arith.truncf %8 : vector<4x4x128xf32> to vector<4x4x128xbf16>
    %cst = arith.constant 0.000000e+00 : f32
    %10 = vector.broadcast %cst : f32 to vector<4x128xf32>
    %11 = vector.extract_strided_slice %9 {offsets = [0, 0, 0], sizes = [2, 2, 128], strides = [1, 1, 1]} : vector<4x4x128xbf16> to vector<2x2x128xbf16>
    %12 = vector.shape_cast %11 : vector<2x2x128xbf16> to vector<4x128xbf16>
    %c0_10 = arith.constant 0 : index
    %c0_11 = arith.constant 0 : index
    %c0_12 = arith.constant 0 : index
    %13 = vector.load %arg5[%c0_10, %c0_11, %c0_12] : memref<9x128x128xbf16, #tpu.memory_space<vmem>>, vector<1x128x128xbf16>
    %14 = vector.shape_cast %13 : vector<1x128x128xbf16> to vector<128x128xbf16>
    %cst_13 = arith.constant dense<0.000000e+00> : vector<4x128xf32>
    %15 = tpu.matmul %12, %14, %cst_13 {dimension_numbers = #tpu.dot_dimension_numbers<[1], [0], [0], [1], [0, 0, 1, 1], [], []>} : vector<4x128xbf16>, vector<128x128xbf16>, vector<4x128xf32> -> vector<4x128xf32>
    %16 = arith.addf %10, %15 : vector<4x128xf32>
    %17 = vector.extract_strided_slice %9 {offsets = [0, 1, 0], sizes = [2, 2, 128], strides = [1, 1, 1]} : vector<4x4x128xbf16> to vector<2x2x128xbf16>
    %18 = vector.shape_cast %17 : vector<2x2x128xbf16> to vector<4x128xbf16>
    %c1 = arith.constant 1 : index
    %c0_14 = arith.constant 0 : index
    %c0_15 = arith.constant 0 : index
    %19 = vector.load %arg5[%c1, %c0_14, %c0_15] : memref<9x128x128xbf16, #tpu.memory_space<vmem>>, vector<1x128x128xbf16>
    %20 = vector.shape_cast %19 : vector<1x128x128xbf16> to vector<128x128xbf16>
    %cst_16 = arith.constant dense<0.000000e+00> : vector<4x128xf32>
    %21 = tpu.matmul %18, %20, %cst_16 {dimension_numbers = #tpu.dot_dimension_numbers<[1], [0], [0], [1], [0, 0, 1, 1], [], []>} : vector<4x128xbf16>, vector<128x128xbf16>, vector<4x128xf32> -> vector<4x128xf32>
    %22 = arith.addf %16, %21 : vector<4x128xf32>
    %23 = vector.extract_strided_slice %9 {offsets = [0, 2, 0], sizes = [2, 2, 128], strides = [1, 1, 1]} : vector<4x4x128xbf16> to vector<2x2x128xbf16>
    %24 = vector.shape_cast %23 : vector<2x2x128xbf16> to vector<4x128xbf16>
    %c2 = arith.constant 2 : index
    %c0_17 = arith.constant 0 : index
    %c0_18 = arith.constant 0 : index
    %25 = vector.load %arg5[%c2, %c0_17, %c0_18] : memref<9x128x128xbf16, #tpu.memory_space<vmem>>, vector<1x128x128xbf16>
    %26 = vector.shape_cast %25 : vector<1x128x128xbf16> to vector<128x128xbf16>
    %cst_19 = arith.constant dense<0.000000e+00> : vector<4x128xf32>
    %27 = tpu.matmul %24, %26, %cst_19 {dimension_numbers = #tpu.dot_dimension_numbers<[1], [0], [0], [1], [0, 0, 1, 1], [], []>} : vector<4x128xbf16>, vector<128x128xbf16>, vector<4x128xf32> -> vector<4x128xf32>
    %28 = arith.addf %22, %27 : vector<4x128xf32>
    %29 = vector.extract_strided_slice %9 {offsets = [1, 0, 0], sizes = [2, 2, 128], strides = [1, 1, 1]} : vector<4x4x128xbf16> to vector<2x2x128xbf16>
    %30 = vector.shape_cast %29 : vector<2x2x128xbf16> to vector<4x128xbf16>
    %c3 = arith.constant 3 : index
    %c0_20 = arith.constant 0 : index
    %c0_21 = arith.constant 0 : index
    %31 = vector.load %arg5[%c3, %c0_20, %c0_21] : memref<9x128x128xbf16, #tpu.memory_space<vmem>>, vector<1x128x128xbf16>
    %32 = vector.shape_cast %31 : vector<1x128x128xbf16> to vector<128x128xbf16>
    %cst_22 = arith.constant dense<0.000000e+00> : vector<4x128xf32>
    %33 = tpu.matmul %30, %32, %cst_22 {dimension_numbers = #tpu.dot_dimension_numbers<[1], [0], [0], [1], [0, 0, 1, 1], [], []>} : vector<4x128xbf16>, vector<128x128xbf16>, vector<4x128xf32> -> vector<4x128xf32>
    %34 = arith.addf %28, %33 : vector<4x128xf32>
    %35 = vector.extract_strided_slice %9 {offsets = [1, 1, 0], sizes = [2, 2, 128], strides = [1, 1, 1]} : vector<4x4x128xbf16> to vector<2x2x128xbf16>
    %36 = vector.shape_cast %35 : vector<2x2x128xbf16> to vector<4x128xbf16>
    %c4 = arith.constant 4 : index
    %c0_23 = arith.constant 0 : index
    %c0_24 = arith.constant 0 : index
    %37 = vector.load %arg5[%c4, %c0_23, %c0_24] : memref<9x128x128xbf16, #tpu.memory_space<vmem>>, vector<1x128x128xbf16>
    %38 = vector.shape_cast %37 : vector<1x128x128xbf16> to vector<128x128xbf16>
    %cst_25 = arith.constant dense<0.000000e+00> : vector<4x128xf32>
    %39 = tpu.matmul %36, %38, %cst_25 {dimension_numbers = #tpu.dot_dimension_numbers<[1], [0], [0], [1], [0, 0, 1, 1], [], []>} : vector<4x128xbf16>, vector<128x128xbf16>, vector<4x128xf32> -> vector<4x128xf32>
    %40 = arith.addf %34, %39 : vector<4x128xf32>
    %41 = vector.extract_strided_slice %9 {offsets = [1, 2, 0], sizes = [2, 2, 128], strides = [1, 1, 1]} : vector<4x4x128xbf16> to vector<2x2x128xbf16>
    %42 = vector.shape_cast %41 : vector<2x2x128xbf16> to vector<4x128xbf16>
    %c5 = arith.constant 5 : index
    %c0_26 = arith.constant 0 : index
    %c0_27 = arith.constant 0 : index
    %43 = vector.load %arg5[%c5, %c0_26, %c0_27] : memref<9x128x128xbf16, #tpu.memory_space<vmem>>, vector<1x128x128xbf16>
    %44 = vector.shape_cast %43 : vector<1x128x128xbf16> to vector<128x128xbf16>
    %cst_28 = arith.constant dense<0.000000e+00> : vector<4x128xf32>
    %45 = tpu.matmul %42, %44, %cst_28 {dimension_numbers = #tpu.dot_dimension_numbers<[1], [0], [0], [1], [0, 0, 1, 1], [], []>} : vector<4x128xbf16>, vector<128x128xbf16>, vector<4x128xf32> -> vector<4x128xf32>
    %46 = arith.addf %40, %45 : vector<4x128xf32>
    %47 = vector.extract_strided_slice %9 {offsets = [2, 0, 0], sizes = [2, 2, 128], strides = [1, 1, 1]} : vector<4x4x128xbf16> to vector<2x2x128xbf16>
    %48 = vector.shape_cast %47 : vector<2x2x128xbf16> to vector<4x128xbf16>
    %c6 = arith.constant 6 : index
    %c0_29 = arith.constant 0 : index
    %c0_30 = arith.constant 0 : index
    %49 = vector.load %arg5[%c6, %c0_29, %c0_30] : memref<9x128x128xbf16, #tpu.memory_space<vmem>>, vector<1x128x128xbf16>
    %50 = vector.shape_cast %49 : vector<1x128x128xbf16> to vector<128x128xbf16>
    %cst_31 = arith.constant dense<0.000000e+00> : vector<4x128xf32>
    %51 = tpu.matmul %48, %50, %cst_31 {dimension_numbers = #tpu.dot_dimension_numbers<[1], [0], [0], [1], [0, 0, 1, 1], [], []>} : vector<4x128xbf16>, vector<128x128xbf16>, vector<4x128xf32> -> vector<4x128xf32>
    %52 = arith.addf %46, %51 : vector<4x128xf32>
    %53 = vector.extract_strided_slice %9 {offsets = [2, 1, 0], sizes = [2, 2, 128], strides = [1, 1, 1]} : vector<4x4x128xbf16> to vector<2x2x128xbf16>
    %54 = vector.shape_cast %53 : vector<2x2x128xbf16> to vector<4x128xbf16>
    %c7 = arith.constant 7 : index
    %c0_32 = arith.constant 0 : index
    %c0_33 = arith.constant 0 : index
    %55 = vector.load %arg5[%c7, %c0_32, %c0_33] : memref<9x128x128xbf16, #tpu.memory_space<vmem>>, vector<1x128x128xbf16>
    %56 = vector.shape_cast %55 : vector<1x128x128xbf16> to vector<128x128xbf16>
    %cst_34 = arith.constant dense<0.000000e+00> : vector<4x128xf32>
    %57 = tpu.matmul %54, %56, %cst_34 {dimension_numbers = #tpu.dot_dimension_numbers<[1], [0], [0], [1], [0, 0, 1, 1], [], []>} : vector<4x128xbf16>, vector<128x128xbf16>, vector<4x128xf32> -> vector<4x128xf32>
    %58 = arith.addf %52, %57 : vector<4x128xf32>
    %59 = vector.extract_strided_slice %9 {offsets = [2, 2, 0], sizes = [2, 2, 128], strides = [1, 1, 1]} : vector<4x4x128xbf16> to vector<2x2x128xbf16>
    %60 = vector.shape_cast %59 : vector<2x2x128xbf16> to vector<4x128xbf16>
    %c8 = arith.constant 8 : index
    %c0_35 = arith.constant 0 : index
    %c0_36 = arith.constant 0 : index
    %61 = vector.load %arg5[%c8, %c0_35, %c0_36] : memref<9x128x128xbf16, #tpu.memory_space<vmem>>, vector<1x128x128xbf16>
    %62 = vector.shape_cast %61 : vector<1x128x128xbf16> to vector<128x128xbf16>
    %cst_37 = arith.constant dense<0.000000e+00> : vector<4x128xf32>
    %63 = tpu.matmul %60, %62, %cst_37 {dimension_numbers = #tpu.dot_dimension_numbers<[1], [0], [0], [1], [0, 0, 1, 1], [], []>} : vector<4x128xbf16>, vector<128x128xbf16>, vector<4x128xf32> -> vector<4x128xf32>
    %64 = arith.addf %58, %63 : vector<4x128xf32>
    %c0_38 = arith.constant 0 : index
    %c0_39 = arith.constant 0 : index
    %65 = vector.load %arg6[%c0_38, %c0_39] : memref<1x128xf32, #tpu.memory_space<vmem>>, vector<1x128xf32>
    %66 = vector.broadcast %65 : vector<1x128xf32> to vector<4x128xf32>
    %67 = arith.addf %64, %66 : vector<4x128xf32>
    %cst_40 = arith.constant 0.000000e+00 : f32
    %68 = vector.broadcast %cst_40 : f32 to vector<4x128xf32>
    %69 = arith.subf %68, %67 : vector<4x128xf32>
    %70 = math.exp %69 : vector<4x128xf32>
    %cst_41 = arith.constant 1.000000e+00 : f32
    %71 = vector.broadcast %cst_41 : f32 to vector<4x128xf32>
    %72 = arith.addf %71, %70 : vector<4x128xf32>
    %cst_42 = arith.constant 1.000000e+00 : f32
    %73 = vector.broadcast %cst_42 : f32 to vector<4x128xf32>
    %74 = arith.divf %73, %72 : vector<4x128xf32>
    %75 = vector.shape_cast %74 : vector<4x128xf32> to vector<1x1x4x128xf32>
    %c0_43 = arith.constant 0 : index
    %c0_44 = arith.constant 0 : index
    %c0_45 = arith.constant 0 : index
    %c0_46 = arith.constant 0 : index
    %76 = vector.load %arg7[%c0_43, %c0_44, %c0_45, %c0_46] : memref<1x1x4x128xf32, #tpu.memory_space<vmem>>, vector<1x1x4x128xf32>
    tpu.vector_store %arg7[%c0_43, %c0_44, %c0_45, %c0_46], %75 {strides = array<i32>} : memref<1x1x4x128xf32, #tpu.memory_space<vmem>>, vector<1x1x4x128xf32>,
    return
  }
  func.func @transform_0(%arg0: i32, %arg1: i32) -> (i32, i32, i32, i32, i32) {
    %c0_i32 = arith.constant 0 : i32
    %c0_i32_0 = arith.constant 0 : i32
    %c0_i32_1 = arith.constant 0 : i32
    %c0_i32_2 = arith.constant 0 : i32
    return %arg0, %arg1, %c0_i32, %c0_i32_0, %c0_i32_1 : i32, i32, i32, i32, i32
  }
  func.func @transform_1(%arg0: i32, %arg1: i32) -> (i32, i32, i32) {
    %c0_i32 = arith.constant 0 : i32
    %c0_i32_0 = arith.constant 0 : i32
    %c0_i32_1 = arith.constant 0 : i32
    return %arg0, %c0_i32, %c0_i32_0 : i32, i32, i32
  }
  func.func @transform_2(%arg0: i32, %arg1: i32) -> (i32, i32, i32) {
    %c0_i32 = arith.constant 0 : i32
    %c0_i32_0 = arith.constant 0 : i32
    %c0_i32_1 = arith.constant 0 : i32
    return %arg0, %c0_i32, %c0_i32_0 : i32, i32, i32
  }
  func.func @transform_3(%arg0: i32, %arg1: i32) -> (i32, i32, i32) {
    %c0_i32 = arith.constant 0 : i32
    %c0_i32_0 = arith.constant 0 : i32
    %c0_i32_1 = arith.constant 0 : i32
    %c0_i32_2 = arith.constant 0 : i32
    return %c0_i32, %c0_i32_0, %c0_i32_1 : i32, i32, i32
  }
  func.func @transform_4(%arg0: i32, %arg1: i32) -> (i32, i32) {
    %c0_i32 = arith.constant 0 : i32
    %c0_i32_0 = arith.constant 0 : i32
    %c0_i32_1 = arith.constant 0 : i32
    return %c0_i32, %c0_i32_0 : i32, i32
  }
  func.func @transform_5(%arg0: i32, %arg1: i32) -> (i32, i32, i32, i32) {
    %c0_i32 = arith.constant 0 : i32
    %c0_i32_0 = arith.constant 0 : i32
    %c0_i32_1 = arith.constant 0 : i32
    return %arg0, %arg1, %c0_i32, %c0_i32_0 : i32, i32, i32, i32
  }
}

</mosaic_0001>

<bundles_post_ra>
// kernel: squeeze.1
= control target key start
LH: loop header
LB: loop body
LE: loop exit
PB: predicated region body
PF: predicated region fallthrough
CT: control target
= control target key end

     0   :  { %s90_s0 = inlined_call_operand.vmem [shape: f32[2,4], index: 0, kind: input, shape index: {}]   ;;  %s91_s1 = inlined_call_operand.hbm [shape: f32[2,1,2,2], index: 1, kind: output, shape index: {}]  }
   0x1   :  { %v5_v0 = vld [vmem:[%s90_s0] sm:$0x3] }
   0x2   :  { %2 = vsyncpa [#allocation1], 0  ;;  %6 = vst [vmem:[#allocation3] sm:$0x3] %v5_v0  ;;  %vm8_vm0 = vcmask 15360   ;;  %s63_s0 = smov 126  }
   0x3   :  { %s64_s8 = smov [#allocation0]  }
   0x4   :  { %s31_s9 = sshll.u32 %s64_s8, 4  ;;  %s32_s9 = int_to_ptr.vmem [resolvable:$true] %s31_s9 }
   0x5   :  { %s39_s10 = scalar_lea.vmem %s32_s9, 64  ;;  %p44_p1 = scmp.lt.s32.totalorder %s32_s9, %s32_s9 }
   0x6   :  { %p40_p0 = scmp.ne.s32.totalorder %s32_s9, %s39_s10  ;;  %p45_p2 = scmp.lt.s32.totalorder %s39_s10, %s39_s10 }
   0x8   :  { %p46_p3 = por %p45_p2, %p44_p1 }
   0x9   :  { %v10_v1 = vld [vmem:[#allocation3] sm:$0x3]  }
   0xa   :  { %v7_v2 = vld [vmem:[#allocation3] sm:$0x3]   ;;  %11 = vrot.lane.b32.xlu0 %v10_v1, %s63_s0  ;;  %p47_p4 = pnand %p46_p3, %p40_p0 }
   0xb   :  { %9 = vst.msk [vmem:[#allocation2] ss:$8 sm:$0x3] %vm8_vm0, %v7_v2  }
  0x7c   :  { %v12_v3 = vpop.permute.xlu0 %11  }
  0x7d   :  { %15 = vst.msk [vmem:[#allocation2 + $0x1] ss:$8 sm:$0x3] %vm8_vm0, %v12_v3  }
  0x84   :  { %v19_v4 = vld [vmem:[#allocation2] sm:$0x3]  ;;  %v23_v5 = vld [vmem:[#allocation2 + $0x8] sm:$0x3] }
  0x85   :  { %21 = vst [vmem:[#allocation0] sm:$0x3] %v19_v4  ;;  %26 = vst [vmem:[#allocation0 + $0x2] sm:$0x3] %v23_v5 }
  0x86   :  { %50 = shalt.err (!%p47_p4)
}
  0x87   :  { %s51_s13 = scalar_lea.hbm %s91_s1, 64 }
  0x88   :  { %p52_p5 = scmp.ne.s32.totalorder %s91_s1, %s51_s13  ;;  %p55_p6 = scmp.lt.u32.totalorder %s51_s13, %s91_s1 }
  0x8a   :  { %p57_p7 = pnand %p55_p6, %p52_p5 }
  0x8c   :  { %60 = shalt.err (!%p57_p7)
}
  0x8d   :  { %34 = dma.vmem_to_hbm [thread:$0]  %s32_s9, 64, %s91_s1, [#allocation1]  }
  0x8e   :  { %61 = dma.done.wait [#allocation1], 64  }
  0x8f   :  { %62 = vsyncadd [#allocation1], 4294967232 }
  0x90   :  { %36 = vsyncpa [#allocation1], 1 }

// kernel: discriminator_forward.3
= control target key start
LH: loop header
LB: loop body
LE: loop exit
PB: predicated region body
PF: predicated region fallthrough
CT: control target
= control target key end

     0   :  { %s2898_s30 = smov 0   ;;  %s2900_s10 = smov 0   ;;  %s3470_s0 = inlined_call_operand.vmem [shape: bf16[2,1,9,9,3], index: 0, kind: input, shape index: {}]   ;;  %s3471_s1 = inlined_call_operand.vmem [shape: bf16[2,1,9,9,3], index: 1, kind: input, shape index: {}]   ;;  %s3472_s2 = inlined_call_operand.vmem [shape: bf16[2,1,9,9,3], index: 2, kind: input, shape index: {}]   ;;  %s3473_s3 = inlined_call_operand.vmem [shape: bf16[2,1,9,9,3], index: 3, kind: input, shape index: {}]   ;;  %s3474_s4 = inlined_call_operand.vmem [shape: f32[2,1,3], index: 4, kind: input, shape index: {}]   ;;  %s3475_s5 = inlined_call_operand.vmem [shape: f32[2,1,3], index: 5, kind: input, shape index: {}]   ;;  %s3476_s6 = inlined_call_operand.vmem [shape: bf16[9,3,64], index: 6, kind: input, shape index: {}]   ;;  %s3477_s7 = inlined_call_operand.vmem [shape: f32[1,64], index: 7, kind: input, shape index: {}]   ;;  %s3478_s8 = inlined_call_operand.vmem [shape: bf16[2,1,64,64], index: 8, kind: output, shape index: {0}]   ;;  %s3479_s9 = inlined_call_operand.vmem [shape: f32[2,2,64], index: 9, kind: output, shape index: {1}]  }
   0x1   :  { %s2902_s11 = smov 0  }
   0x2 LB: > { %s32_s12 = sadd.s32 1, %s2840_s10  ;;  %p2392_p0 = scmp.ge.s32.totalorder %s2844_s11, 1  ;;  %s2844_s11 = sphi %s2902_s11, %s20_s11   ;;  %s2840_s10 = sphi %s2900_s10, %s3483_s10   ;;  %s2836_s30 = sphi %s2898_s30, %s3482_s30  }
   0x3   : > { %p34_p1 = scmp.ge.s32.totalorder %s32_s12, 2  ;;  %p374_p2 = scmp.lt.s32.totalorder %s2844_s11, 3 }
   0x5   : > { %s3485_s12 = smov (%p34_p1, %s32_s12), 0  ;;  %p375_p3 = pnand %p2392_p0, %p374_p2 }
   0x6   : > { %v2402_v0 = vld [vmem:[%s3476_s6 + $0x2] sm:$0x3] (!%p375_p3)  ;;  %vm867_vm0 = vcmask (!%p375_p3), 1040384   ;;  %vm868_vm1 = vcmask (!%p375_p3), 1041408   ;;  %p455_p4 = scmp.lt.s32.totalorder (!%p375_p3), %s2836_s30, 1  ;;  %v2846_v1 = vmov (!%p375_p3), 65535  }
   0x7   : > { %378 = sbr.rel (%p375_p3) target bundleno = 385 (0x181), region = 52  ;;  %v869_v2 = vsel (!%p375_p3), %vm867_vm0, 4294967295, %v2846_v1  ;;  %v2453_v3 = vld [vmem:[%s3476_s6 + $0x8] sm:$0x3] (!%p375_p3)  ;;  %v831_v4 = vld [vmem:[%s3476_s6] sm:$0x3] (!%p375_p3) }
   0x8   : > { %v2926_v5 = vsel (!%p375_p3), %vm868_vm1, %v869_v2, 0  ;;  %v2478_v6 = vld [vmem:[%s3476_s6 + $0xa] sm:$0x3] (!%p375_p3)  ;;  %v2487_v11 = vld [vmem:[%s3476_s6 + $0xc] sm:$0x3] (!%p375_p3)  ;;  %vm854_vm2 = vcmask (!%p375_p3), 23552  }
   0x9   : > { %v872_v7 = vand.u32 (!%p375_p3), %v2402_v0, %v2926_v5  ;;  %v2935_v8 = vand.u32 (!%p375_p3), %v2453_v3, %v2926_v5  ;;  %v2938_v9 = vand.u32 (!%p375_p3), %v2926_v5, %v831_v4  ;;  %v2941_v10 = vand.u32 (!%p375_p3), %v2478_v6, %v2926_v5  ;;  %v2435_v12 = vld [vmem:[%s3476_s6 + $0x4] sm:$0x3] (!%p375_p3)  ;;  %v2496_v13 = vld [vmem:[%s3476_s6 + $0xe] sm:$0x3] (!%p375_p3) }
   0xa   : > { %v2984_v17 = vand.u32 (!%p375_p3), %v2487_v11, %v2926_v5  ;;  %v2987_v18 = vand.u32 (!%p375_p3), %v2435_v12, %v2926_v5  ;;  %v2990_v19 = vand.u32 (!%p375_p3), %v2496_v13, %v2926_v5  ;;  %vm1063_vm3 = vsmask.f32 (!%p375_p3), 3328 }
   0xb   : > { %2639 = vmatprep.subr.bf16.mxu1 (!%p375_p3), %v872_v7  ;;  %2679 = vmatprep.subr.bf16.mxu0 (!%p375_p3), %v2935_v8  ;;  %vm1064_vm4 = vsmask.f32 (!%p375_p3), 7440  ;;  %vm2178_vm6 = vcmask (!%p375_p3), 517120   ;;  %vm2113_vm8 = vcmask (!%p375_p3), 519168   ;;  %vm2122_vm11 = vcmask (!%p375_p3), 523264  }
   0xc   : > { %2640 = vmatpush3.bf16.msra.mxu1 (!%p375_p3), %v872_v7  ;;  %2680 = vmatpush3.bf16.msra.mxu0 (!%p375_p3), %v2935_v8  ;;  %vm3105_vm5 = vmor (!%p375_p3), %vm1063_vm3, %vm1064_vm4 }
   0xd   : > { %2649 = vmatprep.subr.bf16.mxu1 (!%p375_p3), %v2938_v9  ;;  %2689 = vmatprep.subr.bf16.mxu0 (!%p375_p3), %v2941_v10 }
   0xe   : > { %s3487_s30 = smov (!%p455_p4, %s2836_s30), 1 }
   0xf   : > { %s2947_s23 = smul.u32 72, %s3487_s30  ;;  %s493_s26 = scalar_lea.vmem %s3474_s4, %s3487_s30 }
  0x10   : > { %s496_s19 = scalar_lea.vmem %s3475_s5, %s3487_s30  ;;  %v2971_v14 = vld [vmem:[%s493_s26] ss:$0 sm:$0xff] }
  0x11   : > { %s2965_s16 = scalar_lea.vmem %s3471_s1, %s2947_s23  ;;  %s2980_s22 = scalar_lea.vmem %s3473_s3, %s2947_s23  ;;  %v2994_v26 = vld [vmem:[%s496_s19] ss:$0 sm:$0xff] }
  0x12   : > { %v606_v15 = vld [vmem:[%s2965_s16] ss:$8 sps:$4 sm:$0xff]   ;;  %v610_v16 = vld [vmem:[%s2965_s16 + $0x10] ss:$8 sps:$4 sm:$0xff]   ;;  %s3000_s26 = scalar_lea.vmem %s3472_s2, %s2947_s23  ;;  %s3085_s29 = scalar_lea.vmem %s3470_s0, %s2947_s23 }
  0x13   : > { %v624_v20 = vunpack.c.l.bf16 %v606_v15  ;;  %v626_v21 = vunpack.c.h.bf16 %v606_v15  ;;  %v628_v22 = vunpack.c.l.bf16 %v610_v16  ;;  %v759_v23 = vld [vmem:[%s2980_s22] ss:$8 sps:$4 sm:$0xff]   ;;  %v630_v24 = vunpack.c.h.bf16 %v610_v16  ;;  %v763_v25 = vld [vmem:[%s2980_s22 + $0x10] ss:$8 sps:$4 sm:$0xff]   ;;  %v688_v50 = vld [vmem:[%s3000_s26 + $0x4] sm:$0x1] }
  0x14   : > { %v775_v27 = vunpack.c.l.bf16 %v759_v23  ;;  %v777_v28 = vunpack.c.h.bf16 %v759_v23  ;;  %v779_v29 = vunpack.c.l.bf16 %v763_v25  ;;  %v781_v30 = vunpack.c.h.bf16 %v763_v25  ;;  %v614_v39 = vld [vmem:[%s2965_s16 + $0x20] ss:$8 sps:$4 sm:$0xff]   ;;  %v618_v44 = vld [vmem:[%s2965_s16 + $0x30] ss:$8 sps:$4 sm:$0xff]   ;;  %v690_v55 = vld [vmem:[%s3000_s26 + $0xc] sm:$0x1] }
  0x15   : > { %v642_v31 = vsub.f32 %v624_v20, %v2971_v14  ;;  %v644_v32 = vsub.f32 %v626_v21, %v2971_v14  ;;  %v646_v33 = vsub.f32 %v628_v22, %v2971_v14  ;;  %v648_v34 = vsub.f32 %v630_v24, %v2971_v14  ;;  %v687_v49 = vld [vmem:[%s3000_s26] ss:$8 sps:$4 sm:$0xff]   ;;  %v691_v60 = vld [vmem:[%s3000_s26 + $0x10] ss:$8 sps:$4 sm:$0xff]   ;;  %v692_v12 = vld [vmem:[%s3000_s26 + $0x14] sm:$0x1] }
  0x16   : > { %v791_v35 = vsub.f32 %v775_v27, %v2971_v14  ;;  %v793_v36 = vsub.f32 %v777_v28, %v2971_v14  ;;  %v795_v37 = vsub.f32 %v779_v29, %v2971_v14  ;;  %v797_v38 = vsub.f32 %v781_v30, %v2971_v14  ;;  %v694_v24 = vld [vmem:[%s3000_s26 + $0x1c] sm:$0x1] }
  0x17   : > { %v660_v40 = vmul.f32 %v2994_v26, %v642_v31  ;;  %v3013_v41 = vmul.f32 %v2994_v26, %v644_v32  ;;  %v3016_v42 = vmul.f32 %v2994_v26, %v646_v33  ;;  %v3019_v43 = vmul.f32 %v2994_v26, %v648_v34 }
  0x18   : > { %v807_v45 = vmul.f32 %v2994_v26, %v791_v35  ;;  %v809_v46 = vmul.f32 %v2994_v26, %v793_v36  ;;  %v811_v47 = vmul.f32 %v2994_v26, %v795_v37  ;;  %v813_v48 = vmul.f32 %v2994_v26, %v797_v38 }
  0x19   : > { %v2528_v51 = vpack.c.bf16 %v3013_v41, %v660_v40  ;;  %v2580_v52 = vpack.c.bf16 %v3016_v42, %v3013_v41  ;;  %v2529_v53 = vpack.c.bf16 %v3019_v43, %v3016_v42  ;;  %v632_v54 = vunpack.c.l.bf16 %v614_v39 }
  0x1a   : > { %v2556_v56 = vpack.c.bf16 %v809_v46, %v807_v45  ;;  %v2557_v57 = vpack.c.bf16 %v813_v48, %v811_v47  ;;  %v634_v58 = vunpack.c.h.bf16 %v614_v39  ;;  %v636_v59 = vunpack.c.l.bf16 %v618_v44 }
  0x1b   : > { %2641 = vmatprep.mubr.msk.bf16.mxu1 %vm854_vm2, %v2528_v51  ;;  %v650_v61 = vsub.f32 %v632_v54, %v2971_v14  ;;  %v638_v62 = vunpack.c.h.bf16 %v618_v44  ;;  %v703_v63 = vunpack.c.l.bf16 %v687_v49  ;;  %v704_v0 = vunpack.c.l.bf16 %v688_v50  ;;  %v513_v54 = vld [vmem:[%s3085_s29] ss:$8 sps:$4 sm:$0xff]  }
  0x1c   : > { %2681 = vmatprep.mubr.msk.bf16.mxu0 %vm854_vm2, %v2556_v56  ;;  %2642 = vmatmul.mubr.msk.bf16.vlgmr.msra.gmra.mrb[0].mxu1 %vm854_vm2, %v2529_v53  ;;  %v652_v1 = vsub.f32 %v634_v58, %v2971_v14  ;;  %v654_v2 = vsub.f32 %v636_v59, %v2971_v14  ;;  %v705_v3 = vunpack.c.h.bf16 %v687_v49  ;;  %v706_v4 = vunpack.c.l.bf16 %v690_v55 }
  0x1d   : > { %2650 = vmatpush3.bf16.msra.mxu1 %v2938_v9  ;;  %2682 = vmatmul.mubr.msk.bf16.vlgmr.msra.gmra.mrb[0].mxu0 %vm854_vm2, %v2557_v57  ;;  %v3044_v6 = vmul.f32 %v2994_v26, %v650_v61  ;;  %v656_v7 = vsub.f32 %v638_v62, %v2971_v14  ;;  %v719_v11 = vsub.f32 %v703_v63, %v2971_v14  ;;  %v707_v13 = vunpack.c.l.bf16 %v691_v60 }
  0x1e   : > { %2690 = vmatpush3.bf16.msra.mxu0 %v2941_v10  ;;  %v3051_v15 = vmul.f32 %v2994_v26, %v652_v1  ;;  %v3054_v9 = vmul.f32 %v2994_v26, %v654_v2  ;;  %v720_v16 = vsub.f32 %v704_v0, %v2971_v14  ;;  %v721_v20 = vsub.f32 %v705_v3, %v2971_v14 }
  0x1f   : > { %v2581_v21 = vpack.c.bf16 %v3044_v6, %v3019_v43  ;;  %v3061_v22 = vmul.f32 %v2994_v26, %v656_v7  ;;  %v722_v23 = vsub.f32 %v706_v4, %v2971_v14  ;;  %v3065_v10 = vmul.f32 %v2994_v26, %v719_v11  ;;  %2699 = vmatprep.subr.bf16.mxu0 %v2984_v17 }
  0x20   : > { %v2530_v25 = vpack.c.bf16 %v3051_v15, %v3044_v6  ;;  %v736_v27 = vmul.f32 %v2994_v26, %v720_v16  ;;  %v3073_v28 = vmul.f32 %v2994_v26, %v721_v20  ;;  %v708_v29 = vunpack.c.l.bf16 %v692_v12  ;;  %2659 = vmatprep.subr.bf16.mxu1 %v2987_v18 }
  0x21   : > { %v2531_v30 = vpack.c.bf16 %v3061_v22, %v3054_v9  ;;  %v738_v31 = vmul.f32 %v2994_v26, %v722_v23  ;;  %v2560_v32 = vpack.c.bf16 %v3065_v10, %v3065_v10  ;;  %v709_v33 = vunpack.c.h.bf16 %v691_v60 }
  0x22   : > { %2645 = vmatprep.mubr.msk.bf16.mxu1 %vm854_vm2, %v2530_v25  ;;  %v2561_v34 = vpack.c.bf16 %v736_v27, %v736_v27  ;;  %v2562_v35 = vpack.c.bf16 %v3073_v28, %v3073_v28  ;;  %v710_v36 = vunpack.c.l.bf16 %v694_v24  ;;  %v723_v37 = vsub.f32 %v707_v13, %v2971_v14  ;;  %v2444_v24 = vld [vmem:[%s3476_s6 + $0x6] sm:$0x3] }
  0x23   : > { %v2563_v38 = vpack.c.bf16 %v738_v31, %v738_v31  ;;  %v1525_v39 = vshrl.u32 %v2560_v32, 16  ;;  %v1528_v40 = vshll.u32 %v2560_v32, 16  ;;  %v724_v44 = vsub.f32 %v708_v29, %v2971_v14 }
  0x24   : > { %2646 = vmatmul.mubr.msk.bf16.gmra.mrb[4].mxu1 %vm854_vm2, %v2531_v30  ;;  %v1534_v45 = vshll.u32 %v2561_v34, 16  ;;  %v1539_v46 = vshrl.u32 %v2562_v35, 16  ;;  %v1542_v47 = vshll.u32 %v2562_v35, 16  ;;  %v725_v48 = vsub.f32 %v709_v33, %v2971_v14  ;;  %v517_v35 = vld [vmem:[%s3085_s29 + $0x10] ss:$8 sps:$4 sm:$0xff]  }
  0x25   : > { %v1527_v49 = vrot.slane %v1525_v39, 4  ;;  %v1530_v50 = vrot.slane %v1528_v40, 5  ;;  %v1548_v51 = vshll.u32 %v2563_v38, 16  ;;  %v726_v53 = vsub.f32 %v710_v36, %v2971_v14  ;;  %v695_v39 = vld [vmem:[%s3000_s26 + $0x20] ss:$8 sps:$4 sm:$0xff]  }
  0x26   : > { %v1536_v55 = vrot.slane %v1534_v45, 5  ;;  %v1541_v56 = vrot.slane %v1539_v46, 4  ;;  %v1544_v57 = vrot.slane %v1542_v47, 5  ;;  %v3097_v58 = vmul.f32 %v2994_v26, %v723_v37 }
  0x27   : > { %v1531_v59 = vor.u32 %v1530_v50, %v1527_v49  ;;  %v1550_v60 = vrot.slane %v1548_v51, 5  ;;  %v740_v61 = vmul.f32 %v2994_v26, %v724_v44  ;;  %v3101_v62 = vmul.f32 %v2994_v26, %v725_v48  ;;  %v696_v48 = vld [vmem:[%s3000_s26 + $0x24] sm:$0x1] }
  0x28   : > { %v1545_v0 = vor.u32 %v1544_v57, %v1541_v56  ;;  %v742_v1 = vmul.f32 %v2994_v26, %v726_v53  ;;  %v2564_v2 = vpack.c.bf16 %v3097_v58, %v3097_v58  ;;  %v531_v3 = vunpack.c.l.bf16 %v513_v54  ;;  %v698_v57 = vld [vmem:[%s3000_s26 + $0x2c] sm:$0x1] }
  0x29   : > { %v1532_v4 = vrot.slane %v1531_v59, 4  ;;  %v2565_v7 = vpack.c.bf16 %v740_v61, %v740_v61  ;;  %v2566_v11 = vpack.c.bf16 %v3101_v62, %v3101_v62  ;;  %v533_v12 = vunpack.c.h.bf16 %v513_v54 }
  0x2a   : > { %v1546_v13 = vrot.slane %v1545_v0, 4  ;;  %v2567_v16 = vpack.c.bf16 %v742_v1, %v742_v1  ;;  %v1553_v20 = vshrl.u32 %v2564_v2, 16  ;;  %v1556_v23 = vshll.u32 %v2564_v2, 16  ;;  %v2507_v2 = vld [vmem:[%s3476_s6 + $0x10] sm:$0x3] }
  0x2b   : > { %v1537_v25 = vsel %vm3105_vm5, %v1532_v4, %v1536_v55  ;;  %v1562_v27 = vshll.u32 %v2565_v7, 16  ;;  %v1567_v29 = vshrl.u32 %v2566_v11, 16  ;;  %v1570_v30 = vshll.u32 %v2566_v11, 16 }
  0x2c   : > { %v1551_v31 = vsel %vm3105_vm5, %v1546_v13, %v1550_v60  ;;  %v1555_v32 = vrot.slane %v1553_v20, 4  ;;  %v1558_v33 = vrot.slane %v1556_v23, 5  ;;  %v1576_v34 = vshll.u32 %v2567_v16, 16 }
  0x2d   : > { %v2479_v36 = vcombine.low %v1537_v25, %v1551_v31  ;;  %v1569_v37 = vrot.slane %v1567_v29, 4  ;;  %v1572_v38 = vrot.slane %v1570_v30, 5  ;;  %v3124_v40 = vand.u32 %v2444_v24, %v2926_v5  ;;  %v700_v29 = vld [vmem:[%s3000_s26 + $0x34] sm:$0x1] }
  0x2e   : > { %v1559_v44 = vor.u32 %v1558_v33, %v1555_v32  ;;  %v1564_v45 = vrot.slane %v1562_v27, 5  ;;  %v555_v46 = vsub.f32 %v531_v3, %v2971_v14  ;;  %v557_v47 = vsub.f32 %v533_v12, %v2971_v14  ;;  %v699_v27 = vld [vmem:[%s3000_s26 + $0x30] ss:$8 sps:$4 sm:$0xff]  }
  0x2f   : > { %2691 = vmatprep.mubr.msk.bf16.mxu0 %vm854_vm2, %v2479_v36  ;;  %v1573_v49 = vor.u32 %v1572_v38, %v1569_v37  ;;  %v1578_v50 = vrot.slane %v1576_v34, 5  ;;  %v535_v51 = vunpack.c.l.bf16 %v517_v35  ;;  %v537_v53 = vunpack.c.h.bf16 %v517_v35  ;;  %v702_v35 = vld [vmem:[%s3000_s26 + $0x3c] sm:$0x1] }
  0x30   : > { %v1560_v54 = vrot.slane %v1559_v44, 4  ;;  %v579_v55 = vmul.f32 %v2994_v26, %v555_v46  ;;  %v3132_v56 = vmul.f32 %v2994_v26, %v557_v47  ;;  %v711_v59 = vunpack.c.l.bf16 %v695_v39 }
  0x31   : > { %v1574_v60 = vrot.slane %v1573_v49, 4  ;;  %v559_v61 = vsub.f32 %v535_v51, %v2971_v14  ;;  %v561_v0 = vsub.f32 %v537_v53, %v2971_v14  ;;  %v712_v1 = vunpack.c.l.bf16 %v696_v48 }
  0x32   : > { %v1565_v3 = vsel %vm3105_vm5, %v1560_v54, %v1564_v45  ;;  %v2532_v4 = vpack.c.bf16 %v3132_v56, %v579_v55  ;;  %v3143_v7 = vpack.c.bf16 %v579_v55, %v579_v55  ;;  %v713_v11 = vunpack.c.h.bf16 %v695_v39 }
  0x33   : > { %v1579_v12 = vsel %vm3105_vm5, %v1574_v60, %v1578_v50  ;;  %v3148_v13 = vmul.f32 %v2994_v26, %v559_v61  ;;  %v3151_v16 = vmul.f32 %v2994_v26, %v561_v0  ;;  %v714_v20 = vunpack.c.l.bf16 %v698_v57 }
  0x34   : > { %v2480_v23 = vcombine.low %v1565_v3, %v1579_v12  ;;  %2651 = vmatprep.mubr.msk.bf16.mxu1 %vm854_vm2, %v2532_v4  ;;  %v1067_v24 = vshrl.u32 %v3143_v7, 16  ;;  %v727_v25 = vsub.f32 %v711_v59, %v2971_v14  ;;  %v3159_v30 = vand.u32 %v2507_v2, %v2926_v5 }
  0x35   : > { %v3163_v31 = vpack.c.bf16 %v3132_v56, %v3132_v56  ;;  %v1070_v32 = vshll.u32 %v3143_v7, 16  ;;  %v2533_v33 = vpack.c.bf16 %v3151_v16, %v3148_v13  ;;  %v728_v34 = vsub.f32 %v712_v1, %v2971_v14 }
  0x36   : > { %2692 = vmatmul.mubr.msk.bf16.vlgmr.msra.gmra.mrb[0].mxu0 %vm854_vm2, %v2480_v23  ;;  %v3171_v36 = vrot.slane %v1067_v24, 4  ;;  %v3175_v5 = vpack.c.bf16 %v3148_v13, %v3148_v13  ;;  %v729_v37 = vsub.f32 %v713_v11, %v2971_v14  ;;  %v730_v38 = vsub.f32 %v714_v20, %v2971_v14  ;;  %v521_v24 = vld [vmem:[%s3085_s29 + $0x20] ss:$8 sps:$4 sm:$0xff]  }
  0x37   : > { %2700 = vmatpush3.bf16.msra.mxu0 %v2984_v17  ;;  %2652 = vmatmul.mubr.msk.bf16.vlgmr.msra.gmra.mrb[0].mxu1 %vm854_vm2, %v2533_v33  ;;  %v3182_v39 = vmul.f32 %v2994_v26, %v727_v25  ;;  %v744_v44 = vmul.f32 %v2994_v26, %v728_v34  ;;  %v715_v45 = vunpack.c.l.bf16 %v699_v27  ;;  %v716_v46 = vunpack.c.l.bf16 %v700_v29 }
  0x38   : > { %2660 = vmatpush3.bf16.msra.mxu1 %v2987_v18  ;;  %v3187_v47 = vmul.f32 %v2994_v26, %v729_v37  ;;  %v746_v48 = vmul.f32 %v2994_v26, %v730_v38  ;;  %v717_v49 = vunpack.c.h.bf16 %v699_v27  ;;  %v718_v50 = vunpack.c.l.bf16 %v702_v35  ;;  %2709 = vmatprep.subr.bf16.mxu0 %v2990_v19 }
  0x39   : > { %v2568_v17 = vpack.c.bf16 %v3182_v39, %v3182_v39  ;;  %v2569_v51 = vpack.c.bf16 %v744_v44, %v744_v44  ;;  %v731_v53 = vsub.f32 %v715_v45, %v2971_v14  ;;  %v732_v54 = vsub.f32 %v716_v46, %v2971_v14  ;;  %2669 = vmatprep.subr.bf16.mxu1 %v3124_v40 }
  0x3a   : > { %v2570_v18 = vpack.c.bf16 %v3187_v47, %v3187_v47  ;;  %v2571_v55 = vpack.c.bf16 %v746_v48, %v746_v48  ;;  %v733_v57 = vsub.f32 %v717_v49, %v2971_v14  ;;  %v734_v59 = vsub.f32 %v718_v50, %v2971_v14 }
  0x3b   : > { %v1581_v60 = vshrl.u32 %v2568_v17, 16  ;;  %v1584_v61 = vshll.u32 %v2568_v17, 16  ;;  %v1590_v0 = vshll.u32 %v2569_v51, 16  ;;  %v3201_v1 = vmul.f32 %v2994_v26, %v731_v53 }
  0x3c   : > { %v1595_v2 = vshrl.u32 %v2570_v18, 16  ;;  %v1598_v3 = vshll.u32 %v2570_v18, 16  ;;  %v1604_v4 = vshll.u32 %v2571_v55, 16  ;;  %v748_v7 = vmul.f32 %v2994_v26, %v732_v54 }
  0x3d   : > { %v1583_v11 = vrot.slane %v1581_v60, 4  ;;  %v1586_v12 = vrot.slane %v1584_v61, 5  ;;  %v1592_v20 = vrot.slane %v1590_v0, 5  ;;  %v3205_v23 = vmul.f32 %v2994_v26, %v733_v57  ;;  %v525_v0 = vld [vmem:[%s3085_s29 + $0x30] ss:$8 sps:$4 sm:$0xff]  }
  0x3e   : > { %v1597_v25 = vrot.slane %v1595_v2, 4  ;;  %v1600_v27 = vrot.slane %v1598_v3, 5  ;;  %v1606_v29 = vrot.slane %v1604_v4, 5  ;;  %v750_v33 = vmul.f32 %v2994_v26, %v734_v59 }
  0x3f   : > { %v1587_v34 = vor.u32 %v1586_v12, %v1583_v11  ;;  %v2572_v35 = vpack.c.bf16 %v3201_v1, %v3201_v1  ;;  %v2573_v37 = vpack.c.bf16 %v748_v7, %v748_v7  ;;  %v2574_v38 = vpack.c.bf16 %v3205_v23, %v3205_v23  ;;  %v514_v11 = vld [vmem:[%s3085_s29 + $0x4] sm:$0x1] }
  0x40   : > { %v1601_v44 = vor.u32 %v1600_v27, %v1597_v25  ;;  %v2575_v45 = vpack.c.bf16 %v750_v33, %v750_v33  ;;  %v539_v46 = vunpack.c.l.bf16 %v521_v24  ;;  %v541_v48 = vunpack.c.h.bf16 %v521_v24 }
  0x41   : > { %v1588_v49 = vrot.slane %v1587_v34, 4  ;;  %v1609_v50 = vshrl.u32 %v2572_v35, 16  ;;  %v1612_v17 = vshll.u32 %v2572_v35, 16  ;;  %v1618_v51 = vshll.u32 %v2573_v37, 16 }
  0x42   : > { %v1602_v53 = vrot.slane %v1601_v44, 4  ;;  %v1623_v54 = vshrl.u32 %v2574_v38, 16  ;;  %v1626_v18 = vshll.u32 %v2574_v38, 16  ;;  %v1632_v55 = vshll.u32 %v2575_v45, 16 }
  0x43   : > { %v1072_v57 = vrot.slane %v1070_v32, 5  ;;  %v1593_v59 = vsel %vm3105_vm5, %v1588_v49, %v1592_v20  ;;  %v1611_v60 = vrot.slane %v1609_v50, 4  ;;  %v1614_v61 = vrot.slane %v1612_v17, 5  ;;  %v516_v32 = vld [vmem:[%s3085_s29 + $0xc] sm:$0x1] }
  0x44   : > { %v1607_v2 = vsel %vm3105_vm5, %v1602_v53, %v1606_v29  ;;  %v1620_v3 = vrot.slane %v1618_v51, 5  ;;  %v1625_v4 = vrot.slane %v1623_v54, 4  ;;  %v1628_v7 = vrot.slane %v1626_v18, 5 }
  0x45   : > { %v2481_v12 = vcombine.low %v1593_v59, %v1607_v2  ;;  %v1615_v24 = vor.u32 %v1614_v61, %v1611_v60  ;;  %v563_v25 = vsub.f32 %v539_v46, %v2971_v14  ;;  %v565_v27 = vsub.f32 %v541_v48, %v2971_v14  ;;  %v520_v2 = vld [vmem:[%s3085_s29 + $0x1c] sm:$0x1] }
  0x46   : > { %v1629_v33 = vor.u32 %v1628_v7, %v1625_v4  ;;  %v1634_v34 = vrot.slane %v1632_v55, 5  ;;  %v543_v20 = vunpack.c.l.bf16 %v525_v0  ;;  %v545_v35 = vunpack.c.h.bf16 %v525_v0  ;;  %v518_v0 = vld [vmem:[%s3085_s29 + $0x14] sm:$0x1] }
  0x47   : > { %2695 = vmatprep.mubr.msk.bf16.mxu0 %vm854_vm2, %v2481_v12  ;;  %v1616_v37 = vrot.slane %v1615_v24, 4  ;;  %v3224_v29 = vmul.f32 %v2994_v26, %v563_v25  ;;  %v3227_v38 = vmul.f32 %v2994_v26, %v565_v27  ;;  %v532_v44 = vunpack.c.l.bf16 %v514_v11 }
  0x48   : > { %v1630_v45 = vrot.slane %v1629_v33, 4  ;;  %v567_v46 = vsub.f32 %v543_v20, %v2971_v14  ;;  %v569_v48 = vsub.f32 %v545_v35, %v2971_v14  ;;  %v534_v49 = vunpack.c.l.bf16 %v516_v32 }
  0x49   : > { %v2542_v50 = vpack.c.bf16 %v3151_v16, %v3151_v16  ;;  %v1621_v17 = vsel %vm3105_vm5, %v1616_v37, %v1620_v3  ;;  %v2534_v51 = vpack.c.bf16 %v3227_v38, %v3224_v29  ;;  %v2576_v53 = vpack.c.bf16 %v3148_v13, %v3132_v56 }
  0x4a   : > { %v1635_v54 = vsel %vm3105_vm5, %v1630_v45, %v1634_v34  ;;  %v3243_v18 = vpack.c.bf16 %v3224_v29, %v3224_v29  ;;  %v3246_v55 = vmul.f32 %v2994_v26, %v567_v46  ;;  %v3249_v59 = vmul.f32 %v2994_v26, %v569_v48 }
  0x4b   : > { %v2482_v60 = vcombine.low %v1621_v17, %v1635_v54  ;;  %2655 = vmatprep.mubr.msk.bf16.mxu1 %vm854_vm2, %v2534_v51  ;;  %v556_v61 = vsub.f32 %v532_v44, %v2971_v14  ;;  %v558_v56 = vsub.f32 %v534_v49, %v2971_v14  ;;  %v1073_v13 = vor.u32 %v1072_v57, %v3171_v36 }
  0x4c   : > { %v3259_v3 = vpack.c.bf16 %v3227_v38, %v3227_v38  ;;  %v2577_v4 = vpack.c.bf16 %v3224_v29, %v3151_v16  ;;  %v2535_v7 = vpack.c.bf16 %v3249_v59, %v3246_v55  ;;  %v1081_v11 = vshrl.u32 %v3163_v31, 16 }
  0x4d   : > { %2696 = vmatmul.mubr.msk.bf16.gmra.mrb[4].mxu0 %vm854_vm2, %v2482_v60  ;;  %v580_v12 = vmul.f32 %v2994_v26, %v556_v61  ;;  %v582_v36 = vmul.f32 %v2994_v26, %v558_v56  ;;  %v1074_v57 = vrot.slane %v1073_v13, 4  ;;  %v1084_v24 = vshll.u32 %v3163_v31, 16  ;;  %v529_v60 = vld [vmem:[%s3085_s29 + $0x40] sm:$0xf] }
  0x4e   : > { %2656 = vmatmul.mubr.msk.bf16.gmra.mrb[4].mxu1 %vm854_vm2, %v2535_v7  ;;  %2701 = vmatprep.mubr.msk.bf16.mxu0 %vm854_vm2, %v2576_v53  ;;  %v1083_v25 = vrot.slane %v1081_v11, 4  ;;  %v536_v16 = vunpack.c.l.bf16 %v518_v0  ;;  %v538_v27 = vunpack.c.l.bf16 %v520_v2  ;;  %v1095_v32 = vshrl.u32 %v3175_v5, 16 }
  0x4f   : > { %v2537_v33 = vpack.c.bf16 %v580_v12, %v580_v12  ;;  %v2539_v34 = vpack.c.bf16 %v582_v36, %v582_v36  ;;  %v1086_v20 = vrot.slane %v1084_v24, 5  ;;  %v1098_v35 = vshll.u32 %v3175_v5, 16  ;;  %v522_v12 = vld [vmem:[%s3085_s29 + $0x24] sm:$0x1]  ;;  %v524_v36 = vld [vmem:[%s3085_s29 + $0x2c] sm:$0x1] }
  0x50   : > { %v560_v37 = vsub.f32 %v536_v16, %v2971_v14  ;;  %v562_v29 = vsub.f32 %v538_v27, %v2971_v14  ;;  %v1097_v31 = vrot.slane %v1095_v32, 4  ;;  %v1109_v44 = vshrl.u32 %v2542_v50, 16 }
  0x51   : > { %v1076_v45 = vshll.u32 %v2537_v33, 16  ;;  %v1087_v46 = vor.u32 %v1086_v20, %v1083_v25  ;;  %v1090_v48 = vshll.u32 %v2539_v34, 16  ;;  %v1100_v49 = vrot.slane %v1098_v35, 5 }
  0x52   : > { %v584_v17 = vmul.f32 %v2994_v26, %v560_v37  ;;  %v586_v51 = vmul.f32 %v2994_v26, %v562_v29  ;;  %v1111_v53 = vrot.slane %v1109_v44, 4  ;;  %v1112_v54 = vshll.u32 %v2542_v50, 16 }
  0x53   : > { %v1078_v5 = vrot.slane %v1076_v45, 5  ;;  %v1088_v61 = vrot.slane %v1087_v46, 4  ;;  %v1092_v56 = vrot.slane %v1090_v48, 5  ;;  %v1101_v13 = vor.u32 %v1100_v49, %v1097_v31 }
  0x54   : > { %v2541_v0 = vpack.c.bf16 %v584_v17, %v584_v17  ;;  %v2543_v2 = vpack.c.bf16 %v586_v51, %v586_v51  ;;  %v1114_v7 = vrot.slane %v1112_v54, 5  ;;  %v2578_v11 = vpack.c.bf16 %v3246_v55, %v3227_v38 }
  0x55   : > { %2702 = vmatmul.mubr.msk.bf16.vlgmr.msra.gmra.mrb[0].mxu0 %vm854_vm2, %v2577_v4  ;;  %v1079_v24 = vsel %vm3105_vm5, %v1074_v57, %v1078_v5  ;;  %v3288_v50 = vsel %vm3105_vm5, %v1088_v61, %v1092_v56  ;;  %v1102_v25 = vrot.slane %v1101_v13, 4  ;;  %v547_v16 = vunpack.c.l.bf16 %v529_v60  ;;  %v528_v61 = vld [vmem:[%s3085_s29 + $0x3c] sm:$0x1] }
  0x56   : > { %2710 = vmatpush3.bf16.msra.mxu0 %v2990_v19  ;;  %v2436_v27 = vcombine.low %v1079_v24, %v3288_v50  ;;  %v1104_v32 = vshll.u32 %v2541_v0, 16  ;;  %v1115_v33 = vor.u32 %v1114_v7, %v1111_v53  ;;  %v1118_v38 = vshll.u32 %v2543_v2, 16  ;;  %2705 = vmatprep.mubr.msk.bf16.mxu0 %vm854_vm2, %v2578_v11  ;;  %v526_v53 = vld [vmem:[%s3085_s29 + $0x34] sm:$0x1] }
  0x57   : > { %v571_v4 = vsub.f32 %v547_v16, %v2971_v14  ;;  %v540_v34 = vunpack.c.l.bf16 %v522_v12  ;;  %v542_v20 = vunpack.c.l.bf16 %v524_v36  ;;  %v1123_v57 = vshrl.u32 %v3243_v18, 16  ;;  %2719 = vmatprep.subr.bf16.mxu0 %v3159_v30 }
  0x58   : > { %2661 = vmatprep.mubr.msk.bf16.mxu1 %vm854_vm2, %v2436_v27  ;;  %v1106_v35 = vrot.slane %v1104_v32, 5  ;;  %v1116_v19 = vrot.slane %v1115_v33, 4  ;;  %v1120_v37 = vrot.slane %v1118_v38, 5  ;;  %v1126_v29 = vshll.u32 %v3243_v18, 16 }
  0x59   : > { %v595_v31 = vmul.f32 %v2994_v26, %v571_v4  ;;  %v564_v44 = vsub.f32 %v540_v34, %v2971_v14  ;;  %v566_v45 = vsub.f32 %v542_v20, %v2971_v14  ;;  %v1125_v46 = vrot.slane %v1123_v57, 4 }
  0x5a   : > { %v3303_v48 = vsel %vm3105_vm5, %v1102_v25, %v1106_v35  ;;  %v3307_v49 = vsel %vm3105_vm5, %v1116_v19, %v1120_v37  ;;  %v1128_v17 = vrot.slane %v1126_v29, 5  ;;  %v1137_v51 = vshrl.u32 %v3259_v3, 16 }
  0x5b   : > { %v2548_v18 = vpack.c.bf16 %v3246_v55, %v3246_v55  ;;  %v2437_v54 = vcombine.low %v3303_v48, %v3307_v49  ;;  %v2579_v60 = vpack.c.bf16 %v595_v31, %v3249_v59  ;;  %v588_v5 = vmul.f32 %v2994_v26, %v564_v44 }
  0x5c   : > { %v590_v56 = vmul.f32 %v2994_v26, %v566_v45  ;;  %v1129_v13 = vor.u32 %v1128_v17, %v1125_v46  ;;  %v1139_v0 = vrot.slane %v1137_v51, 4  ;;  %v1140_v2 = vshll.u32 %v3259_v3, 16  ;;  %v622_v17 = vld [vmem:[%s2965_s16 + $0x40] sm:$0xf]  ;;  %s2399_s16 = sshll.u32 %s3487_s30, 1 }
  0x5d   : > { %v2550_v7 = vpack.c.bf16 %v3249_v59, %v3249_v59  ;;  %2662 = vmatmul.mubr.msk.bf16.vlgmr.msra.gmra.mrb[0].mxu1 %vm854_vm2, %v2437_v54  ;;  %2706 = vmatmul.mubr.msk.bf16.gmra.mrb[4].mxu0 %vm854_vm2, %v2579_v60  ;;  %v2545_v55 = vpack.c.bf16 %v588_v5, %v588_v5  ;;  %v544_v11 = vunpack.c.l.bf16 %v526_v53  ;;  %v546_v24 = vunpack.c.l.bf16 %v528_v61  ;;  %s3402_s19 = scalar_lea.vmem %s3479_s9, %s2399_s16 }
  0x5e   : > { %2670 = vmatpush3.bf16.msra.mxu1 %v3124_v40  ;;  %v2547_v12 = vpack.c.bf16 %v590_v56, %v590_v56  ;;  %v1142_v36 = vrot.slane %v1140_v2, 5  ;;  %2711 = vmatprep.mubr.msk.bf16.mxu0 %vm854_vm2, %v2580_v52  ;;  %v1130_v3 = vrot.slane %v1129_v13, 4  ;;  %v1151_v33 = vshrl.u32 %v2548_v18, 16  ;;  %v530_v2 = vld [vmem:[%s3085_s29 + $0x44] sm:$0x1] }
  0x5f   : > { %v1132_v25 = vshll.u32 %v2545_v55, 16  ;;  %v568_v59 = vsub.f32 %v544_v11, %v2971_v14  ;;  %2729 = vmatprep.subr.bf16.mxu1 %v2935_v8  ;;  %v570_v32 = vsub.f32 %v546_v24, %v2971_v14  ;;  %v1154_v4 = vshll.u32 %v2548_v18, 16 }
  0x60   : > { %v1143_v16 = vor.u32 %v1142_v36, %v1139_v0  ;;  %v1146_v27 = vshll.u32 %v2547_v12, 16  ;;  %v1165_v34 = vshrl.u32 %v2550_v7, 16  ;;  %v1153_v20 = vrot.slane %v1151_v33, 4 }
  0x61   : > { %v1134_v40 = vrot.slane %v1132_v25, 5  ;;  %v592_v38 = vmul.f32 %v2994_v26, %v568_v59  ;;  %v594_v52 = vmul.f32 %v2994_v26, %v570_v32  ;;  %v2584_v57 = vpack.c.bf16 %v595_v31, %v595_v31  ;;  %v767_v25 = vld [vmem:[%s2980_s22 + $0x20] ss:$8 sps:$4 sm:$0xff]  }
  0x62   : > { %v1144_v41 = vrot.slane %v1143_v16, 4  ;;  %v1148_v42 = vrot.slane %v1146_v27, 5  ;;  %v1156_v37 = vrot.slane %v1154_v4, 5  ;;  %v1167_v45 = vrot.slane %v1165_v34, 4 }
  0x63   : > { %v1135_v35 = vsel %vm3105_vm5, %v1130_v3, %v1134_v40  ;;  %v2549_v19 = vpack.c.bf16 %v592_v38, %v592_v38  ;;  %v2551_v44 = vpack.c.bf16 %v594_v52, %v594_v52  ;;  %v1168_v46 = vshll.u32 %v2550_v7, 16 }
  0x64   : > { %v3338_v29 = vsel %vm3105_vm5, %v1144_v41, %v1148_v42  ;;  %v1157_v53 = vor.u32 %v1156_v37, %v1153_v20  ;;  %v2553_v60 = vpack.c.bf16 %v3101_v62, %v3097_v58  ;;  %v2582_v5 = vpack.c.bf16 %v3054_v9, %v3051_v15 }
  0x65   : > { %v2438_v51 = vcombine.low %v1135_v35, %v3338_v29  ;;  %v1160_v18 = vshll.u32 %v2549_v19, 16  ;;  %2712 = vmatmul.mubr.msk.bf16.vlgmr.msra.gmra.mrb[0].mxu0 %vm854_vm2, %v2581_v21  ;;  %v1170_v31 = vrot.slane %v1168_v46, 5  ;;  %v1174_v54 = vshll.u32 %v2551_v44, 16 }
  0x66   : > { %2720 = vmatpush3.bf16.msra.mxu0 %v3159_v30  ;;  %v1934_v61 = vshrl.u32 %v2584_v57, 16  ;;  %v1158_v56 = vrot.slane %v1157_v53, 4  ;;  %v640_v0 = vunpack.c.l.bf16 %v622_v17  ;;  %v1937_v43 = vshll.u32 %v2584_v57, 16  ;;  %2715 = vmatprep.mubr.msk.bf16.mxu0 %vm854_vm2, %v2582_v5 }
  0x67   : > { %2665 = vmatprep.mubr.msk.bf16.mxu1 %vm854_vm2, %v2438_v51  ;;  %v1162_v13 = vrot.slane %v1160_v18, 5  ;;  %v1171_v6 = vor.u32 %v1170_v31, %v1167_v45  ;;  %v1176_v21 = vrot.slane %v1174_v54, 5  ;;  %v548_v7 = vunpack.c.l.bf16 %v530_v2 }
  0x68   : > { %v658_v30 = vsub.f32 %v640_v0, %v2971_v14  ;;  %v1936_v15 = vrot.slane %v1934_v61, 4  ;;  %v1939_v55 = vrot.slane %v1937_v43, 5  ;;  %v2552_v12 = vpack.c.bf16 %v3073_v28, %v3065_v10 }
  0x69   : > { %v1163_v58 = vsel %vm3105_vm5, %v1158_v56, %v1162_v13  ;;  %v1172_v62 = vrot.slane %v1171_v6, 4  ;;  %v2508_v36 = vcombine.low %v3288_v50, %v3303_v48  ;;  %v572_v59 = vsub.f32 %v548_v7, %v2971_v14 }
  0x6a   : > { %v676_v9 = vmul.f32 %v2994_v26, %v658_v30  ;;  %v783_v16 = vunpack.c.l.bf16 %v767_v25  ;;  %v785_v27 = vunpack.c.h.bf16 %v767_v25  ;;  %v1940_v28 = vor.u32 %v1939_v55, %v1936_v15 }
  0x6b   : > { %v1177_v11 = vsel %vm3105_vm5, %v1172_v62, %v1176_v21  ;;  %v596_v10 = vmul.f32 %v2994_v26, %v572_v59  ;;  %v2554_v48 = vpack.c.bf16 %v3187_v47, %v3182_v39  ;;  %v2510_v4 = vcombine.low %v3338_v29, %v1163_v58  ;;  %v771_v47 = vld [vmem:[%s2980_s22 + $0x30] ss:$8 sps:$4 sm:$0xff]   ;;  %s2527_s22 = sshll.u32 %s3487_s30, 5 }
  0x6c   : > { %v2439_v24 = vcombine.low %v1163_v58, %v1177_v11  ;;  %v2583_v3 = vpack.c.bf16 %v676_v9, %v3061_v22  ;;  %v2509_v22 = vcombine.low %v3307_v49, %v1135_v35  ;;  %v799_v32 = vsub.f32 %v783_v16, %v2971_v14  ;;  %s3418_s26 = scalar_lea.vmem %s3478_s8, %s2527_s22 }
  0x6d   : > { %v2585_v50 = vpack.c.bf16 %v596_v10, %v596_v10  ;;  %v801_v33 = vsub.f32 %v785_v27, %v2971_v14  ;;  %v1941_v40 = vrot.slane %v1940_v28, 4  ;;  %v2555_v42 = vpack.c.bf16 %v3205_v23, %v3201_v1 }
  0x6e   : > { %2666 = vmatmul.mubr.msk.bf16.gmra.mrb[4].mxu1 %vm854_vm2, %v2439_v24  ;;  %2716 = vmatmul.mubr.msk.bf16.gmra.mrb[4].mxu0 %vm854_vm2, %v2583_v3  ;;  %v815_v49 = vmul.f32 %v2994_v26, %v799_v32  ;;  %v787_v52 = vunpack.c.l.bf16 %v771_v47  ;;  %v789_v20 = vunpack.c.h.bf16 %v771_v47 }
  0x6f   : > { %2671 = vmatprep.mubr.msk.bf16.mxu1 %vm854_vm2, %v2552_v12  ;;  %2721 = vmatprep.mubr.msk.bf16.mxu0 %vm854_vm2, %v2508_v36  ;;  %v1943_v38 = vshll.u32 %v2585_v50, 16  ;;  %v817_v39 = vmul.f32 %v2994_v26, %v801_v33 }
  0x70   : > { %v803_v35 = vsub.f32 %v787_v52, %v2971_v14  ;;  %v805_v19 = vsub.f32 %v789_v20, %v2971_v14  ;;  %v2847_v14 = vmov 0.0  }
  0x71   : > { %v1945_v34 = vrot.slane %v1943_v38, 5  ;;  %2179 = vst.msk [vmem:[%s3402_s19] sm:$0x3] %vm2178_vm6, %v2847_v14 }
  0x72   : > { %v819_v63 = vmul.f32 %v2994_v26, %v803_v35  ;;  %v821_v37 = vmul.f32 %v2994_v26, %v805_v19  ;;  %v3409_v26 = vld [vmem:[%s3477_s7] ss:$0 sm:$0xff] }
  0x73   : > { %v1946_v41 = vsel %vm3105_vm5, %v1941_v40, %v1945_v34 }
  0x74   : > { %v2511_v57 = vcombine.low %v1177_v11, %v1946_v41  ;;  %v2559_v29 = vpack.c.bf16 %v821_v37, %v819_v63 }
  0x76   : > { %2672 = vmatmul.mubr.msk.bf16.vlgmr.msra.gmra.mrb[0].mxu1 %vm854_vm2, %v2553_v60  ;;  %2722 = vmatmul.mubr.msk.bf16.vlgmr.msra.gmra.mrb[0].mxu0 %vm854_vm2, %v2509_v22 }
  0x77   : > { %2730 = vmatpush3.bf16.msra.mxu1 %v2935_v8  ;;  %2675 = vmatprep.mubr.msk.bf16.mxu1 %vm854_vm2, %v2554_v48  ;;  %v2558_v8 = vpack.c.bf16 %v817_v39, %v815_v49 }
  0x78   : > { %2725 = vmatprep.mubr.msk.bf16.mxu0 %vm854_vm2, %v2510_v4 }
  0x7e   : > { %2676 = vmatmul.mubr.msk.bf16.gmra.mrb[4].mxu1 %vm854_vm2, %v2555_v42  ;;  %2726 = vmatmul.mubr.msk.bf16.gmra.mrb[4].mxu0 %vm854_vm2, %v2511_v57 }
  0x7f   : > { %2685 = vmatprep.mubr.msk.bf16.mxu1 %vm854_vm2, %v2558_v8 }
  0x8a   : > { %2686 = vmatmul.mubr.msk.bf16.vlgmr.msra.gmra.mrb[4].mxu1 %vm854_vm2, %v2559_v29 }
 0x149   : > { %v2673_v1 = vpop.f32.mrb[0].mxu1  ;;  %v2723_v23 = vpop.f32.mrb[0].mxu0 }
 0x14a   : > { %v1351_v44 = vpop.f32.mrb[1].mxu1  ;;  %v2731_v45 = vadd.f32 %v2723_v23, %v2673_v1  ;;  %v2003_v46 = vpop.f32.mrb[1].mxu0 }
 0x14b   : > { %v2674_v17 = vpop.f32.mrb[2].mxu1  ;;  %v2732_v51 = vadd.f32 %v2003_v46, %v1351_v44  ;;  %v2724_v53 = vpop.f32.mrb[2].mxu0 }
 0x14c   : > { %v1354_v18 = vpop.f32.mrb[3].mxu1  ;;  %v2051_v31 = vadd.f32 %v2731_v45, %v3409_v26  ;;  %v2733_v54 = vadd.f32 %v2724_v53, %v2674_v17  ;;  %v2006_v60 = vpop.f32.mrb[3].mxu0 }
 0x14d   : > { %v2049_v5 = vadd.f32 %v2732_v51, %v3409_v26  ;;  %v2734_v61 = vadd.f32 %v2006_v60, %v1354_v18 }
 0x14e   : > { %vm2059_vm7 = vcmp.ge.f32.partialorder %v2051_v31, 0.0  ;;  %v2067_v56 = vmul.f32 0.01, %v2051_v31  ;;  %v2052_v13 = vadd.f32 %v2733_v54, %v3409_v26 }
 0x14f   : > { %vm2057_vm9 = vcmp.ge.f32.partialorder %v2049_v5, 0.0  ;;  %v2065_v0 = vmul.f32 0.01, %v2049_v5  ;;  %v2050_v21 = vadd.f32 %v2734_v61, %v3409_v26 }
 0x150   : > { %v2075_v43 = vsel %vm2059_vm7, %v2051_v31, %v2067_v56  ;;  %vm2060_vm10 = vcmp.ge.f32.partialorder %v2052_v13, 0.0  ;;  %v2068_v6 = vmul.f32 0.01, %v2052_v13 }
 0x151   : > { %v2588_v2 = vpack.c.bf16 %v2075_v43, %v2075_v43  ;;  %v2073_v30 = vsel %vm2057_vm9, %v2049_v5, %v2065_v0  ;;  %v2727_v58 = vpop.f32.mrb[4].mxu0  ;;  %vm2058_vm12 = vcmp.ge.f32.partialorder %v2050_v21, 0.0  ;;  %v2066_v11 = vmul.f32 0.01, %v2050_v21 }
 0x152   : > { %v2586_v62 = vpack.c.bf16 %v2073_v30, %v2073_v30  ;;  %v2076_v15 = vsel %vm2060_vm10, %v2052_v13, %v2068_v6  ;;  %v2019_v9 = vpop.f32.mrb[5].mxu0  ;;  %v2144_v36 = vmul.f32 %v2073_v30, %v2073_v30  ;;  %v2146_v24 = vmul.f32 %v2075_v43, %v2075_v43 }
 0x153   : > { %2116 = vst.msk [vmem:[%s3418_s26 + $0x8] sm:$0xf] %vm2113_vm8, %v2588_v2  ;;  %v2589_v7 = vpack.c.bf16 %v2076_v15, %v2076_v15  ;;  %v2728_v55 = vpop.f32.mrb[6].mxu0  ;;  %v2074_v3 = vsel %vm2058_vm12, %v2050_v21, %v2066_v11  ;;  %v2123_v25 = vsel %vm2122_vm11, %v2073_v30, 0.0  ;;  %v2126_v28 = vsel %vm2122_vm11, %v2075_v43, 0.0 }
 0x154   : > { %2114 = vst.msk [vmem:[%s3418_s26] sm:$0xf] %vm2113_vm8, %v2586_v62  ;;  %v2022_v12 = vpop.f32.mrb[7].mxu0  ;;  %v2587_v59 = vpack.c.bf16 %v2074_v3, %v2074_v3  ;;  %v2124_v16 = vsel %vm2122_vm11, %v2074_v3, 0.0  ;;  %v2145_v27 = vmul.f32 %v2074_v3, %v2074_v3  ;;  %v2152_v50 = vsel %vm2122_vm11, %v2144_v36, 0.0 }
 0x155   : > { %2117 = vst.msk [vmem:[%s3418_s26 + $0xc] sm:$0xf] %vm2113_vm8, %v2589_v7  ;;  %v2125_v10 = vadd.f32 %v2124_v16, %v2123_v25  ;;  %v2147_v22 = vmul.f32 %v2076_v15, %v2076_v15  ;;  %v2155_v40 = vsel %vm2122_vm11, %v2146_v24, 0.0  ;;  %v2128_v38 = vsel %vm2122_vm11, %v2076_v15, 0.0 }
 0x156   : > { %2115 = vst.msk [vmem:[%s3418_s26 + $0x4] sm:$0xf] %vm2113_vm8, %v2587_v59  ;;  %v2153_v48 = vsel %vm2122_vm11, %v2145_v27, 0.0 }
 0x157   : > { %v2127_v32 = vadd.f32 %v2126_v28, %v2125_v10  ;;  %v2154_v33 = vadd.f32 %v2153_v48, %v2152_v50  ;;  %v2157_v49 = vsel %vm2122_vm11, %v2147_v22, 0.0 }
 0x159   : > { %v2156_v4 = vadd.f32 %v2155_v40, %v2154_v33  ;;  %v2129_v34 = vadd.f32 %v2128_v38, %v2127_v32  ;;  %v2180_v32 = vld [vmem:[%s3402_s19] sm:$0x3] }
 0x15b   : > { %v2158_v42 = vadd.f32 %v2157_v49, %v2156_v4 }
 0x15d   : > { %v2687_v39 = vpop.f32.mrb[4].mxu1 }
 0x15e   : > { %v2735_v47 = vadd.f32 %v2727_v58, %v2687_v39  ;;  %v1477_v41 = vpop.f32.mrb[5].mxu1 }
 0x15f   : > { %v2736_v52 = vadd.f32 %v2019_v9, %v1477_v41  ;;  %v2688_v20 = vpop.f32.mrb[6].mxu1 }
 0x160   : > { %v2055_v57 = vadd.f32 %v2735_v47, %v3409_v26  ;;  %v2737_v8 = vadd.f32 %v2728_v55, %v2688_v20  ;;  %v1480_v35 = vpop.f32.mrb[7].mxu1 }
 0x161   : > { %v2053_v19 = vadd.f32 %v2736_v52, %v3409_v26  ;;  %v2738_v63 = vadd.f32 %v2022_v12, %v1480_v35 }
 0x162   : > { %vm2063_vm13 = vcmp.ge.f32.partialorder %v2055_v57, 0.0  ;;  %v2071_v37 = vmul.f32 0.01, %v2055_v57  ;;  %v2056_v29 = vadd.f32 %v2737_v8, %v3409_v26 }
 0x163   : > { %vm2061_vm14 = vcmp.ge.f32.partialorder %v2053_v19, 0.0  ;;  %v2069_v14 = vmul.f32 0.01, %v2053_v19  ;;  %v2054_v44 = vadd.f32 %v2738_v63, %v3409_v26 }
 0x164   : > { %v2079_v1 = vsel %vm2063_vm13, %v2055_v57, %v2071_v37  ;;  %vm2064_vm15 = vcmp.ge.f32.partialorder %v2056_v29, 0.0  ;;  %v2072_v23 = vmul.f32 0.01, %v2056_v29 }
 0x165   : > { %v2592_v45 = vpack.c.bf16 %v2079_v1, %v2079_v1  ;;  %v2077_v46 = vsel %vm2061_vm14, %v2053_v19, %v2069_v14  ;;  %vm2062_vm1 = vcmp.ge.f32.partialorder %v2054_v44, 0.0  ;;  %v2070_v5 = vmul.f32 0.01, %v2054_v44 }
 0x166   : > { %v2590_v17 = vpack.c.bf16 %v2077_v46, %v2077_v46  ;;  %v2130_v51 = vsel %vm2122_vm11, %v2077_v46, 0.0  ;;  %v2148_v53 = vmul.f32 %v2077_v46, %v2077_v46  ;;  %v2080_v18 = vsel %vm2064_vm15, %v2056_v29, %v2072_v23 }
 0x167   : > { %2120 = vst.msk [vmem:[%s3418_s26 + $0x18] sm:$0xf] %vm2113_vm8, %v2592_v45  ;;  %v2131_v31 = vadd.f32 %v2130_v51, %v2129_v34  ;;  %v2593_v54 = vpack.c.bf16 %v2080_v18, %v2080_v18  ;;  %v2078_v26 = vsel %vm2062_vm1, %v2054_v44, %v2070_v5  ;;  %v2150_v56 = vmul.f32 %v2079_v1, %v2079_v1 }
 0x168   : > { %2118 = vst.msk [vmem:[%s3418_s26 + $0x10] sm:$0xf] %vm2113_vm8, %v2590_v17  ;;  %v2159_v60 = vsel %vm2122_vm11, %v2148_v53, 0.0  ;;  %v2591_v13 = vpack.c.bf16 %v2078_v26, %v2078_v26  ;;  %v2132_v0 = vsel %vm2122_vm11, %v2078_v26, 0.0  ;;  %v2149_v43 = vmul.f32 %v2078_v26, %v2078_v26 }
 0x169   : > { %v2160_v61 = vadd.f32 %v2159_v60, %v2158_v42  ;;  %2121 = vst.msk [vmem:[%s3418_s26 + $0x1c] sm:$0xf] %vm2113_vm8, %v2593_v54  ;;  %v2133_v6 = vadd.f32 %v2132_v0, %v2131_v31  ;;  %v2134_v21 = vsel %vm2122_vm11, %v2079_v1, 0.0  ;;  %v2151_v2 = vmul.f32 %v2080_v18, %v2080_v18 }
 0x16a   : > { %2119 = vst.msk [vmem:[%s3418_s26 + $0x14] sm:$0xf] %vm2113_vm8, %v2591_v13  ;;  %v2161_v30 = vsel %vm2122_vm11, %v2149_v43, 0.0  ;;  %v2163_v15 = vsel %vm2122_vm11, %v2150_v56, 0.0  ;;  %v2136_v9 = vsel %vm2122_vm11, %v2080_v18, 0.0 }
 0x16b   : > { %v2135_v58 = vadd.f32 %v2134_v21, %v2133_v6  ;;  %v2162_v62 = vadd.f32 %v2161_v30, %v2160_v61  ;;  %v2165_v11 = vsel %vm2122_vm11, %v2151_v2, 0.0 }
 0x16d   : > { %v2137_v7 = vadd.f32 %v2136_v9, %v2135_v58  ;;  %v2164_v55 = vadd.f32 %v2163_v15, %v2162_v62 }
 0x16f   : > { %v2138_v12 = vrot.slane %v2137_v7, 4  ;;  %v2166_v36 = vadd.f32 %v2165_v11, %v2164_v55 }
 0x171   : > { %v2139_v24 = vadd.f32 %v2138_v12, %v2137_v7  ;;  %v2167_v3 = vrot.slane %v2166_v36, 4 }
 0x173   : > { %v2140_v25 = vrot.slane %v2139_v24, 2  ;;  %v2168_v59 = vadd.f32 %v2167_v3, %v2166_v36 }
 0x175   : > { %v2141_v16 = vadd.f32 %v2140_v25, %v2139_v24  ;;  %v2169_v27 = vrot.slane %v2168_v59, 2 }
 0x177   : > { %v2142_v10 = vrot.slane %v2141_v16, 1  ;;  %v2170_v28 = vadd.f32 %v2169_v27, %v2168_v59 }
 0x179   : > { %v2171_v50 = vrot.slane %v2170_v28, 1  ;;  %v2143_v22 = vadd.f32 %v2142_v10, %v2141_v16 }
 0x17b   : > { %v2172_v48 = vadd.f32 %v2171_v50, %v2170_v28 }
 0x17d   : > { %v2173_v33 = vsel %vm867_vm0, %v2143_v22, %v2172_v48 }
 0x17e   : > { %v2181_v40 = vadd.f32 %v2180_v32, %v2173_v33 }
 0x180   : > { %2183 = vst.msk [vmem:[%s3402_s19] sm:$0x3] %vm2178_vm6, %v2181_v40 }
 0x181 PF: > { %s20_s11 = sadd.s32 1, %s2844_s11   ;;  %s3482_s30 = smov %s2840_s10 }
 0x182   : > { %p17_p5 = scmp.ge.s32.totalorder %s20_s11, 4   ;;  %s3483_s10 = smov %s3485_s12 }
 0x184   :  { %19 = sbr.rel (!%p17_p5) target bundleno = 2 (0x2), region = 121 }

// kernel: discriminator_forward.4
= control target key start
LH: loop header
LB: loop body
LE: loop exit
PB: predicated region body
PF: predicated region fallthrough
CT: control target
= control target key end

     0   :  { %s2395_s30 = smov 0   ;;  %s2397_s10 = smov 0   ;;  %s2812_s0 = inlined_call_operand.vmem [shape: bf16[2,1,5,5,64], index: 0, kind: input, shape index: {}]   ;;  %s2813_s1 = inlined_call_operand.vmem [shape: bf16[2,1,5,5,64], index: 1, kind: input, shape index: {}]   ;;  %s2814_s2 = inlined_call_operand.vmem [shape: bf16[2,1,5,5,64], index: 2, kind: input, shape index: {}]   ;;  %s2815_s3 = inlined_call_operand.vmem [shape: bf16[2,1,5,5,64], index: 3, kind: input, shape index: {}]   ;;  %s2816_s4 = inlined_call_operand.vmem [shape: f32[2,1,64], index: 4, kind: input, shape index: {}]   ;;  %s2817_s5 = inlined_call_operand.vmem [shape: f32[2,1,64], index: 5, kind: input, shape index: {}]   ;;  %s2818_s6 = inlined_call_operand.vmem [shape: bf16[9,64,128], index: 6, kind: input, shape index: {}]   ;;  %s2819_s7 = inlined_call_operand.vmem [shape: f32[1,128], index: 7, kind: input, shape index: {}]   ;;  %s2820_s8 = inlined_call_operand.vmem [shape: bf16[2,1,16,128], index: 8, kind: output, shape index: {0}]   ;;  %s2821_s9 = inlined_call_operand.vmem [shape: f32[2,2,128], index: 9, kind: output, shape index: {1}]  }
   0x1   :  { %s2399_s11 = smov 0  }
   0x2 LB: > { %s32_s12 = sadd.s32 1, %s2336_s10  ;;  %p1957_p0 = scmp.ge.s32.totalorder %s2340_s11, 1  ;;  %s2340_s11 = sphi %s2399_s11, %s20_s11   ;;  %s2336_s10 = sphi %s2397_s10, %s2829_s10   ;;  %s2332_s30 = sphi %s2395_s30, %s2828_s30  }
   0x3   : > { %p34_p1 = scmp.ge.s32.totalorder %s32_s12, 2  ;;  %p374_p2 = scmp.lt.s32.totalorder %s2340_s11, 3 }
   0x5   : > { %s2831_s12 = smov (%p34_p1, %s32_s12), 0  ;;  %p375_p3 = pnand %p1957_p0, %p374_p2 }
   0x6   : > { %v2282_v0 = vld [vmem:[%s2818_s6 + $0x20] sm:$0xff] (!%p375_p3)   ;;  %v2342_v1 = vmov (!%p375_p3), 0.0   ;;  %v2284_v3 = vld [vmem:[%s2818_s6 + $0x28] sm:$0xff] (!%p375_p3)   ;;  %vm2343_vm0 = vmmov (!%p375_p3), 0   ;;  %p455_p4 = scmp.lt.s32.totalorder (!%p375_p3), %s2332_s30, 1  ;;  %v641_v5 = vlaneseq (!%p375_p3)  ;;  %v2286_v6 = vld [vmem:[%s2818_s6 + $0x30] sm:$0xff] (!%p375_p3)  }
   0x7   : > { %378 = sbr.rel (%p375_p3) target bundleno = 341 (0x155), region = 52  ;;  %2146 = vmatprep.subr.bf16.mxu0 (!%p375_p3), %v2342_v1  ;;  %2158 = vmatprep.subr.bf16.mxu1 (!%p375_p3), %v2342_v1  ;;  %v2283_v2 = vld [vmem:[%s2818_s6] sm:$0xff] (!%p375_p3)   ;;  %v2285_v4 = vld [vmem:[%s2818_s6 + $0x8] sm:$0xff] (!%p375_p3)   ;;  %v2287_v7 = vld [vmem:[%s2818_s6 + $0x10] sm:$0xff] (!%p375_p3)   ;;  %v2344_v15 = vmov (!%p375_p3), 1983009808  }
   0x8   : > { %2147 = vmatpush3.bf16.msra.mxu0 (!%p375_p3), %v2282_v0  ;;  %2154 = vmatprep.mubr.msk.bf16.mxu0 (!%p375_p3), %vm2343_vm0, %v2342_v1  ;;  %v2288_v8 = vld [vmem:[%s2818_s6 + $0x38] sm:$0xff] (!%p375_p3)   ;;  %v642_v10 = vshrl.u32 (!%p375_p3), %v641_v5, 7  ;;  %v639_v16 = vunpack.c.l.s4 (!%p375_p3), %v2344_v15  ;;  %vm677_vm1 = vcmask (!%p375_p3), 523264   ;;  %v2290_v54 = vld [vmem:[%s2818_s6 + $0x40] sm:$0xff] (!%p375_p3)   ;;  %vm843_vm2 = vsmask.f32 (!%p375_p3), 1280 }
   0x9   : > { %2159 = vmatpush3.bf16.msra.mxu1 (!%p375_p3), %v2283_v2  ;;  %2148 = vmatprep.subr.bf16.mxu0 (!%p375_p3), %v2342_v1  ;;  %v2289_v11 = vld [vmem:[%s2818_s6 + $0x18] sm:$0xff] (!%p375_p3)   ;;  %v2291_v2 = vld [vmem:[%s2818_s6 + $0x60] sm:$0xff] (!%p375_p3)   ;;  %vm844_vm3 = vsmask.f32 (!%p375_p3), 3336  ;;  %vm846_vm5 = vsmask.f32 (!%p375_p3), 5392 }
   0xa   : > { %2160 = vmatprep.subr.bf16.mxu1 (!%p375_p3), %v2342_v1  ;;  %2166 = vmatprep.mubr.msk.bf16.mxu1 (!%p375_p3), %vm2343_vm0, %v2342_v1  ;;  %v640_v24 = vunpack.c.0.s8 (!%p375_p3), %v639_v16  ;;  %vm2546_vm4 = vmor (!%p375_p3), %vm843_vm2, %vm844_vm3  ;;  %vm848_vm6 = vsmask.f32 (!%p375_p3), 7448  ;;  %vm1739_vm11 = vcmask (!%p375_p3), 1040384  }
   0xb   : > { %vm2567_vm7 = vmor (!%p375_p3), %vm2546_vm4, %vm846_vm5 }
   0xc   : > { %2149 = vmatpush3.bf16.msra.mxu0 (!%p375_p3), %v2284_v3  ;;  %v2490_v34 = vsub.s32 (!%p375_p3), %v640_v24, %v642_v10  ;;  %v2292_v10 = vld [vmem:[%s2818_s6 + $0x48] sm:$0xff] (!%p375_p3)   ;;  %vm2584_vm8 = vmor (!%p375_p3), %vm2567_vm7, %vm848_vm6 }
   0xd   : > { %2161 = vmatpush3.bf16.msra.mxu1 (!%p375_p3), %v2285_v4  ;;  %2150 = vmatprep.subr.bf16.mxu0 (!%p375_p3), %v2342_v1 }
   0xe   : > { %s2833_s30 = smov (!%p455_p4, %s2332_s30), 1  ;;  %2162 = vmatprep.subr.bf16.mxu1 %v2342_v1 }
   0xf   : > { %s2439_s23 = smul.u32 20, %s2833_s30  ;;  %s493_s26 = scalar_lea.vmem %s2816_s4, %s2833_s30 }
  0x10   : > { %s496_s14 = scalar_lea.vmem %s2817_s5, %s2833_s30  ;;  %v2463_v9 = vld [vmem:[%s493_s26] ss:$0 sm:$0xff]  ;;  %2151 = vmatpush3.bf16.msra.mxu0 %v2286_v6  ;;  %s1964_s25 = sshll.u32 %s2833_s30, 1 }
  0x11   : > { %s2461_s19 = scalar_lea.vmem %s2813_s1, %s2439_s23  ;;  %s2469_s22 = scalar_lea.vmem %s2812_s0, %s2439_s23  ;;  %v2477_v17 = vld [vmem:[%s496_s14] ss:$0 sm:$0xff]  ;;  %2163 = vmatpush3.bf16.msra.mxu1 %v2287_v7  ;;  %2152 = vmatprep.subr.bf16.mxu0 %v2342_v1 }
  0x12   : > { %v550_v12 = vld [vmem:[%s2461_s19] sm:$0x7]  ;;  %v551_v13 = vld [vmem:[%s2461_s19 + $0x4] sm:$0x7]  ;;  %v552_v14 = vld [vmem:[%s2461_s19 + $0x8] sm:$0x7]  ;;  %2164 = vmatprep.subr.bf16.mxu1 %v2342_v1  ;;  %s2554_s15 = scalar_lea.vmem %s2814_s2, %s2439_s23  ;;  %s2597_s29 = scalar_lea.vmem %s2815_s3, %s2439_s23 }
  0x13   : > { %v553_v18 = vld [vmem:[%s2461_s19 + $0xc] sm:$0x7]  ;;  %v555_v19 = vunpack.c.l.bf16 %v550_v12  ;;  %v556_v20 = vunpack.c.l.bf16 %v551_v13  ;;  %v557_v21 = vunpack.c.l.bf16 %v552_v14  ;;  %v513_v22 = vld [vmem:[%s2469_s22] sm:$0x7]  ;;  %v514_v25 = vld [vmem:[%s2469_s22 + $0x4] sm:$0x7]  ;;  %s2790_s28 = scalar_lea.vmem %s2821_s9, %s1964_s25 }
  0x14   : > { %v558_v23 = vunpack.c.l.bf16 %v553_v18  ;;  %v515_v26 = vld [vmem:[%s2469_s22 + $0x8] sm:$0x7]  ;;  %v516_v27 = vld [vmem:[%s2469_s22 + $0xc] sm:$0x7]  ;;  %v518_v28 = vunpack.c.l.bf16 %v513_v22  ;;  %v519_v32 = vunpack.c.l.bf16 %v514_v25  ;;  %2153 = vmatpush3.bf16.msra.mxu0 %v2288_v8  ;;  %v576_v24 = vld [vmem:[%s2554_s15 + $0x4] sm:$0x7] }
  0x15   : > { %v560_v29 = vsub.f32 %v555_v19, %v2463_v9  ;;  %v561_v30 = vsub.f32 %v556_v20, %v2463_v9  ;;  %v562_v31 = vsub.f32 %v557_v21, %v2463_v9  ;;  %v520_v35 = vunpack.c.l.bf16 %v515_v26  ;;  %2165 = vmatpush3.bf16.msra.mxu1 %v2289_v11  ;;  %2170 = vmatprep.subr.bf16.mxu0 %v2342_v1  ;;  %v2293_v18 = vld [vmem:[%s2818_s6 + $0x68] sm:$0xff]   ;;  %v595_v7 = vld [vmem:[%s2597_s29] sm:$0x7]  ;;  %s2093_s14 = sshll.u32 %s2833_s30, 3 }
  0x16   : > { %v563_v33 = vsub.f32 %v558_v23, %v2463_v9  ;;  %v521_v39 = vunpack.c.l.bf16 %v516_v27  ;;  %v529_v41 = vsub.f32 %v518_v28, %v2463_v9  ;;  %v530_v43 = vsub.f32 %v519_v32, %v2463_v9  ;;  %2182 = vmatprep.subr.bf16.mxu1 %v2342_v1  ;;  %v575_v23 = vld [vmem:[%s2554_s15] sm:$0x7]  ;;  %1745 = vst [vmem:[%s2790_s28] sm:$0x3] %v2342_v1 }
  0x17   : > { %v565_v36 = vmul.f32 %v2477_v17, %v560_v29  ;;  %v2494_v37 = vmul.f32 %v2477_v17, %v561_v30  ;;  %v2497_v38 = vmul.f32 %v2477_v17, %v562_v31  ;;  %v531_v44 = vsub.f32 %v520_v35, %v2463_v9  ;;  %v2294_v29 = vld [vmem:[%s2818_s6 + $0x50] sm:$0xff]   ;;  %v577_v35 = vld [vmem:[%s2554_s15 + $0x8] sm:$0x7] }
  0x18   : > { %v2501_v40 = vmul.f32 %v2477_v17, %v563_v33  ;;  %v532_v46 = vsub.f32 %v521_v39, %v2463_v9  ;;  %v540_v47 = vmul.f32 %v2477_v17, %v529_v41  ;;  %v2514_v49 = vmul.f32 %v2477_v17, %v530_v43 }
  0x19   : > { %v1975_v42 = vpack.c.bf16 %v2494_v37, %v565_v36  ;;  %v2517_v50 = vmul.f32 %v2477_v17, %v531_v44  ;;  %v578_v36 = vld [vmem:[%s2554_s15 + $0xc] sm:$0x7]  ;;  %s505_s15 = scalar_lea.vmem %s2820_s8, %s2093_s14 }
  0x1a   : > { %v1976_v45 = vpack.c.bf16 %v2501_v40, %v2497_v38  ;;  %v2521_v52 = vmul.f32 %v2477_v17, %v532_v46  ;;  %v545_v53 = vpack.c.bf16 %v540_v47, %v540_v47  ;;  %v546_v55 = vpack.c.bf16 %v2514_v49, %v2514_v49 }
  0x1b   : > { %v644_v48 = vrot.slane %v1975_v42, %v2490_v34  ;;  %v547_v56 = vpack.c.bf16 %v2517_v50, %v2517_v50  ;;  %v1982_v57 = vpack.c.bf16 %v2514_v49, %v540_v47 }
  0x1c   : > { %v651_v51 = vrot.slane %v1976_v45, %v2490_v34  ;;  %v548_v59 = vpack.c.bf16 %v2521_v52, %v2521_v52  ;;  %v1983_v60 = vpack.c.bf16 %v2521_v52, %v2517_v50  ;;  %v817_v61 = vrot.slane %v545_v53, %v2490_v34 }
  0x1d   : > { %v734_v62 = vrot.slane %v1982_v57, %v2490_v34  ;;  %v825_v63 = vrot.slane %v546_v55, %v2490_v34  ;;  %v833_v0 = vrot.slane %v547_v56, %v2490_v34  ;;  %v579_v55 = vunpack.c.l.bf16 %v575_v23  ;;  %v2296_v57 = vld [vmem:[%s2818_s6 + $0x58] sm:$0xff]  }
  0x1e   : > { %v652_v58 = vcombine.low %v644_v48, %v651_v51  ;;  %v741_v3 = vrot.slane %v1983_v60, %v2490_v34  ;;  %v818_v4 = vcombine.high %v817_v61, %v817_v61  ;;  %v841_v5 = vrot.slane %v548_v59, %v2490_v34  ;;  %v2295_v51 = vld [vmem:[%s2818_s6 + $0x70] sm:$0xff]  }
  0x1f   : > { %v851_v6 = vshrl.u32 %v817_v61, 16  ;;  %v854_v8 = vshll.u32 %v817_v61, 16  ;;  %v826_v11 = vcombine.high %v825_v63, %v825_v63  ;;  %v834_v12 = vcombine.high %v833_v0, %v833_v0 }
  0x20   : > { %2155 = vmatmul.mubr.msk.bf16.vlgmr.msra.gmra.mrb[0].mxu0 %vm677_vm1, %v652_v58  ;;  %v742_v13 = vcombine.low %v734_v62, %v741_v3  ;;  %v842_v15 = vcombine.high %v841_v5, %v841_v5  ;;  %v860_v20 = vshll.u32 %v818_v4, 16  ;;  %v865_v21 = vshrl.u32 %v825_v63, 16 }
  0x21   : > { %2171 = vmatpush3.bf16.msra.mxu0 %v2290_v54  ;;  %2178 = vmatprep.mubr.msk.bf16.mxu0 %vm2343_vm0, %v2342_v1  ;;  %v853_v14 = vrot.slane %v851_v6, 6  ;;  %v856_v16 = vrot.slane %v854_v8, 7  ;;  %v868_v22 = vshll.u32 %v825_v63, 16  ;;  %v874_v25 = vshll.u32 %v826_v11, 16  ;;  %v596_v8 = vld [vmem:[%s2597_s29 + $0x4] sm:$0x7] }
  0x22   : > { %2172 = vmatprep.subr.bf16.mxu0 %v2342_v1  ;;  %2167 = vmatmul.mubr.msk.bf16.vlgmr.msra.gmra.mrb[0].mxu1 %vm677_vm1, %v742_v13  ;;  %v879_v26 = vshrl.u32 %v833_v0, 16  ;;  %v882_v27 = vshll.u32 %v833_v0, 16  ;;  %v888_v28 = vshll.u32 %v834_v12, 16  ;;  %v862_v31 = vrot.slane %v860_v20, 7  ;;  %v2297_v13 = vld [vmem:[%s2818_s6 + $0x78] sm:$0xff]  }
  0x23   : > { %2183 = vmatpush3.bf16.msra.mxu1 %v2291_v2  ;;  %v857_v30 = vor.u32 %v856_v16, %v853_v14  ;;  %v867_v32 = vrot.slane %v865_v21, 6  ;;  %v870_v33 = vrot.slane %v868_v22, 7  ;;  %v876_v41 = vrot.slane %v874_v25, 7  ;;  %2190 = vmatprep.mubr.msk.bf16.mxu1 %vm2343_vm0, %v2342_v1  ;;  %v597_v21 = vld [vmem:[%s2597_s29 + $0x8] sm:$0x7] }
  0x24   : > { %2184 = vmatprep.subr.bf16.mxu1 %v2342_v1  ;;  %v881_v42 = vrot.slane %v879_v26, 6  ;;  %v884_v43 = vrot.slane %v882_v27, 7  ;;  %v890_v44 = vrot.slane %v888_v28, 7  ;;  %v893_v47 = vshrl.u32 %v841_v5, 16 }
  0x25   : > { %2173 = vmatpush3.bf16.msra.mxu0 %v2292_v10  ;;  %v858_v45 = vrot.slane %v857_v30, 2  ;;  %v871_v46 = vor.u32 %v870_v33, %v867_v32  ;;  %v896_v48 = vshll.u32 %v841_v5, 16  ;;  %v902_v54 = vshll.u32 %v842_v15, 16  ;;  %v598_v32 = vld [vmem:[%s2597_s29 + $0xc] sm:$0x7] }
  0x26   : > { %2174 = vmatprep.subr.bf16.mxu0 %v2342_v1  ;;  %v885_v53 = vor.u32 %v884_v43, %v881_v42  ;;  %v580_v56 = vunpack.c.l.bf16 %v576_v24  ;;  %v895_v60 = vrot.slane %v893_v47, 6  ;;  %v581_v0 = vunpack.c.l.bf16 %v577_v35  ;;  %v2298_v43 = vld [vmem:[%s2818_s6 + $0x80] sm:$0xff]  }
  0x27   : > { %2185 = vmatpush3.bf16.msra.mxu1 %v2293_v18  ;;  %v863_v58 = vsel %vm2584_vm8, %v858_v45, %v862_v31  ;;  %v872_v59 = vrot.slane %v871_v46, 2  ;;  %v898_v61 = vrot.slane %v896_v48, 7  ;;  %v904_v63 = vrot.slane %v902_v54, 7  ;;  %v2299_v47 = vld [vmem:[%s2818_s6 + $0xa0] sm:$0xff]  }
  0x28   : > { %2186 = vmatprep.subr.bf16.mxu1 %v2342_v1  ;;  %v886_v62 = vrot.slane %v885_v53, 2  ;;  %v582_v2 = vunpack.c.l.bf16 %v578_v36  ;;  %v583_v5 = vsub.f32 %v579_v55, %v2463_v9  ;;  %v584_v6 = vsub.f32 %v580_v56, %v2463_v9 }
  0x29   : > { %2175 = vmatpush3.bf16.msra.mxu0 %v2294_v29  ;;  %v2608_v3 = vsel %vm2584_vm8, %v872_v59, %v876_v41  ;;  %v899_v4 = vor.u32 %v898_v61, %v895_v60  ;;  %v585_v11 = vsub.f32 %v581_v0, %v2463_v9  ;;  %v599_v22 = vunpack.c.l.bf16 %v595_v7 }
  0x2a   : > { %2176 = vmatprep.subr.bf16.mxu0 %v2342_v1  ;;  %v915_v10 = vcombine.low %v863_v58, %v2608_v3  ;;  %v586_v12 = vsub.f32 %v582_v2, %v2463_v9  ;;  %v2622_v14 = vsel %vm2584_vm8, %v886_v62, %v890_v44  ;;  %v587_v16 = vmul.f32 %v2477_v17, %v583_v5  ;;  %v2301_v5 = vld [vmem:[%s2818_s6 + $0xa8] sm:$0xff]  }
  0x2b   : > { %2187 = vmatpush3.bf16.msra.mxu1 %v2295_v51  ;;  %v900_v15 = vrot.slane %v899_v4, 2  ;;  %v588_v18 = vmul.f32 %v2477_v17, %v584_v6  ;;  %v589_v19 = vmul.f32 %v2477_v17, %v585_v11  ;;  %v600_v23 = vunpack.c.l.bf16 %v596_v8  ;;  %v2300_v4 = vld [vmem:[%s2818_s6 + $0x88] sm:$0xff]  }
  0x2c   : > { %2188 = vmatprep.subr.bf16.mxu1 %v2342_v1  ;;  %v590_v20 = vmul.f32 %v2477_v17, %v586_v12  ;;  %v591_v25 = vpack.c.bf16 %v587_v16, %v587_v16  ;;  %v923_v29 = vrot.slane %v915_v10, %v2490_v34  ;;  %v601_v41 = vunpack.c.l.bf16 %v597_v21 }
  0x2d   : > { %2177 = vmatpush3.bf16.msra.mxu0 %v2296_v57  ;;  %v2633_v24 = vsel %vm2584_vm8, %v900_v15, %v904_v63  ;;  %v592_v26 = vpack.c.bf16 %v588_v18, %v588_v18  ;;  %v2010_v27 = vpack.c.bf16 %v588_v18, %v587_v16  ;;  %v593_v30 = vpack.c.bf16 %v589_v19, %v589_v19 }
  0x2e   : > { %2194 = vmatprep.subr.bf16.mxu0 %v2342_v1  ;;  %v916_v28 = vcombine.low %v2622_v14, %v2633_v24  ;;  %v2011_v31 = vpack.c.bf16 %v590_v20, %v589_v19  ;;  %v594_v33 = vpack.c.bf16 %v590_v20, %v590_v20  ;;  %v1208_v36 = vrot.slane %v591_v25, %v2490_v34 }
  0x2f   : > { %2189 = vmatpush3.bf16.msra.mxu1 %v2297_v13  ;;  %v1023_v35 = vrot.slane %v2010_v27, %v2490_v34  ;;  %v1216_v45 = vrot.slane %v592_v26, %v2490_v34  ;;  %v1224_v46 = vrot.slane %v593_v30, %v2490_v34  ;;  %v602_v48 = vunpack.c.l.bf16 %v598_v32  ;;  %v2302_v26 = vld [vmem:[%s2818_s6 + $0x90] sm:$0xff]  }
  0x30   : > { %v930_v42 = vrot.slane %v916_v28, %v2490_v34  ;;  %v1030_v44 = vrot.slane %v2011_v31, %v2490_v34  ;;  %2206 = vmatprep.subr.bf16.mxu1 %v2342_v1  ;;  %v603_v51 = vsub.f32 %v599_v22, %v2463_v9  ;;  %v604_v53 = vsub.f32 %v600_v23, %v2463_v9  ;;  %v2303_v27 = vld [vmem:[%s2818_s6 + $0xb0] sm:$0xff]  }
  0x31   : > { %v605_v54 = vsub.f32 %v601_v41, %v2463_v9  ;;  %v1209_v57 = vcombine.high %v1208_v36, %v1208_v36  ;;  %v1217_v58 = vcombine.high %v1216_v45, %v1216_v45  ;;  %v606_v59 = vsub.f32 %v602_v48, %v2463_v9  ;;  %v517_v41 = vld [vmem:[%s2469_s22 + $0x10] sm:$0x7] }
  0x32   : > { %v931_v55 = vcombine.low %v923_v29, %v930_v42  ;;  %v1031_v56 = vcombine.low %v1023_v35, %v1030_v44  ;;  %v607_v60 = vmul.f32 %v2477_v17, %v603_v51  ;;  %v608_v61 = vmul.f32 %v2477_v17, %v604_v53  ;;  %v2304_v53 = vld [vmem:[%s2818_s6 + $0x98] sm:$0xff]  }
  0x33   : > { %v609_v62 = vmul.f32 %v2477_v17, %v605_v54  ;;  %v1232_v63 = vrot.slane %v594_v33, %v2490_v34  ;;  %v1235_v0 = vshrl.u32 %v1208_v36, 16  ;;  %v1238_v2 = vshll.u32 %v1208_v36, 16  ;;  %v2305_v54 = vld [vmem:[%s2818_s6 + $0xb8] sm:$0xff]  }
  0x34   : > { %2179 = vmatmul.mubr.msk.bf16.vlgmr.msra.gmra.mrb[4].mxu0 %vm677_vm1, %v931_v55  ;;  %2191 = vmatmul.mubr.msk.bf16.vlgmr.msra.gmra.mrb[4].mxu1 %vm677_vm1, %v1031_v56  ;;  %v610_v6 = vmul.f32 %v2477_v17, %v606_v59  ;;  %v1225_v7 = vcombine.high %v1224_v46, %v1224_v46  ;;  %v1244_v8 = vshll.u32 %v1209_v57, 16  ;;  %v1249_v10 = vshrl.u32 %v1216_v45, 16 }
  0x35   : > { %2195 = vmatpush3.bf16.msra.mxu0 %v2298_v43  ;;  %2207 = vmatpush3.bf16.msra.mxu1 %v2299_v47  ;;  %v1237_v11 = vrot.slane %v1235_v0, 6  ;;  %v1240_v12 = vrot.slane %v1238_v2, 7  ;;  %v1252_v13 = vshll.u32 %v1216_v45, 16  ;;  %v1258_v15 = vshll.u32 %v1217_v58, 16  ;;  %v554_v58 = vld [vmem:[%s2461_s19 + $0x10] sm:$0x7] }
  0x36   : > { %2196 = vmatprep.subr.bf16.mxu0 %v2342_v1  ;;  %2208 = vmatprep.subr.bf16.mxu1 %v2342_v1  ;;  %v2025_v16 = vpack.c.bf16 %v608_v61, %v607_v60  ;;  %v2026_v18 = vpack.c.bf16 %v610_v6, %v609_v62  ;;  %v1233_v19 = vcombine.high %v1232_v63, %v1232_v63  ;;  %v1251_v20 = vrot.slane %v1249_v10, 6  ;;  %v2306_v6 = vld [vmem:[%s2818_s6 + $0xc0] sm:$0xff]  }
  0x37   : > { %2202 = vmatprep.mubr.msk.bf16.mxu0 %vm2343_vm0, %v2342_v1  ;;  %2214 = vmatprep.mubr.msk.bf16.mxu1 %vm2343_vm0, %v2342_v1  ;;  %v1241_v21 = vor.u32 %v1240_v12, %v1237_v11  ;;  %v1246_v22 = vrot.slane %v1244_v8, 7  ;;  %v1254_v23 = vrot.slane %v1252_v13, 7  ;;  %v1263_v25 = vshrl.u32 %v1224_v46, 16 }
  0x38   : > { %v1260_v28 = vrot.slane %v1258_v15, 7  ;;  %v1266_v29 = vshll.u32 %v1224_v46, 16  ;;  %v1272_v30 = vshll.u32 %v1225_v7, 16  ;;  %v1277_v31 = vshrl.u32 %v1232_v63, 16 }
  0x39   : > { %2197 = vmatpush3.bf16.msra.mxu0 %v2300_v4  ;;  %2209 = vmatpush3.bf16.msra.mxu1 %v2301_v5  ;;  %v1242_v32 = vrot.slane %v1241_v21, 2  ;;  %v1255_v33 = vor.u32 %v1254_v23, %v1251_v20  ;;  %v1265_v35 = vrot.slane %v1263_v25, 6  ;;  %v1280_v36 = vshll.u32 %v1232_v63, 16  ;;  %v2307_v20 = vld [vmem:[%s2818_s6 + $0xe0] sm:$0xff]  }
  0x3a   : > { %2198 = vmatprep.subr.bf16.mxu0 %v2342_v1  ;;  %2210 = vmatprep.subr.bf16.mxu1 %v2342_v1  ;;  %v1123_v42 = vrot.slane %v2025_v16, %v2490_v34  ;;  %v1130_v43 = vrot.slane %v2026_v18, %v2490_v34  ;;  %v1268_v44 = vrot.slane %v1266_v29, 7  ;;  %v1279_v45 = vrot.slane %v1277_v31, 6  ;;  %v2308_v18 = vld [vmem:[%s2818_s6 + $0xc8] sm:$0xff]  }
  0x3b   : > { %v1247_v46 = vsel %vm2584_vm8, %v1242_v32, %v1246_v22  ;;  %v1256_v47 = vrot.slane %v1255_v33, 2  ;;  %v1282_v48 = vrot.slane %v1280_v36, 7  ;;  %v1286_v51 = vshll.u32 %v1233_v19, 16  ;;  %v2312_v32 = vld [vmem:[%s2818_s6 + $0xd8] sm:$0xff]   ;;  %v2311_v36 = vld [vmem:[%s2818_s6 + $0xf0] sm:$0xff]  }
  0x3c   : > { %v1269_v55 = vor.u32 %v1268_v44, %v1265_v35  ;;  %v1274_v56 = vrot.slane %v1272_v30, 7  ;;  %v522_v57 = vunpack.c.l.bf16 %v517_v41  ;;  %v1131_v2 = vcombine.low %v1123_v42, %v1130_v43  ;;  %v2309_v30 = vld [vmem:[%s2818_s6 + $0xe8] sm:$0xff]   ;;  %v2313_v44 = vld [vmem:[%s2818_s6 + $0xf8] sm:$0xff]  }
  0x3d   : > { %2199 = vmatpush3.bf16.msra.mxu0 %v2302_v26  ;;  %2211 = vmatpush3.bf16.msra.mxu1 %v2303_v27  ;;  %v1261_v59 = vsel %vm2584_vm8, %v1256_v47, %v1260_v28  ;;  %v1283_v60 = vor.u32 %v1282_v48, %v1279_v45  ;;  %v1288_v61 = vrot.slane %v1286_v51, 7  ;;  %v559_v5 = vunpack.c.l.bf16 %v554_v58  ;;  %v2310_v27 = vld [vmem:[%s2818_s6 + $0xd0] sm:$0xff]  }
  0x3e   : > { %2200 = vmatprep.subr.bf16.mxu0 %v2342_v1  ;;  %2212 = vmatprep.subr.bf16.mxu1 %v2342_v1  ;;  %v1270_v62 = vrot.slane %v1269_v55, 2  ;;  %v1299_v63 = vcombine.low %v1247_v46, %v1261_v59  ;;  %v533_v0 = vsub.f32 %v522_v57, %v2463_v9  ;;  %v2053_v22 = vpack.c.bf16 %v2517_v50, %v2514_v49  ;;  %v2315_v46 = vld [vmem:[%s2818_s6 + $0x108] sm:$0xff]  }
  0x3f   : > { %v1284_v4 = vrot.slane %v1283_v60, 2  ;;  %v564_v15 = vsub.f32 %v559_v5, %v2463_v9  ;;  %v1611_v48 = vcombine.low %v2608_v3, %v2622_v14  ;;  %v2317_v3 = vld [vmem:[%s2818_s6 + $0x118] sm:$0xff]  }
  0x40   : > { %v1275_v7 = vsel %vm2584_vm8, %v1270_v62, %v1274_v56  ;;  %v544_v8 = vmul.f32 %v2477_v17, %v533_v0  ;;  %v1307_v12 = vrot.slane %v1299_v63, %v2490_v34 }
  0x41   : > { %2201 = vmatpush3.bf16.msra.mxu0 %v2304_v53  ;;  %2213 = vmatpush3.bf16.msra.mxu1 %v2305_v54  ;;  %v1289_v10 = vsel %vm2584_vm8, %v1284_v4, %v1288_v61  ;;  %v569_v26 = vmul.f32 %v2477_v17, %v564_v15  ;;  %v1404_v17 = vrot.slane %v2053_v22, %v2490_v34  ;;  %v2316_v53 = vld [vmem:[%s2818_s6 + $0x110] sm:$0xff]  }
  0x42   : > { %2218 = vmatprep.subr.bf16.mxu0 %v2342_v1  ;;  %2230 = vmatprep.subr.bf16.mxu1 %v2342_v1  ;;  %v1300_v11 = vcombine.low %v1275_v7, %v1289_v10  ;;  %v549_v13 = vpack.c.bf16 %v544_v8, %v544_v8  ;;  %v2054_v23 = vpack.c.bf16 %v544_v8, %v2521_v52 }
  0x43   : > { %v2068_v52 = vpack.c.bf16 %v2497_v38, %v2494_v37  ;;  %v2069_v31 = vpack.c.bf16 %v569_v26, %v2501_v40  ;;  %v2314_v37 = vld [vmem:[%s2818_s6 + $0x100] sm:$0xff]   ;;  %v1619_v39 = vrot.slane %v1611_v48, %v2490_v34 }
  0x44   : > { %2203 = vmatmul.mubr.msk.bf16.vlgmr.msra.gmra.mrb[8].mxu0 %vm677_vm1, %v1131_v2  ;;  %v1314_v16 = vrot.slane %v1300_v11, %v2490_v34  ;;  %v1586_v19 = vrot.slane %v549_v13, %v2490_v34  ;;  %v1411_v50 = vrot.slane %v2054_v23, %v2490_v34 }
  0x45   : > { %2219 = vmatpush3.bf16.msra.mxu0 %v2306_v6  ;;  %2226 = vmatprep.mubr.msk.bf16.mxu0 %vm2343_vm0, %v2342_v1  ;;  %v1501_v38 = vrot.slane %v2068_v52, %v2490_v34  ;;  %v1508_v40 = vrot.slane %v2069_v31, %v2490_v34 }
  0x46   : > { %2220 = vmatprep.subr.bf16.mxu0 %v2342_v1  ;;  %v1315_v21 = vcombine.low %v1307_v12, %v1314_v16  ;;  %v1589_v9 = vshrl.u32 %v1586_v19, 16  ;;  %v1592_v25 = vshll.u32 %v1586_v19, 16  ;;  %v1587_v28 = vcombine.high %v1586_v19, %v1586_v19 }
  0x47   : > { %v1412_v41 = vcombine.low %v1404_v17, %v1411_v50  ;;  %v1509_v45 = vcombine.low %v1501_v38, %v1508_v40 }
  0x48   : > { %2215 = vmatmul.mubr.msk.bf16.vlgmr.msra.gmra.mrb[8].mxu1 %vm677_vm1, %v1315_v21  ;;  %v1591_v29 = vrot.slane %v1589_v9, 6  ;;  %v1594_v49 = vrot.slane %v1592_v25, 7  ;;  %v1598_v35 = vshll.u32 %v1587_v28, 16 }
  0x49   : > { %2221 = vmatpush3.bf16.msra.mxu0 %v2308_v18  ;;  %2231 = vmatpush3.bf16.msra.mxu1 %v2307_v20 }
  0x4a   : > { %2222 = vmatprep.subr.bf16.mxu0 %v2342_v1  ;;  %2232 = vmatprep.subr.bf16.mxu1 %v2342_v1  ;;  %v1595_v33 = vor.u32 %v1594_v49, %v1591_v29  ;;  %v1600_v43 = vrot.slane %v1598_v35, 7 }
  0x4b   : > { %2238 = vmatprep.mubr.msk.bf16.mxu1 %vm2343_vm0, %v2342_v1 }
  0x4c   : > { %v1596_v42 = vrot.slane %v1595_v33, 2 }
  0x4d   : > { %2223 = vmatpush3.bf16.msra.mxu0 %v2310_v27  ;;  %2233 = vmatpush3.bf16.msra.mxu1 %v2309_v30 }
  0x4e   : > { %2224 = vmatprep.subr.bf16.mxu0 %v2342_v1  ;;  %2234 = vmatprep.subr.bf16.mxu1 %v2342_v1  ;;  %v1601_v47 = vsel %vm2584_vm8, %v1596_v42, %v1600_v43 }
  0x4f   : > { %v1612_v51 = vcombine.low %v2633_v24, %v1601_v47 }
  0x51   : > { %2225 = vmatpush3.bf16.msra.mxu0 %v2312_v32  ;;  %2235 = vmatpush3.bf16.msra.mxu1 %v2311_v36  ;;  %v1626_v54 = vrot.slane %v1612_v51, %v2490_v34 }
  0x52   : > { %2242 = vmatprep.subr.bf16.mxu0 %v2342_v1  ;;  %2236 = vmatprep.subr.bf16.mxu1 %v2342_v1 }
  0x53   : > { %v1627_v14 = vcombine.low %v1619_v39, %v1626_v54 }
  0x54   : > { %2227 = vmatmul.mubr.msk.bf16.vlgmr.msra.gmra.mrb[12].mxu0 %vm677_vm1, %v1412_v41  ;;  %v2088_v41 = vld [vmem:[%s2819_s7] ss:$0 sm:$0xff] }
  0x55   : > { %2243 = vmatpush3.bf16.msra.mxu0 %v2314_v37  ;;  %2250 = vmatprep.mubr.msk.bf16.mxu0 %vm2343_vm0, %v2342_v1 }
  0x56   : > { %2237 = vmatpush3.bf16.msra.mxu1 %v2313_v44  ;;  %2244 = vmatprep.subr.bf16.mxu0 %v2342_v1 }
  0x59   : > { %2239 = vmatmul.mubr.msk.bf16.vlgmr.msra.gmra.mrb[12].mxu1 %vm677_vm1, %v1509_v45  ;;  %2245 = vmatpush3.bf16.msra.mxu0 %v2315_v46 }
  0x5a   : > { %2246 = vmatprep.subr.bf16.mxu0 %v2342_v1 }
  0x5d   : > { %2247 = vmatpush3.bf16.msra.mxu0 %v2316_v53 }
  0x5e   : > { %2248 = vmatprep.subr.bf16.mxu0 %v2342_v1 }
  0x61   : > { %2249 = vmatpush3.bf16.msra.mxu0 %v2317_v3 }
  0x64   : > { %2251 = vmatmul.mubr.msk.bf16.vlgmr.msra.gmra.mrb[16].mxu0 %vm677_vm1, %v1627_v14 }
  0xf3   : > { %v715_v34 = vpop.f32.mrb[0].mxu0 }
  0xf4   : > { %v2156_v24 = vpop.f32.mrb[1].mxu0 }
  0xf5   : > { %v718_v55 = vpop.f32.mrb[2].mxu0  ;;  %v804_v57 = vpop.f32.mrb[0].mxu1 }
  0xf6   : > { %v2157_v56 = vpop.f32.mrb[3].mxu0  ;;  %v805_v58 = vadd.f32 %v804_v57, %v715_v34  ;;  %v2168_v59 = vpop.f32.mrb[1].mxu1 }
  0xf7   : > { %v807_v60 = vpop.f32.mrb[2].mxu1 }
  0xf8   : > { %v808_v61 = vadd.f32 %v807_v60, %v718_v55  ;;  %v2169_v62 = vpop.f32.mrb[3].mxu1 }
 0x107   : > { %v993_v63 = vpop.f32.mrb[4].mxu0  ;;  %v1093_v0 = vpop.f32.mrb[4].mxu1 }
 0x108   : > { %v1000_v2 = vadd.f32 %v993_v63, %v805_v58  ;;  %v2180_v4 = vpop.f32.mrb[5].mxu0  ;;  %v2192_v5 = vpop.f32.mrb[5].mxu1 }
 0x109   : > { %v996_v6 = vpop.f32.mrb[6].mxu0  ;;  %v1096_v7 = vpop.f32.mrb[6].mxu1 }
 0x10a   : > { %v1001_v8 = vadd.f32 %v996_v6, %v808_v61  ;;  %v1100_v10 = vadd.f32 %v1093_v0, %v1000_v2  ;;  %v2181_v1 = vpop.f32.mrb[7].mxu0  ;;  %v2193_v11 = vpop.f32.mrb[7].mxu1  ;;  %v1746_v2 = vld [vmem:[%s2790_s28] sm:$0x3] }
 0x10c   : > { %v1101_v12 = vadd.f32 %v1096_v7, %v1001_v8 }
 0x117   : > { %v1193_v13 = vpop.f32.mrb[8].mxu0 }
 0x118   : > { %v1200_v15 = vadd.f32 %v1193_v13, %v1100_v10  ;;  %v2204_v16 = vpop.f32.mrb[9].mxu0 }
 0x119   : > { %v1196_v18 = vpop.f32.mrb[10].mxu0 }
 0x11a   : > { %v1201_v19 = vadd.f32 %v1196_v18, %v1101_v12  ;;  %v2205_v20 = vpop.f32.mrb[11].mxu0 }
 0x11b   : > { %v1377_v21 = vpop.f32.mrb[8].mxu1 }
 0x11c   : > { %v1384_v9 = vadd.f32 %v1377_v21, %v1200_v15  ;;  %v2216_v22 = vpop.f32.mrb[9].mxu1 }
 0x11d   : > { %v1380_v23 = vpop.f32.mrb[10].mxu1 }
 0x11e   : > { %v1385_v25 = vadd.f32 %v1380_v23, %v1201_v19  ;;  %v2217_v26 = vpop.f32.mrb[11].mxu1 }
 0x127   : > { %v1474_v27 = vpop.f32.mrb[12].mxu0 }
 0x128   : > { %v1481_v28 = vadd.f32 %v1474_v27, %v1384_v9  ;;  %v2228_v29 = vpop.f32.mrb[13].mxu0 }
 0x129   : > { %v1477_v30 = vpop.f32.mrb[14].mxu0 }
 0x12a   : > { %v1482_v49 = vadd.f32 %v1477_v30, %v1385_v25  ;;  %v2229_v17 = vpop.f32.mrb[15].mxu0 }
 0x12c   : > { %v1571_v50 = vpop.f32.mrb[12].mxu1 }
 0x12d   : > { %v1578_v52 = vadd.f32 %v1571_v50, %v1481_v28  ;;  %v2240_v31 = vpop.f32.mrb[13].mxu1 }
 0x12e   : > { %v1574_v32 = vpop.f32.mrb[14].mxu1 }
 0x12f   : > { %v1579_v33 = vadd.f32 %v1574_v32, %v1482_v49  ;;  %v2241_v35 = vpop.f32.mrb[15].mxu1 }
 0x137   : > { %v1689_v36 = vpop.f32.mrb[16].mxu0 }
 0x138   : > { %v1696_v37 = vadd.f32 %v1689_v36, %v1578_v52  ;;  %v2252_v38 = vpop.f32.mrb[17].mxu0 }
 0x139   : > { %v1692_v40 = vpop.f32.mrb[18].mxu0 }
 0x13a   : > { %v1705_v42 = vadd.f32 %v2088_v41, %v1696_v37  ;;  %v1697_v43 = vadd.f32 %v1692_v40, %v1579_v33  ;;  %v2253_v44 = vpop.f32.mrb[19].mxu0 }
 0x13c   : > { %vm1707_vm9 = vcmp.ge.f32.partialorder %v1705_v42, 0.0  ;;  %v1709_v45 = vmul.f32 0.01, %v1705_v42  ;;  %v1706_v46 = vadd.f32 %v2088_v41, %v1697_v43 }
 0x13e   : > { %v1711_v47 = vsel %vm1707_vm9, %v1705_v42, %v1709_v45  ;;  %vm1708_vm10 = vcmp.ge.f32.partialorder %v1706_v46, 0.0  ;;  %v1710_v48 = vmul.f32 0.01, %v1706_v46 }
 0x13f   : > { %v1730_v53 = vmul.f32 %v1711_v47, %v1711_v47 }
 0x140   : > { %v1712_v51 = vsel %vm1708_vm10, %v1706_v46, %v1710_v48 }
 0x141   : > { %v2099_v39 = vpack.c.bf16 %v1712_v51, %v1711_v47  ;;  %v1723_v54 = vadd.f32 %v1712_v51, %v1711_v47  ;;  %v1731_v3 = vmul.f32 %v1712_v51, %v1712_v51 }
 0x143   : > { %2100 = vst [vmem:[%s505_s15] sm:$0xff] %v2099_v39   ;;  %v1724_v14 = vrot.slane %v1723_v54, 4  ;;  %v1732_v34 = vadd.f32 %v1731_v3, %v1730_v53 }
 0x145   : > { %v1725_v24 = vadd.f32 %v1724_v14, %v1723_v54  ;;  %v1733_v55 = vrot.slane %v1732_v34, 4 }
 0x147   : > { %v1726_v56 = vrot.slane %v1725_v24, 2  ;;  %v1734_v57 = vadd.f32 %v1733_v55, %v1732_v34 }
 0x149   : > { %v1727_v58 = vadd.f32 %v1726_v56, %v1725_v24  ;;  %v1735_v59 = vrot.slane %v1734_v57, 2 }
 0x14b   : > { %v1728_v60 = vrot.slane %v1727_v58, 1  ;;  %v1736_v61 = vadd.f32 %v1735_v59, %v1734_v57 }
 0x14d   : > { %v1737_v62 = vrot.slane %v1736_v61, 1  ;;  %v1729_v63 = vadd.f32 %v1728_v60, %v1727_v58 }
 0x14f   : > { %v1738_v0 = vadd.f32 %v1737_v62, %v1736_v61 }
 0x151   : > { %v1740_v4 = vsel %vm1739_vm11, %v1729_v63, %v1738_v0 }
 0x152   : > { %v1747_v5 = vadd.f32 %v1746_v2, %v1740_v4 }
 0x154   : > { %1748 = vst [vmem:[%s2790_s28] sm:$0x3] %v1747_v5 }
 0x155 PF: > { %s20_s11 = sadd.s32 1, %s2340_s11   ;;  %s2828_s30 = smov %s2336_s10 }
 0x156   : > { %p17_p5 = scmp.ge.s32.totalorder %s20_s11, 4   ;;  %s2829_s10 = smov %s2831_s12 }
 0x158   :  { %19 = sbr.rel (!%p17_p5) target bundleno = 2 (0x2), region = 121 }

// kernel: discriminator_forward.5
= control target key start
LH: loop header
LB: loop body
LE: loop exit
PB: predicated region body
PF: predicated region fallthrough
CT: control target
= control target key end

     0   :  { %s2313_s18 = smov 0   ;;  %s2315_s19 = smov 0   ;;  %s2782_s0 = inlined_call_operand.vmem [shape: bf16[2,1,4,4,128], index: 0, kind: input, shape index: {}]   ;;  %s2783_s1 = inlined_call_operand.vmem [shape: f32[2,1,128], index: 1, kind: input, shape index: {}]   ;;  %s2784_s2 = inlined_call_operand.vmem [shape: f32[2,1,128], index: 2, kind: input, shape index: {}]   ;;  %s2785_s3 = inlined_call_operand.vmem [shape: bf16[9,128,128], index: 3, kind: input, shape index: {}]   ;;  %s2786_s4 = inlined_call_operand.vmem [shape: f32[1,128], index: 4, kind: input, shape index: {}]   ;;  %s2787_s5 = inlined_call_operand.vmem [shape: f32[2,1,4,128], index: 5, kind: output, shape index: {}]  }
   0x1   :  { %s2317_s20 = smov 0  }
   0x2 LB: > { %s27_s21 = sadd.s32 1, %s2274_s19  ;;  %p1675_p0 = scmp.ge.s32.totalorder %s2278_s20, 1  ;;  %s2278_s20 = sphi %s2317_s20, %s15_s20   ;;  %s2274_s19 = sphi %s2315_s19, %s2791_s19   ;;  %s2270_s18 = sphi %s2313_s18, %s2790_s18  }
   0x3   : > { %p29_p1 = scmp.ge.s32.totalorder %s27_s21, 2  ;;  %p223_p2 = scmp.lt.s32.totalorder %s2278_s20, 3 }
   0x5   : > { %s2793_s21 = smov (%p29_p1, %s27_s21), 0  ;;  %p224_p3 = pnand %p1675_p0, %p223_p2 }
   0x6   : > { %v2180_v0 = vld [vmem:[%s2785_s3 + $0x40] sm:$0xff] (!%p224_p3)   ;;  %v2280_v1 = vmov (!%p224_p3), 0.0   ;;  %v2182_v3 = vld [vmem:[%s2785_s3 + $0x48] sm:$0xff] (!%p224_p3)   ;;  %vm2281_vm0 = vmmov (!%p224_p3), 0   ;;  %p263_p4 = scmp.lt.s32.totalorder (!%p224_p3), %s2270_s18, 1  ;;  %v2184_v5 = vld [vmem:[%s2785_s3 + $0x50] sm:$0xff] (!%p224_p3)   ;;  %v341_v9 = vlaneseq (!%p224_p3) }
   0x7   : > { %227 = sbr.rel (%p224_p3) target bundleno = 415 (0x19f), region = 40  ;;  %1973 = vmatprep.subr.bf16.mxu0 (!%p224_p3), %v2280_v1  ;;  %1993 = vmatprep.subr.bf16.mxu1 (!%p224_p3), %v2280_v1  ;;  %v2181_v2 = vld [vmem:[%s2785_s3] sm:$0xff] (!%p224_p3)   ;;  %v2183_v4 = vld [vmem:[%s2785_s3 + $0x8] sm:$0xff] (!%p224_p3)   ;;  %v2185_v6 = vld [vmem:[%s2785_s3 + $0x10] sm:$0xff] (!%p224_p3)   ;;  %v2282_v23 = vmov (!%p224_p3), 1966171168  }
   0x8   : > { %1974 = vmatpush3.bf16.msra.mxu0 (!%p224_p3), %v2180_v0  ;;  %1989 = vmatprep.mubr.msk.bf16.mxu0 (!%p224_p3), %vm2281_vm0, %v2280_v1  ;;  %v2186_v7 = vld [vmem:[%s2785_s3 + $0x58] sm:$0xff] (!%p224_p3)   ;;  %v2188_v10 = vld [vmem:[%s2785_s3 + $0x60] sm:$0xff] (!%p224_p3)   ;;  %v342_v12 = vshrl.u32 (!%p224_p3), %v341_v9, 7  ;;  %v2190_v13 = vld [vmem:[%s2785_s3 + $0x68] sm:$0xff] (!%p224_p3)   ;;  %v339_v24 = vunpack.c.l.s4 (!%p224_p3), %v2282_v23  ;;  %vm382_vm1 = vsmask.f32 (!%p224_p3), 256 }
   0x9   : > { %1994 = vmatpush3.bf16.msra.mxu1 (!%p224_p3), %v2181_v2  ;;  %1975 = vmatprep.subr.bf16.mxu0 (!%p224_p3), %v2280_v1  ;;  %v2187_v8 = vld [vmem:[%s2785_s3 + $0x18] sm:$0xff] (!%p224_p3)   ;;  %v2189_v11 = vld [vmem:[%s2785_s3 + $0x20] sm:$0xff] (!%p224_p3)   ;;  %v2191_v17 = vld [vmem:[%s2785_s3 + $0x28] sm:$0xff] (!%p224_p3)   ;;  %vm383_vm2 = vsmask.f32 (!%p224_p3), 1284 }
   0xa   : > { %1995 = vmatprep.subr.bf16.mxu1 (!%p224_p3), %v2280_v1  ;;  %2009 = vmatprep.mubr.msk.bf16.mxu1 (!%p224_p3), %vm2281_vm0, %v2280_v1  ;;  %vm385_vm3 = vsmask.f32 (!%p224_p3), 2312  ;;  %vm387_vm4 = vsmask.f32 (!%p224_p3), 3340  ;;  %v340_v28 = vunpack.c.0.s8 (!%p224_p3), %v339_v24  ;;  %vm384_vm5 = vmor (!%p224_p3), %vm382_vm1, %vm383_vm2  ;;  %vm389_vm6 = vsmask.f32 (!%p224_p3), 4368 }
   0xb   : > { %v2192_v29 = vld [vmem:[%s2785_s3 + $0x70] sm:$0xff] (!%p224_p3)   ;;  %vm386_vm7 = vmor (!%p224_p3), %vm384_vm5, %vm385_vm3  ;;  %vm391_vm8 = vsmask.f32 (!%p224_p3), 5396  ;;  %vm393_vm12 = vsmask.f32 (!%p224_p3), 6424  ;;  %v2194_v39 = vld [vmem:[%s2785_s3 + $0x78] sm:$0xff] (!%p224_p3)  }
   0xc   : > { %1976 = vmatpush3.bf16.msra.mxu0 (!%p224_p3), %v2182_v3  ;;  %v2193_v31 = vld [vmem:[%s2785_s3 + $0x30] sm:$0xff] (!%p224_p3)   ;;  %v2422_v34 = vsub.s32 (!%p224_p3), %v340_v28, %v342_v12  ;;  %vm388_vm9 = vmor (!%p224_p3), %vm386_vm7, %vm387_vm4  ;;  %v2195_v41 = vld [vmem:[%s2785_s3 + $0x38] sm:$0xff] (!%p224_p3)   ;;  %vm395_vm14 = vsmask.f32 (!%p224_p3), 7452 }
   0xd   : > { %1996 = vmatpush3.bf16.msra.mxu1 (!%p224_p3), %v2183_v4  ;;  %1977 = vmatprep.subr.bf16.mxu0 (!%p224_p3), %v2280_v1  ;;  %vm390_vm10 = vmor (!%p224_p3), %vm388_vm9, %vm389_vm6  ;;  %v2197_v60 = vld [vmem:[%s2785_s3 + $0xc0] sm:$0xff] (!%p224_p3)   ;;  %v2201_v9 = vld [vmem:[%s2785_s3 + $0xd0] sm:$0xff] (!%p224_p3)  }
   0xe   : > { %s2795_s18 = smov (!%p263_p4, %s2270_s18), 1  ;;  %1997 = vmatprep.subr.bf16.mxu1 %v2280_v1  ;;  %vm392_vm11 = vmor %vm390_vm10, %vm391_vm8  ;;  %v2200_v12 = vld [vmem:[%s2785_s3 + $0x90] sm:$0xff]   ;;  %v2211_v23 = vld [vmem:[%s2785_s3 + $0xf8] sm:$0xff]  }
   0xf   : > { %s1891_s11 = sshll.u32 %s2795_s18, 3  ;;  %s274_s16 = scalar_lea.vmem %s2783_s1, %s2795_s18  ;;  %vm394_vm13 = vmor %vm392_vm11, %vm393_vm12  ;;  %v2224_v55 = vld [vmem:[%s2785_s3 + $0x130] sm:$0xff]  }
  0x10   : > { %1978 = vmatpush3.bf16.msra.mxu0 %v2184_v5  ;;  %s2377_s23 = scalar_lea.vmem %s2782_s0, %s1891_s11  ;;  %s277_s26 = scalar_lea.vmem %s2784_s2, %s2795_s18  ;;  %v2394_v14 = vld [vmem:[%s274_s16] ss:$0 sm:$0xff]  ;;  %vm2454_vm15 = vmor %vm394_vm13, %vm395_vm14  ;;  %v2199_v5 = vld [vmem:[%s2785_s3 + $0xc8] sm:$0xff]  }
  0x11   : > { %1998 = vmatpush3.bf16.msra.mxu1 %v2185_v6  ;;  %1979 = vmatprep.subr.bf16.mxu0 %v2280_v1  ;;  %v2396_v15 = vld [vmem:[%s277_s26] ss:$0 sm:$0xff]  ;;  %v289_v18 = vld [vmem:[%s2377_s23 + $0x2] sm:$0x3]  ;;  %v290_v19 = vld [vmem:[%s2377_s23 + $0x4] sm:$0x3] }
  0x12   : > { %1999 = vmatprep.subr.bf16.mxu1 %v2280_v1  ;;  %v288_v16 = vld [vmem:[%s2377_s23] sm:$0x3]  ;;  %v293_v21 = vunpack.c.l.bf16 %v289_v18  ;;  %v294_v22 = vunpack.c.l.bf16 %v290_v19  ;;  %s1678_s8 = sshll.u32 %s2795_s18, 2 }
  0x13   : > { %v292_v20 = vunpack.c.l.bf16 %v288_v16  ;;  %v2202_v16 = vld [vmem:[%s2785_s3 + $0x98] sm:$0xff]   ;;  %v2204_v18 = vld [vmem:[%s2785_s3 + $0xa0] sm:$0xff]   ;;  %s284_s11 = scalar_lea.vmem %s2787_s5, %s1678_s8 }
  0x14   : > { %1980 = vmatpush3.bf16.msra.mxu0 %v2186_v7  ;;  %v303_v26 = vsub.f32 %v293_v21, %v2394_v14  ;;  %v304_v27 = vsub.f32 %v294_v22, %v2394_v14  ;;  %v2196_v7 = vld [vmem:[%s2785_s3 + $0x80] sm:$0xff]   ;;  %v2206_v21 = vld [vmem:[%s2785_s3 + $0xa8] sm:$0xff]  }
  0x15   : > { %2000 = vmatpush3.bf16.msra.mxu1 %v2187_v8  ;;  %1981 = vmatprep.subr.bf16.mxu0 %v2280_v1  ;;  %v302_v25 = vsub.f32 %v292_v20, %v2394_v14  ;;  %v2209_v20 = vld [vmem:[%s2785_s3 + $0xf0] sm:$0xff]  }
  0x16   : > { %2001 = vmatprep.subr.bf16.mxu1 %v2280_v1  ;;  %v2417_v32 = vmul.f32 %v2396_v15, %v303_v26  ;;  %v2420_v33 = vmul.f32 %v2396_v15, %v304_v27  ;;  %v2213_v27 = vld [vmem:[%s2785_s3 + $0x140] sm:$0xff]  }
  0x17   : > { %v312_v30 = vmul.f32 %v2396_v15, %v302_v25  ;;  %v2208_v25 = vld [vmem:[%s2785_s3 + $0xb0] sm:$0xff]  }
  0x18   : > { %1982 = vmatpush3.bf16.msra.mxu0 %v2188_v10  ;;  %v317_v36 = vpack.c.bf16 %v2417_v32, %v2417_v32  ;;  %v318_v37 = vpack.c.bf16 %v2420_v33, %v2420_v33  ;;  %v2198_v10 = vld [vmem:[%s2785_s3 + $0x88] sm:$0xff]   ;;  %v1756_v19 = vpack.c.bf16 %v2420_v33, %v2417_v32 }
  0x19   : > { %2002 = vmatpush3.bf16.msra.mxu1 %v2189_v11  ;;  %1983 = vmatprep.subr.bf16.mxu0 %v2280_v1  ;;  %v316_v35 = vpack.c.bf16 %v312_v30, %v312_v30  ;;  %v1707_v38 = vpack.c.bf16 %v2417_v32, %v312_v30  ;;  %v2203_v11 = vld [vmem:[%s2785_s3 + $0xd8] sm:$0xff]   ;;  %v2215_v30 = vld [vmem:[%s2785_s3 + $0x148] sm:$0xff]   ;;  %v2212_v32 = vld [vmem:[%s2785_s3 + $0x100] sm:$0xff]  }
  0x1a   : > { %2003 = vmatprep.subr.bf16.mxu1 %v2280_v1  ;;  %v366_v42 = vrot.slane %v317_v36, %v2422_v34  ;;  %v891_v43 = vrot.slane %v318_v37, %v2422_v34  ;;  %v787_v22 = vrot.slane %v1756_v19, %v2422_v34  ;;  %v2217_v36 = vld [vmem:[%s2785_s3 + $0x150] sm:$0xff]  }
  0x1b   : > { %v344_v40 = vrot.slane %v316_v35, %v2422_v34  ;;  %v543_v44 = vrot.slane %v1707_v38, %v2422_v34  ;;  %v291_v35 = vld [vmem:[%s2377_s23 + $0x6] sm:$0x3] }
  0x1c   : > { %1984 = vmatpush3.bf16.msra.mxu0 %v2190_v13  ;;  %v367_v47 = vcombine.high %v366_v42, %v366_v42  ;;  %v374_v48 = vrot.slane %v366_v42, %v2422_v34  ;;  %v892_v49 = vcombine.high %v891_v43, %v891_v43  ;;  %v899_v50 = vrot.slane %v891_v43, %v2422_v34  ;;  %v2205_v13 = vld [vmem:[%s2785_s3 + $0xe0] sm:$0xff]   ;;  %v2216_v43 = vld [vmem:[%s2785_s3 + $0x110] sm:$0xff]  }
  0x1d   : > { %2004 = vmatpush3.bf16.msra.mxu1 %v2191_v17  ;;  %1985 = vmatprep.subr.bf16.mxu0 %v2280_v1  ;;  %v345_v45 = vcombine.high %v344_v40, %v344_v40  ;;  %v352_v46 = vrot.slane %v344_v40, %v2422_v34  ;;  %v550_v53 = vrot.slane %v543_v44, %v2422_v34  ;;  %v2207_v17 = vld [vmem:[%s2785_s3 + $0xe8] sm:$0xff]   ;;  %v295_v37 = vunpack.c.l.bf16 %v291_v35  ;;  %v2219_v40 = vld [vmem:[%s2785_s3 + $0x158] sm:$0xff]  }
  0x1e   : > { %2005 = vmatprep.subr.bf16.mxu1 %v2280_v1  ;;  %v2452_v54 = vrot.slane %v367_v47, %v2422_v34  ;;  %v407_v56 = vshrl.u32 %v374_v48, 16  ;;  %v2459_v57 = vrot.slane %v892_v49, %v2422_v34  ;;  %v908_v58 = vshrl.u32 %v899_v50, 16  ;;  %v2218_v47 = vld [vmem:[%s2785_s3 + $0x118] sm:$0xff]   ;;  %v2223_v48 = vld [vmem:[%s2785_s3 + $0x168] sm:$0xff]  }
  0x1f   : > { %v2448_v51 = vrot.slane %v345_v45, %v2422_v34  ;;  %v398_v52 = vshrl.u32 %v352_v46, 16  ;;  %v794_v26 = vrot.slane %v787_v22, %v2422_v34  ;;  %v305_v38 = vsub.f32 %v295_v37, %v2394_v14  ;;  %v2251_v35 = vld [vmem:[%s2785_s3 + $0x238] sm:$0xff]  }
  0x20   : > { %1986 = vmatpush3.bf16.msra.mxu0 %v2192_v29  ;;  %v412_v61 = vshll.u32 %v2452_v54, 16  ;;  %v913_v62 = vshll.u32 %v2459_v57, 16  ;;  %v2210_v29 = vld [vmem:[%s2785_s3 + $0xb8] sm:$0xff]  }
  0x21   : > { %2006 = vmatpush3.bf16.msra.mxu1 %v2193_v31  ;;  %1987 = vmatprep.subr.bf16.mxu0 %v2280_v1  ;;  %v403_v59 = vshll.u32 %v2448_v51, 16  ;;  %v657_v24 = vcombine.low %v2448_v51, %v2452_v54 }
  0x22   : > { %2007 = vmatprep.subr.bf16.mxu1 %v2280_v1  ;;  %v2473_v0 = vsel %vm2454_vm15, %v407_v56, %v412_v61  ;;  %v2477_v2 = vsel %vm2454_vm15, %v908_v58, %v913_v62  ;;  %v1055_v56 = vcombine.low %v2452_v54, %v2459_v57  ;;  %v2225_v58 = vld [vmem:[%s2785_s3 + $0x170] sm:$0xff]   ;;  %v2222_v61 = vld [vmem:[%s2785_s3 + $0x128] sm:$0xff]   ;;  %v2227_v62 = vld [vmem:[%s2785_s3 + $0x178] sm:$0xff]  }
  0x23   : > { %v405_v63 = vsel %vm2454_vm15, %v398_v52, %v403_v59  ;;  %v933_v4 = vcombine.low %v2473_v0, %v2477_v2  ;;  %v664_v28 = vrot.slane %v657_v24, %v2422_v34  ;;  %v2242_v24 = vld [vmem:[%s2785_s3 + $0x1b8] sm:$0xff]  }
  0x24   : > { %1988 = vmatpush3.bf16.msra.mxu0 %v2194_v39  ;;  %v432_v3 = vcombine.low %v405_v63, %v2473_v0  ;;  %v2214_v39 = vld [vmem:[%s2785_s3 + $0x108] sm:$0xff]   ;;  %v1062_v54 = vrot.slane %v1055_v56, %v2422_v34 }
  0x25   : > { %2008 = vmatpush3.bf16.msra.mxu1 %v2195_v41  ;;  %2013 = vmatprep.subr.bf16.mxu0 %v2280_v1  ;;  %v671_v31 = vrot.slane %v664_v28, %v2422_v34  ;;  %v2585_v41 = vmul.f32 %v2396_v15, %v305_v38  ;;  %v2221_v15 = vld [vmem:[%s2785_s3 + $0x160] sm:$0xff]   ;;  %v2247_v28 = vld [vmem:[%s2785_s3 + $0x218] sm:$0xff]  }
  0x26   : > { %2033 = vmatprep.subr.bf16.mxu1 %v2280_v1  ;;  %v439_v6 = vrot.slane %v432_v3, %v2422_v34  ;;  %v1069_v63 = vrot.slane %v1062_v54, %v2422_v34  ;;  %v2229_v3 = vld [vmem:[%s2785_s3 + $0x1c0] sm:$0xff]  }
  0x27   : > { %v319_v14 = vpack.c.bf16 %v2585_v41, %v2585_v41  ;;  %v1830_v42 = vpack.c.bf16 %v2585_v41, %v2420_v33  ;;  %v2245_v33 = vld [vmem:[%s2785_s3 + $0x208] sm:$0xff]  }
  0x28   : > { %2010 = vmatmul.mubr.bf16.vlgmr.msra.gmra.mrb[0].mxu1 %v550_v53  ;;  %v446_v8 = vrot.slane %v439_v6, %v2422_v34  ;;  %v2220_v53 = vld [vmem:[%s2785_s3 + $0x120] sm:$0xff]   ;;  %v2226_v6 = vld [vmem:[%s2785_s3 + $0x138] sm:$0xff]  }
  0x29   : > { %2034 = vmatpush3.bf16.msra.mxu1 %v2197_v60  ;;  %2049 = vmatprep.mubr.msk.bf16.mxu1 %vm2281_vm0, %v2280_v1  ;;  %v1289_v44 = vrot.slane %v319_v14, %v2422_v34 }
  0x2a   : > { %2035 = vmatprep.subr.bf16.mxu1 %v2280_v1  ;;  %1990 = vmatmul.mubr.bf16.vlgmr.msra.gmra.mrb[0].mxu0 %v446_v8  ;;  %v2230_v8 = vld [vmem:[%s2785_s3 + $0x188] sm:$0xff]  }
  0x2b   : > { %2014 = vmatpush3.bf16.msra.mxu0 %v2196_v7  ;;  %2029 = vmatprep.mubr.msk.bf16.mxu0 %vm2281_vm0, %v2280_v1  ;;  %v1290_v45 = vcombine.high %v1289_v44, %v1289_v44  ;;  %v1297_v46 = vrot.slane %v1289_v44, %v2422_v34  ;;  %v2231_v7 = vld [vmem:[%s2785_s3 + $0x1c8] sm:$0xff]  }
  0x2c   : > { %2015 = vmatprep.subr.bf16.mxu0 %v2280_v1 }
  0x2d   : > { %2036 = vmatpush3.bf16.msra.mxu1 %v2199_v5  ;;  %v2610_v49 = vrot.slane %v1290_v45, %v2422_v34  ;;  %v1306_v50 = vshrl.u32 %v1297_v46, 16  ;;  %v940_v5 = vrot.slane %v933_v4, %v2422_v34  ;;  %v2233_v4 = vld [vmem:[%s2785_s3 + $0x1d0] sm:$0xff]  }
  0x2e   : > { %2037 = vmatprep.subr.bf16.mxu1 %v2280_v1 }
  0x2f   : > { %2016 = vmatpush3.bf16.msra.mxu0 %v2198_v10  ;;  %v1311_v51 = vshll.u32 %v2610_v49, 16  ;;  %v1453_v52 = vcombine.low %v2459_v57, %v2610_v49  ;;  %v947_v0 = vrot.slane %v940_v5, %v2422_v34  ;;  %v2232_v10 = vld [vmem:[%s2785_s3 + $0x190] sm:$0xff]  }
  0x30   : > { %2017 = vmatprep.subr.bf16.mxu0 %v2280_v1 }
  0x31   : > { %2038 = vmatpush3.bf16.msra.mxu1 %v2201_v9  ;;  %v1313_v59 = vsel %vm2454_vm15, %v1306_v50, %v1311_v51  ;;  %v2235_v9 = vld [vmem:[%s2785_s3 + $0x1d8] sm:$0xff]  }
  0x32   : > { %2039 = vmatprep.subr.bf16.mxu1 %v2280_v1  ;;  %v1331_v60 = vcombine.low %v2477_v2, %v1313_v59  ;;  %v2228_v2 = vld [vmem:[%s2785_s3 + $0x180] sm:$0xff]  }
  0x33   : > { %2018 = vmatpush3.bf16.msra.mxu0 %v2200_v12  ;;  %v2234_v12 = vld [vmem:[%s2785_s3 + $0x198] sm:$0xff]  }
  0x34   : > { %2019 = vmatprep.subr.bf16.mxu0 %v2280_v1  ;;  %v1338_v19 = vrot.slane %v1331_v60, %v2422_v34 }
  0x35   : > { %2040 = vmatpush3.bf16.msra.mxu1 %v2203_v11  ;;  %v2237_v11 = vld [vmem:[%s2785_s3 + $0x1e0] sm:$0xff]  }
  0x36   : > { %2041 = vmatprep.subr.bf16.mxu1 %v2280_v1  ;;  %v1345_v22 = vrot.slane %v1338_v19, %v2422_v34 }
  0x37   : > { %2020 = vmatpush3.bf16.msra.mxu0 %v2202_v16  ;;  %v2236_v16 = vld [vmem:[%s2785_s3 + $0x1a0] sm:$0xff]  }
  0x38   : > { %2021 = vmatprep.subr.bf16.mxu0 %v2280_v1 }
  0x39   : > { %2042 = vmatpush3.bf16.msra.mxu1 %v2205_v13  ;;  %v2239_v13 = vld [vmem:[%s2785_s3 + $0x1e8] sm:$0xff]  }
  0x3a   : > { %2043 = vmatprep.subr.bf16.mxu1 %v2280_v1 }
  0x3b   : > { %2022 = vmatpush3.bf16.msra.mxu0 %v2204_v18  ;;  %v2238_v18 = vld [vmem:[%s2785_s3 + $0x1a8] sm:$0xff]  }
  0x3c   : > { %2023 = vmatprep.subr.bf16.mxu0 %v2280_v1 }
  0x3d   : > { %2044 = vmatpush3.bf16.msra.mxu1 %v2207_v17  ;;  %v2241_v17 = vld [vmem:[%s2785_s3 + $0x1f0] sm:$0xff]  }
  0x3e   : > { %2045 = vmatprep.subr.bf16.mxu1 %v2280_v1 }
  0x3f   : > { %2024 = vmatpush3.bf16.msra.mxu0 %v2206_v21  ;;  %v2240_v21 = vld [vmem:[%s2785_s3 + $0x1b0] sm:$0xff]  }
  0x40   : > { %2025 = vmatprep.subr.bf16.mxu0 %v2280_v1 }
  0x41   : > { %2046 = vmatpush3.bf16.msra.mxu1 %v2209_v20  ;;  %v2243_v20 = vld [vmem:[%s2785_s3 + $0x1f8] sm:$0xff]  }
  0x42   : > { %2047 = vmatprep.subr.bf16.mxu1 %v2280_v1 }
  0x43   : > { %2026 = vmatpush3.bf16.msra.mxu0 %v2208_v25 }
  0x44   : > { %2027 = vmatprep.subr.bf16.mxu0 %v2280_v1 }
  0x45   : > { %2048 = vmatpush3.bf16.msra.mxu1 %v2211_v23  ;;  %v1185_v23 = vrot.slane %v1830_v42, %v2422_v34 }
  0x46   : > { %2073 = vmatprep.subr.bf16.mxu1 %v2280_v1 }
  0x47   : > { %2028 = vmatpush3.bf16.msra.mxu0 %v2210_v29  ;;  %v1192_v25 = vrot.slane %v1185_v23, %v2422_v34  ;;  %v2248_v29 = vld [vmem:[%s2785_s3 + $0x220] sm:$0xff]  }
  0x48   : > { %2050 = vmatmul.mubr.bf16.vlgmr.msra.gmra.mrb[4].mxu1 %v794_v26  ;;  %2053 = vmatprep.subr.bf16.mxu0 %v2280_v1  ;;  %v2244_v26 = vld [vmem:[%s2785_s3 + $0x200] sm:$0xff]  }
  0x49   : > { %2074 = vmatpush3.bf16.msra.mxu1 %v2213_v27  ;;  %2089 = vmatprep.mubr.msk.bf16.mxu1 %vm2281_vm0, %v2280_v1  ;;  %v2246_v27 = vld [vmem:[%s2785_s3 + $0x210] sm:$0xff]  }
  0x4a   : > { %2075 = vmatprep.subr.bf16.mxu1 %v2280_v1  ;;  %2030 = vmatmul.mubr.bf16.vlgmr.msra.gmra.mrb[4].mxu0 %v671_v31  ;;  %v2250_v31 = vld [vmem:[%s2785_s3 + $0x230] sm:$0xff]  }
  0x4b   : > { %2054 = vmatpush3.bf16.msra.mxu0 %v2212_v32  ;;  %2069 = vmatprep.mubr.msk.bf16.mxu0 %vm2281_vm0, %v2280_v1  ;;  %v1460_v32 = vrot.slane %v1453_v52, %v2422_v34 }
  0x4c   : > { %2055 = vmatprep.subr.bf16.mxu0 %v2280_v1 }
  0x4d   : > { %2076 = vmatpush3.bf16.msra.mxu1 %v2215_v30  ;;  %v2249_v30 = vld [vmem:[%s2785_s3 + $0x228] sm:$0xff]  }
  0x4e   : > { %2077 = vmatprep.subr.bf16.mxu1 %v2280_v1 }
  0x4f   : > { %2056 = vmatpush3.bf16.msra.mxu0 %v2214_v39 }
  0x50   : > { %2057 = vmatprep.subr.bf16.mxu0 %v2280_v1 }
  0x51   : > { %2078 = vmatpush3.bf16.msra.mxu1 %v2217_v36  ;;  %v1467_v36 = vrot.slane %v1460_v32, %v2422_v34 }
  0x52   : > { %2079 = vmatprep.subr.bf16.mxu1 %v2280_v1 }
  0x53   : > { %2058 = vmatpush3.bf16.msra.mxu0 %v2216_v43 }
  0x54   : > { %2059 = vmatprep.subr.bf16.mxu0 %v2280_v1 }
  0x55   : > { %2080 = vmatpush3.bf16.msra.mxu1 %v2219_v40 }
  0x56   : > { %2081 = vmatprep.subr.bf16.mxu1 %v2280_v1 }
  0x57   : > { %2060 = vmatpush3.bf16.msra.mxu0 %v2218_v47 }
  0x58   : > { %2061 = vmatprep.subr.bf16.mxu0 %v2280_v1 }
  0x59   : > { %2082 = vmatpush3.bf16.msra.mxu1 %v2221_v15 }
  0x5a   : > { %2083 = vmatprep.subr.bf16.mxu1 %v2280_v1 }
  0x5b   : > { %2062 = vmatpush3.bf16.msra.mxu0 %v2220_v53 }
  0x5c   : > { %2063 = vmatprep.subr.bf16.mxu0 %v2280_v1 }
  0x5d   : > { %2084 = vmatpush3.bf16.msra.mxu1 %v2223_v48 }
  0x5e   : > { %2085 = vmatprep.subr.bf16.mxu1 %v2280_v1 }
  0x5f   : > { %2064 = vmatpush3.bf16.msra.mxu0 %v2222_v61 }
  0x60   : > { %2065 = vmatprep.subr.bf16.mxu0 %v2280_v1 }
  0x61   : > { %2086 = vmatpush3.bf16.msra.mxu1 %v2225_v58 }
  0x62   : > { %2087 = vmatprep.subr.bf16.mxu1 %v2280_v1 }
  0x63   : > { %2066 = vmatpush3.bf16.msra.mxu0 %v2224_v55 }
  0x64   : > { %2067 = vmatprep.subr.bf16.mxu0 %v2280_v1 }
  0x65   : > { %2088 = vmatpush3.bf16.msra.mxu1 %v2227_v62 }
  0x66   : > { %2113 = vmatprep.subr.bf16.mxu1 %v2280_v1 }
  0x67   : > { %2068 = vmatpush3.bf16.msra.mxu0 %v2226_v6 }
  0x68   : > { %2090 = vmatmul.mubr.bf16.vlgmr.msra.gmra.mrb[8].mxu1 %v1069_v63  ;;  %2093 = vmatprep.subr.bf16.mxu0 %v2280_v1 }
  0x69   : > { %2114 = vmatpush3.bf16.msra.mxu1 %v2229_v3  ;;  %2129 = vmatprep.mubr.msk.bf16.mxu1 %vm2281_vm0, %v2280_v1 }
  0x6a   : > { %2115 = vmatprep.subr.bf16.mxu1 %v2280_v1  ;;  %2070 = vmatmul.mubr.bf16.vlgmr.msra.gmra.mrb[8].mxu0 %v947_v0 }
  0x6b   : > { %2094 = vmatpush3.bf16.msra.mxu0 %v2228_v2  ;;  %2109 = vmatprep.mubr.msk.bf16.mxu0 %vm2281_vm0, %v2280_v1 }
  0x6c   : > { %2095 = vmatprep.subr.bf16.mxu0 %v2280_v1 }
  0x6d   : > { %2116 = vmatpush3.bf16.msra.mxu1 %v2231_v7 }
  0x6e   : > { %2117 = vmatprep.subr.bf16.mxu1 %v2280_v1 }
  0x6f   : > { %2096 = vmatpush3.bf16.msra.mxu0 %v2230_v8 }
  0x70   : > { %2097 = vmatprep.subr.bf16.mxu0 %v2280_v1 }
  0x71   : > { %2118 = vmatpush3.bf16.msra.mxu1 %v2233_v4 }
  0x72   : > { %2119 = vmatprep.subr.bf16.mxu1 %v2280_v1 }
  0x73   : > { %2098 = vmatpush3.bf16.msra.mxu0 %v2232_v10  ;;  %v1888_v10 = vld [vmem:[%s2786_s4] ss:$0 sm:$0xff] }
  0x74   : > { %2099 = vmatprep.subr.bf16.mxu0 %v2280_v1 }
  0x75   : > { %2120 = vmatpush3.bf16.msra.mxu1 %v2235_v9 }
  0x76   : > { %2121 = vmatprep.subr.bf16.mxu1 %v2280_v1 }
  0x77   : > { %2100 = vmatpush3.bf16.msra.mxu0 %v2234_v12 }
  0x78   : > { %2101 = vmatprep.subr.bf16.mxu0 %v2280_v1 }
  0x79   : > { %2122 = vmatpush3.bf16.msra.mxu1 %v2237_v11 }
  0x7a   : > { %2123 = vmatprep.subr.bf16.mxu1 %v2280_v1 }
  0x7b   : > { %2102 = vmatpush3.bf16.msra.mxu0 %v2236_v16 }
  0x7c   : > { %2103 = vmatprep.subr.bf16.mxu0 %v2280_v1 }
  0x7d   : > { %2124 = vmatpush3.bf16.msra.mxu1 %v2239_v13 }
  0x7e   : > { %2125 = vmatprep.subr.bf16.mxu1 %v2280_v1 }
  0x7f   : > { %2104 = vmatpush3.bf16.msra.mxu0 %v2238_v18 }
  0x80   : > { %2105 = vmatprep.subr.bf16.mxu0 %v2280_v1 }
  0x81   : > { %2126 = vmatpush3.bf16.msra.mxu1 %v2241_v17 }
  0x82   : > { %2127 = vmatprep.subr.bf16.mxu1 %v2280_v1 }
  0x83   : > { %2106 = vmatpush3.bf16.msra.mxu0 %v2240_v21 }
  0x84   : > { %2107 = vmatprep.subr.bf16.mxu0 %v2280_v1 }
  0x85   : > { %2128 = vmatpush3.bf16.msra.mxu1 %v2243_v20 }
  0x87   : > { %2108 = vmatpush3.bf16.msra.mxu0 %v2242_v24 }
  0x88   : > { %2130 = vmatmul.mubr.bf16.vlgmr.msra.gmra.mrb[12].mxu1 %v1345_v22  ;;  %2133 = vmatprep.subr.bf16.mxu0 %v2280_v1 }
  0x8a   : > { %2110 = vmatmul.mubr.bf16.vlgmr.msra.gmra.mrb[12].mxu0 %v1192_v25 }
  0x8b   : > { %2134 = vmatpush3.bf16.msra.mxu0 %v2244_v26  ;;  %2149 = vmatprep.mubr.msk.bf16.mxu0 %vm2281_vm0, %v2280_v1 }
  0x8c   : > { %2135 = vmatprep.subr.bf16.mxu0 %v2280_v1 }
  0x8f   : > { %2136 = vmatpush3.bf16.msra.mxu0 %v2245_v33 }
  0x90   : > { %2137 = vmatprep.subr.bf16.mxu0 %v2280_v1 }
  0x93   : > { %2138 = vmatpush3.bf16.msra.mxu0 %v2246_v27 }
  0x94   : > { %2139 = vmatprep.subr.bf16.mxu0 %v2280_v1 }
  0x97   : > { %2140 = vmatpush3.bf16.msra.mxu0 %v2247_v28 }
  0x98   : > { %2141 = vmatprep.subr.bf16.mxu0 %v2280_v1 }
  0x9b   : > { %2142 = vmatpush3.bf16.msra.mxu0 %v2248_v29 }
  0x9c   : > { %2143 = vmatprep.subr.bf16.mxu0 %v2280_v1 }
  0x9f   : > { %2144 = vmatpush3.bf16.msra.mxu0 %v2249_v30 }
  0xa0   : > { %2145 = vmatprep.subr.bf16.mxu0 %v2280_v1 }
  0xa3   : > { %2146 = vmatpush3.bf16.msra.mxu0 %v2250_v31 }
  0xa4   : > { %2147 = vmatprep.subr.bf16.mxu0 %v2280_v1 }
  0xa7   : > { %2148 = vmatpush3.bf16.msra.mxu0 %v2251_v35 }
  0xaa   : > { %2150 = vmatmul.mubr.bf16.vlgmr.msra.gmra.mrb[16].mxu0 %v1467_v36 }
  0xfb   : > { %v634_v37 = vpop.f32.mrb[0].mxu1 }
  0xfc   : > { %v2011_v38 = vpop.f32.mrb[1].mxu1 }
  0xfd   : > { %v637_v39 = vpop.f32.mrb[2].mxu1  ;;  %v530_v41 = vpop.f32.mrb[0].mxu0 }
  0xfe   : > { %v2012_v40 = vpop.f32.mrb[3].mxu1  ;;  %v1991_v14 = vpop.f32.mrb[1].mxu0  ;;  %v635_v42 = vadd.f32 %v634_v37, %v530_v41 }
  0xff   : > { %v533_v57 = vpop.f32.mrb[2].mxu0 }
 0x100   : > { %v1992_v43 = vpop.f32.mrb[3].mxu0 }
 0x11b   : > { %v878_v15 = vpop.f32.mrb[4].mxu1 }
 0x11c   : > { %v2051_v44 = vpop.f32.mrb[5].mxu1 }
 0x11d   : > { %v881_v45 = vpop.f32.mrb[6].mxu1  ;;  %v755_v47 = vpop.f32.mrb[4].mxu0 }
 0x11e   : > { %v2052_v46 = vpop.f32.mrb[7].mxu1  ;;  %v761_v48 = vadd.f32 %v755_v47, %v635_v42  ;;  %v2031_v1 = vpop.f32.mrb[5].mxu0 }
 0x11f   : > { %v758_v49 = vpop.f32.mrb[6].mxu0 }
 0x120   : > { %v884_v34 = vadd.f32 %v878_v15, %v761_v48  ;;  %v2032_v50 = vpop.f32.mrb[7].mxu0 }
 0x13b   : > { %v1153_v51 = vpop.f32.mrb[8].mxu1 }
 0x13c   : > { %v2091_v52 = vpop.f32.mrb[9].mxu1 }
 0x13d   : > { %v1156_v53 = vpop.f32.mrb[10].mxu1  ;;  %v1031_v58 = vpop.f32.mrb[8].mxu0 }
 0x13e   : > { %v2092_v56 = vpop.f32.mrb[11].mxu1  ;;  %v1037_v59 = vadd.f32 %v1031_v58, %v884_v34  ;;  %v2071_v60 = vpop.f32.mrb[9].mxu0 }
 0x13f   : > { %v1034_v61 = vpop.f32.mrb[10].mxu0 }
 0x140   : > { %v1159_v54 = vadd.f32 %v1153_v51, %v1037_v59  ;;  %v2072_v62 = vpop.f32.mrb[11].mxu0 }
 0x15b   : > { %v1429_v55 = vpop.f32.mrb[12].mxu1 }
 0x15c   : > { %v2131_v63 = vpop.f32.mrb[13].mxu1 }
 0x15d   : > { %v1432_v3 = vpop.f32.mrb[14].mxu1  ;;  %v1276_v6 = vpop.f32.mrb[12].mxu0 }
 0x15e   : > { %v2132_v5 = vpop.f32.mrb[15].mxu1  ;;  %v1282_v7 = vadd.f32 %v1276_v6, %v1159_v54  ;;  %v2111_v0 = vpop.f32.mrb[13].mxu0 }
 0x15f   : > { %v1279_v2 = vpop.f32.mrb[14].mxu0 }
 0x160   : > { %v1435_v4 = vadd.f32 %v1429_v55, %v1282_v7  ;;  %v2112_v8 = vpop.f32.mrb[15].mxu0 }
 0x17d   : > { %v1551_v9 = vpop.f32.mrb[16].mxu0 }
 0x17e   : > { %v1557_v11 = vadd.f32 %v1551_v9, %v1435_v4  ;;  %v2151_v12 = vpop.f32.mrb[17].mxu0 }
 0x17f   : > { %v1554_v13 = vpop.f32.mrb[18].mxu0 }
 0x180   : > { %v1565_v16 = vadd.f32 %v1888_v10, %v1557_v11  ;;  %v2152_v17 = vpop.f32.mrb[19].mxu0 }
 0x182   : > { %v1566_v18 = vsub.f32 0.0, %v1565_v16 }
 0x184   : > { %v1567_v19 = vmul.f32 1.442695, %v1566_v18 }
 0x186   : > { %2252 = vpow2.f32 %v1567_v19 }
 0x190   : > { %v2253_v20 = vpop.eup %2252 }
 0x191   : > { %v1569_v21 = vadd.f32 1.0, %v2253_v20 }
 0x193   : > { %2254 = vrcp.f32 %v1569_v21 }
 0x19d   : > { %v2255_v22 = vpop.eup %2254 }
 0x19e   : > { %1572 = vst [vmem:[%s284_s11] sm:$0xf] %v2255_v22 }
 0x19f PF: > { %s15_s20 = sadd.s32 1, %s2278_s20   ;;  %s2790_s18 = smov %s2274_s19 }
 0x1a0   : > { %p12_p5 = scmp.ge.s32.totalorder %s15_s20, 4   ;;  %s2791_s19 = smov %s2793_s21 }
 0x1a2   :  { %14 = sbr.rel (!%p12_p5) target bundleno = 2 (0x2), region = 84 }

</bundles_post_ra>
